<compile_context>
chip_gen: v7x
topology: tpu7x:2x2x1
jax: 0.10.0
libtpu: 0.0.40
codegen_flags: <defaults>
</compile_context>

<pallas_src>
import functools

import jax
import jax.numpy as jnp
from jax.experimental import pallas as pl
from jax.experimental.pallas import tpu as pltpu

_EPS = 1e-5


# --------------------------- bilinear 2x upsample ----------------------------


def _interp_matrix(n_in, n_out):
    """align_corners=True linear interpolation matrix of shape (n_out, n_in)."""
    if n_in == 1:
        return jnp.ones((n_out, n_in), jnp.float32)
    pos = jnp.arange(n_out, dtype=jnp.float32) * (n_in - 1) / (n_out - 1)
    lo = jnp.clip(jnp.floor(pos).astype(jnp.int32), 0, n_in - 2)
    frac = pos - lo.astype(jnp.float32)
    rows = jnp.arange(n_out)
    a = jnp.zeros((n_out, n_in), jnp.float32)
    a = a.at[rows, lo].add(1.0 - frac)
    a = a.at[rows, lo + 1].add(frac)
    return a


def upsample_bilinear_2x(x):
    # nn.Upsample(scale_factor=2, mode='bilinear', align_corners=True),
    # done as two separable matmuls (H then W).
    # TODO(synk): could be folded into the first Pallas pass via a precomputed
    # (H*W, Lp) interpolation matrix; kept as two small XLA matmuls here.
    n, c, h, w = x.shape
    ah = _interp_matrix(h, 2 * h)
    aw = _interp_matrix(w, 2 * w)
    xh = jnp.einsum("oh,nchw->ncow", ah, x, precision=jax.lax.Precision.HIGHEST)
    xu = jnp.einsum("pw,ncow->ncop", aw, xh, precision=jax.lax.Precision.HIGHEST)
    return xu.astype(x.dtype)


# ------------------------------ layout helpers --------------------------------


def _pad_flat(x):
    """(N, C, H, W) -> (N, C, (H+2)*(W+2)): zero-pad spatially by 1, flatten HW."""
    n, c, h, w = x.shape
    xp = jnp.pad(x, ((0, 0), (0, 0), (1, 1), (1, 1)))
    return xp.reshape(n, c, (h + 2) * (w + 2))


# ------------------------------ Pallas kernels --------------------------------


def _conv3x3_taps(act, w_ref, H, W):
    """3x3 'same' conv on a padded-flat activation.

    act:   (Cin, Lp) BN'd + masked activation, Lp = (H+2)*(W+2), zeros at the
           padding ring.
    w_ref: (9, Cout, Cin) weight ref, k = ky*3 + kx.
    Returns the (Cout, Lspan) output span covering every interior pixel
    (Lspan = H*(W+2) - 2, starting at flat offset W+3).
    """
    Wp = W + 2
    q0 = W + 3
    Lspan = H * Wp - 2
    cout = w_ref.shape[1]
    acc = jnp.zeros((cout, Lspan), jnp.float32)
    for dy in range(3):
        for dx in range(3):
            k = dy * 3 + dx
            off = q0 + (dy - 1) * Wp + (dx - 1)  # always within [0, Lp-Lspan]
            acc = acc + jnp.dot(
                w_ref[k], act[:, off:off + Lspan],
                preferred_element_type=jnp.float32)
    return acc


def _shortcut_stats_kernel(xup_ref, xsk_ref, wsu_ref, wss_ref, bs_ref,
                           s_ref, psu_ref, pss_ref):
    """1x1 shortcut conv over both channel groups + per-image BN1 partial stats."""
    xu = xup_ref[0]  # (C1, Lp), zeros at padding
    xs = xsk_ref[0]  # (C2, Lp)
    s = (jnp.dot(wsu_ref[...], xu, preferred_element_type=jnp.float32)
         + jnp.dot(wss_ref[...], xs, preferred_element_type=jnp.float32)
         + bs_ref[...])
    s_ref[0] = s.astype(s_ref.dtype)
    # Padding positions are exact zeros -> sums over Lp equal sums over the image.
    psu_ref[0, :, 0:1] = jnp.sum(xu, axis=1, keepdims=True)
    psu_ref[0, :, 1:2] = jnp.sum(xu * xu, axis=1, keepdims=True)
    pss_ref[0, :, 0:1] = jnp.sum(xs, axis=1, keepdims=True)
    pss_ref[0, :, 1:2] = jnp.sum(xs * xs, axis=1, keepdims=True)


def _conv1_bn_kernel(xup_ref, xsk_ref, ssu_ref, sss_ref, w1u_ref, w1s_ref,
                     b1_ref, mask_ref, y_ref, ps_ref, *, H, W):
    """BN1-apply + ReLU fused into the 3x3 conv1, plus BN2 partial stats."""
    Wp = W + 2
    q0 = W + 3
    Lspan = H * Wp - 2
    m = mask_ref[...]  # (1, Lp): 1 on interior pixels, 0 on the padding ring
    # Folded BN scale/shift + ReLU; re-zero the padding ring so the shifted
    # taps see proper conv zero padding.
    au = jnp.maximum(xup_ref[0] * ssu_ref[:, 0:1] + ssu_ref[:, 1:2], 0.0) * m
    ak = jnp.maximum(xsk_ref[0] * sss_ref[:, 0:1] + sss_ref[:, 1:2], 0.0) * m
    acc = _conv3x3_taps(au, w1u_ref, H, W) + _conv3x3_taps(ak, w1s_ref, H, W)
    acc = acc + b1_ref[...]
    y_ref[...] = jnp.zeros(y_ref.shape, y_ref.dtype)
    y_ref[0, :, q0:q0 + Lspan] = acc.astype(y_ref.dtype)
    # Fused BN2 partial statistics over the true image positions only.
    ym = acc * m[:, q0:q0 + Lspan]
    ps_ref[0, :, 0:1] = jnp.sum(ym, axis=1, keepdims=True)
    ps_ref[0, :, 1:2] = jnp.sum(ym * ym, axis=1, keepdims=True)


def _conv2_bn_add_kernel(y_ref, s_ref, ss_ref, w2_ref, b2_ref, mask_ref,
                         o_ref, *, H, W):
    """BN2-apply + ReLU fused into the 3x3 conv2, plus fused residual add."""
    Wp = W + 2
    q0 = W + 3
    Lspan = H * Wp - 2
    m = mask_ref[...]
    a = jnp.maximum(y_ref[0] * ss_ref[:, 0:1] + ss_ref[:, 1:2], 0.0) * m
    acc = _conv3x3_taps(a, w2_ref, H, W)
    acc = acc + b2_ref[...] + s_ref[0, :, q0:q0 + Lspan]
    o_ref[...] = jnp.zeros(o_ref.shape, o_ref.dtype)
    o_ref[0, :, q0:q0 + Lspan] = acc.astype(o_ref.dtype)


# ------------------------------ forward wrapper --------------------------------


def _fold_scale_shift(partials, gamma, beta, count):
    """Reduce per-image (sum, sumsq) partials -> folded BN (scale, shift)."""
    tot = jnp.concatenate([jnp.sum(p, axis=0) for p in partials], axis=0)  # (C, 2)
    mean = tot[:, 0] / count
    var = jnp.maximum(tot[:, 1] / count - mean * mean, 0.0)
    inv_std = jax.lax.rsqrt(var + _EPS)
    scale = gamma.astype(jnp.float32) * inv_std
    shift = beta.astype(jnp.float32) - mean * scale
    return jnp.stack([scale, shift], axis=1)  # (C, 2): col 0 scale, col 1 shift


def decoder_block_forward(params, inputs, skip):
    # TODO(synk): nn.Dropout2d / nn.Dropout are treated as identity (eval-mode
    # forward); training-mode stochastic channel dropout is not reproduced.
    r = params["res"]
    n, c1, _, _ = inputs.shape
    _, c2, h, w = skip.shape
    cout = r["c1_w"].shape[0]
    cc = c1 + c2
    lp = (h + 2) * (w + 2)
    count = float(n * h * w)

    # Upsample, then pad+flatten to the padded-flat layout shared by all
    # kernels.  The channel concat is never materialized.
    x_up = upsample_bilinear_2x(inputs).astype(jnp.float32)
    xup_pf = _pad_flat(x_up)                                   # (N, C1, Lp)
    skip_pf = _pad_flat(skip.astype(jnp.float32))              # (N, C2, Lp)
    mask = _pad_flat(jnp.ones((1, 1, h, w), jnp.float32))[0]   # (1, Lp)

    # Tiny parameter repacking (XLA).
    ws = r["s_w"].reshape(cout, cc).astype(jnp.float32)
    wsu, wss = ws[:, :c1], ws[:, c1:]
    bs = r["s_b"].reshape(cout, 1).astype(jnp.float32)
    w1 = r["c1_w"].transpose(2, 3, 0, 1).reshape(9, cout, cc).astype(jnp.float32)
    w1u, w1s = w1[:, :, :c1], w1[:, :, c1:]
    b1 = r["c1_b"].reshape(cout, 1).astype(jnp.float32)
    w2 = r["c2_w"].transpose(2, 3, 0, 1).reshape(9, cout, cout).astype(jnp.float32)
    b2 = r["c2_b"].reshape(cout, 1).astype(jnp.float32)

    par = pltpu.CompilerParams(dimension_semantics=("parallel",))

    # Kernel A: 1x1 shortcut conv + BN1 partial stats (single read of x).
    s_pf, ps_up, ps_sk = pl.pallas_call(
        _shortcut_stats_kernel,
        out_shape=(jax.ShapeDtypeStruct((n, cout, lp), jnp.float32),
                   jax.ShapeDtypeStruct((n, c1, 2), jnp.float32),
                   jax.ShapeDtypeStruct((n, c2, 2), jnp.float32)),
        grid=(n,),
        in_specs=[
            pl.BlockSpec((1, c1, lp), lambda i: (i, 0, 0)),
            pl.BlockSpec((1, c2, lp), lambda i: (i, 0, 0)),
            pl.BlockSpec((cout, c1), lambda i: (0, 0)),
            pl.BlockSpec((cout, c2), lambda i: (0, 0)),
            pl.BlockSpec((cout, 1), lambda i: (0, 0)),
        ],
        out_specs=(
            pl.BlockSpec((1, cout, lp), lambda i: (i, 0, 0)),
            pl.BlockSpec((1, c1, 2), lambda i: (i, 0, 0)),
            pl.BlockSpec((1, c2, 2), lambda i: (i, 0, 0)),
        ),
        compiler_params=par,
    )(xup_pf, skip_pf, wsu, wss, bs)

    ss1 = _fold_scale_shift([ps_up, ps_sk], r["bn1_gamma"], r["bn1_beta"], count)
    ss1_up, ss1_sk = ss1[:c1], ss1[c1:]

    # Kernel B: BN1-apply + ReLU + in-kernel 3x3 conv (9 shifted MXU dots per
    # channel group, no im2col) + fused BN2 partial stats.
    y1_pf, ps2 = pl.pallas_call(
        functools.partial(_conv1_bn_kernel, H=h, W=w),
        out_shape=(jax.ShapeDtypeStruct((n, cout, lp), jnp.float32),
                   jax.ShapeDtypeStruct((n, cout, 2), jnp.float32)),
        grid=(n,),
        in_specs=[
            pl.BlockSpec((1, c1, lp), lambda i: (i, 0, 0)),
            pl.BlockSpec((1, c2, lp), lambda i: (i, 0, 0)),
            pl.BlockSpec((c1, 2), lambda i: (0, 0)),
            pl.BlockSpec((c2, 2), lambda i: (0, 0)),
            pl.BlockSpec((9, cout, c1), lambda i: (0, 0, 0)),
            pl.BlockSpec((9, cout, c2), lambda i: (0, 0, 0)),
            pl.BlockSpec((cout, 1), lambda i: (0, 0)),
            pl.BlockSpec((1, lp), lambda i: (0, 0)),
        ],
        out_specs=(
            pl.BlockSpec((1, cout, lp), lambda i: (i, 0, 0)),
            pl.BlockSpec((1, cout, 2), lambda i: (i, 0, 0)),
        ),
        compiler_params=par,
    )(xup_pf, skip_pf, ss1_up, ss1_sk, w1u, w1s, b1, mask)

    ss2 = _fold_scale_shift([ps2], r["bn2_gamma"], r["bn2_beta"], count)

    # Kernel C: BN2-apply + ReLU + in-kernel 3x3 conv + fused residual add.
    out_pf = pl.pallas_call(
        functools.partial(_conv2_bn_add_kernel, H=h, W=w),
        out_shape=jax.ShapeDtypeStruct((n, cout, lp), jnp.float32),
        grid=(n,),
        in_specs=[
            pl.BlockSpec((1, cout, lp), lambda i: (i, 0, 0)),
            pl.BlockSpec((1, cout, lp), lambda i: (i, 0, 0)),
            pl.BlockSpec((cout, 2), lambda i: (0, 0)),
            pl.BlockSpec((9, cout, cout), lambda i: (0, 0, 0)),
            pl.BlockSpec((cout, 1), lambda i: (0, 0)),
            pl.BlockSpec((1, lp), lambda i: (0, 0)),
        ],
        out_specs=pl.BlockSpec((1, cout, lp), lambda i: (i, 0, 0)),
        compiler_params=par,
    )(y1_pf, s_pf, ss2, w2, b2, mask)

    # Extract the interior pixels from the padded-flat layout.
    return out_pf.reshape(n, cout, h + 2, w + 2)[:, :, 1:-1, 1:-1]


# ------------------------------ pure-JAX reference -----------------------------


def _bn_relu_ref(x, gamma, beta):
    mean = jnp.mean(x, axis=(0, 2, 3), keepdims=True)
    var = jnp.mean((x - mean) ** 2, axis=(0, 2, 3), keepdims=True)
    y = (x - mean) * jax.lax.rsqrt(var + _EPS)
    y = y * gamma.reshape(1, -1, 1, 1) + beta.reshape(1, -1, 1, 1)
    return jnp.maximum(y, 0.0)


def _conv_ref(x, w, b, padding):
    y = jax.lax.conv_general_dilated(
        x, w, (1, 1), [(padding, padding), (padding, padding)],
        dimension_numbers=("NCHW", "OIHW", "NCHW"),
        precision=jax.lax.Precision.HIGHEST)
    return y + b.reshape(1, -1, 1, 1)


def _decoder_ref(params, inputs, skip):
    x = upsample_bilinear_2x(inputs)
    x = jnp.concatenate([x, skip], axis=1)
    r = params["res"]
    y = _bn_relu_ref(x, r["bn1_gamma"], r["bn1_beta"])
    y = _conv_ref(y, r["c1_w"], r["c1_b"], 1)
    y = _bn_relu_ref(y, r["bn2_gamma"], r["bn2_beta"])
    y = _conv_ref(y, r["c2_w"], r["c2_b"], 1)
    s = _conv_ref(x, r["s_w"], r["s_b"], 0)
    return y + s


if __name__ == "__main__":
    key = jax.random.PRNGKey(0)
    in_c, out_c = 4, 4
    N, H, W = 2, 16, 16  # decoder input; skip arrives at 2x spatial resolution
    ks = jax.random.split(key, 8)
    inputs = jax.random.normal(ks[0], (N, in_c, H, W), jnp.float32)
    skip = jax.random.normal(ks[1], (N, out_c, 2 * H, 2 * W), jnp.float32)

    cc = in_c + out_c  # channels after concat
    params = {
        "res": {
            "bn1_gamma": 1.0 + 0.1 * jnp.arange(cc, dtype=jnp.float32),
            "bn1_beta": 0.05 * jnp.arange(cc, dtype=jnp.float32),
            "c1_w": 0.1 * jax.random.normal(ks[2], (out_c, cc, 3, 3), jnp.float32),
            "c1_b": 0.01 * jnp.arange(out_c, dtype=jnp.float32),
            "bn2_gamma": 1.0 - 0.05 * jnp.arange(out_c, dtype=jnp.float32),
            "bn2_beta": 0.02 * jnp.arange(out_c, dtype=jnp.float32),
            "c2_w": 0.1 * jax.random.normal(ks[3], (out_c, out_c, 3, 3), jnp.float32),
            "c2_b": 0.01 * jnp.ones((out_c,), jnp.float32),
            "s_w": 0.1 * jax.random.normal(ks[4], (out_c, cc, 1, 1), jnp.float32),
            "s_b": jnp.zeros((out_c,), jnp.float32),
        }
    }

    fwd = jax.jit(decoder_block_forward)
    out = jax.block_until_ready(fwd(params, inputs, skip))
    ref = jax.block_until_ready(_decoder_ref(params, inputs, skip))

    assert out.shape == (N, out_c, 2 * H, 2 * W)
    max_err = float(jnp.max(jnp.abs(out - ref)))
    assert jnp.allclose(out, ref, atol=2e-3, rtol=2e-3), f"mismatch, max_err={max_err}"

    print("KERNEL_OK")
</pallas_src>

<mosaic_0001>
module attributes {stable_mosaic.version = 11 : i64} {
  func.func private @main(%arg0: i32) attributes {dimension_semantics = [#tpu.dimension_semantics<core_parallel>], iteration_bounds = array<i64: 2>, tpu.core_type = #tpu.core_type<sc_scalar_subcore>, window_params = []} {
    return
  }
}

module attributes {stable_mosaic.version = 11 : i64} {
  func.func private @main(%arg0: i32) attributes {dimension_semantics = [#tpu.dimension_semantics<core_parallel>], iteration_bounds = array<i64: 2>, tpu.core_type = #tpu.core_type<sc_scalar_subcore>, window_params = []} {
    return
  }
}

module attributes {stable_mosaic.version = 11 : i64} {
  func.func @_conv1_bn_kernel(%arg0: i32, %arg1: memref<1x4x1156xf32, #tpu.memory_space<vmem>>, %arg2: memref<1x4x1156xf32, #tpu.memory_space<vmem>>, %arg3: memref<4x2xf32, #tpu.memory_space<vmem>>, %arg4: memref<4x2xf32, #tpu.memory_space<vmem>>, %arg5: memref<9x4x4xf32, #tpu.memory_space<vmem>>, %arg6: memref<9x4x4xf32, #tpu.memory_space<vmem>>, %arg7: memref<4x1xf32, #tpu.memory_space<vmem>>, %arg8: memref<1x1156xf32, #tpu.memory_space<vmem>>, %arg9: memref<1x4x1156xf32, #tpu.memory_space<vmem>>, %arg10: memref<1x4x2xf32, #tpu.memory_space<vmem>>) attributes {dimension_semantics = [#tpu.dimension_semantics<parallel>], iteration_bounds = array<i64: 2>, scalar_prefetch = 0 : i64, scratch_operands = 0 : i64, tpu.core_type = #tpu.core_type<tc>, window_params = [{transform_indices = @transform_0, window_bounds = array<i64: 1, 4, 1156>}, {transform_indices = @transform_1, window_bounds = array<i64: 1, 4, 1156>}, {pipeline_mode = #tpu.pipeline_mode<synchronous>, transform_indices = @transform_2, window_bounds = array<i64: 4, 2>}, {pipeline_mode = #tpu.pipeline_mode<synchronous>, transform_indices = @transform_3, window_bounds = array<i64: 4, 2>}, {pipeline_mode = #tpu.pipeline_mode<synchronous>, transform_indices = @transform_4, window_bounds = array<i64: 9, 4, 4>}, {pipeline_mode = #tpu.pipeline_mode<synchronous>, transform_indices = @transform_5, window_bounds = array<i64: 9, 4, 4>}, {pipeline_mode = #tpu.pipeline_mode<synchronous>, transform_indices = @transform_6, window_bounds = array<i64: 4, 1>}, {pipeline_mode = #tpu.pipeline_mode<synchronous>, transform_indices = @transform_7, window_bounds = array<i64: 1, 1156>}, {transform_indices = @transform_8, window_bounds = array<i64: 1, 4, 1156>}, {transform_indices = @transform_9, window_bounds = array<i64: 1, 4, 2>}]} {
    %c0 = arith.constant 0 : index
    %c0_0 = arith.constant 0 : index
    %0 = vector.load %arg8[%c0, %c0_0] : memref<1x1156xf32, #tpu.memory_space<vmem>>, vector<1x1156xf32>
    %c0_1 = arith.constant 0 : index
    %c0_2 = arith.constant 0 : index
    %c0_3 = arith.constant 0 : index
    %1 = vector.load %arg1[%c0_1, %c0_2, %c0_3] : memref<1x4x1156xf32, #tpu.memory_space<vmem>>, vector<1x4x1156xf32>
    %2 = vector.shape_cast %1 : vector<1x4x1156xf32> to vector<4x1156xf32>
    %c0_4 = arith.constant 0 : index
    %c0_5 = arith.constant 0 : index
    %3 = vector.load %arg3[%c0_4, %c0_5] : memref<4x2xf32, #tpu.memory_space<vmem>>, vector<4x1xf32>
    %4 = vector.broadcast %3 : vector<4x1xf32> to vector<4x1156xf32>
    %5 = arith.mulf %2, %4 : vector<4x1156xf32>
    %c0_6 = arith.constant 0 : index
    %c1 = arith.constant 1 : index
    %6 = vector.load %arg3[%c0_6, %c1] : memref<4x2xf32, #tpu.memory_space<vmem>>, vector<4x1xf32>
    %7 = vector.broadcast %6 : vector<4x1xf32> to vector<4x1156xf32>
    %8 = arith.addf %5, %7 : vector<4x1156xf32>
    %cst = arith.constant 0.000000e+00 : f32
    %9 = vector.broadcast %cst : f32 to vector<4x1156xf32>
    %10 = arith.maximumf %8, %9 : vector<4x1156xf32>
    %11 = vector.broadcast %0 : vector<1x1156xf32> to vector<4x1156xf32>
    %12 = arith.mulf %10, %11 : vector<4x1156xf32>
    %c0_7 = arith.constant 0 : index
    %c0_8 = arith.constant 0 : index
    %c0_9 = arith.constant 0 : index
    %13 = vector.load %arg2[%c0_7, %c0_8, %c0_9] : memref<1x4x1156xf32, #tpu.memory_space<vmem>>, vector<1x4x1156xf32>
    %14 = vector.shape_cast %13 : vector<1x4x1156xf32> to vector<4x1156xf32>
    %c0_10 = arith.constant 0 : index
    %c0_11 = arith.constant 0 : index
    %15 = vector.load %arg4[%c0_10, %c0_11] : memref<4x2xf32, #tpu.memory_space<vmem>>, vector<4x1xf32>
    %16 = vector.broadcast %15 : vector<4x1xf32> to vector<4x1156xf32>
    %17 = arith.mulf %14, %16 : vector<4x1156xf32>
    %c0_12 = arith.constant 0 : index
    %c1_13 = arith.constant 1 : index
    %18 = vector.load %arg4[%c0_12, %c1_13] : memref<4x2xf32, #tpu.memory_space<vmem>>, vector<4x1xf32>
    %19 = vector.broadcast %18 : vector<4x1xf32> to vector<4x1156xf32>
    %20 = arith.addf %17, %19 : vector<4x1156xf32>
    %cst_14 = arith.constant 0.000000e+00 : f32
    %21 = vector.broadcast %cst_14 : f32 to vector<4x1156xf32>
    %22 = arith.maximumf %20, %21 : vector<4x1156xf32>
    %23 = vector.broadcast %0 : vector<1x1156xf32> to vector<4x1156xf32>
    %24 = arith.mulf %22, %23 : vector<4x1156xf32>
    %cst_15 = arith.constant 0.000000e+00 : f32
    %25 = vector.broadcast %cst_15 : f32 to vector<4x1086xf32>
    %c0_16 = arith.constant 0 : index
    %c0_17 = arith.constant 0 : index
    %c0_18 = arith.constant 0 : index
    %26 = vector.load %arg5[%c0_16, %c0_17, %c0_18] : memref<9x4x4xf32, #tpu.memory_space<vmem>>, vector<1x4x4xf32>
    %27 = vector.shape_cast %26 : vector<1x4x4xf32> to vector<4x4xf32>
    %28 = vector.extract_strided_slice %12 {offsets = [0, 0], sizes = [4, 1086], strides = [1, 1]} : vector<4x1156xf32> to vector<4x1086xf32>
    %cst_19 = arith.constant dense<0.000000e+00> : vector<4x1086xf32>
    %29 = tpu.matmul %27, %28, %cst_19 {dimension_numbers = #tpu.dot_dimension_numbers<[1], [0], [0], [1], [0, 0, 1, 1], [], []>} : vector<4x4xf32>, vector<4x1086xf32>, vector<4x1086xf32> -> vector<4x1086xf32>
    %30 = arith.addf %25, %29 : vector<4x1086xf32>
    %c1_20 = arith.constant 1 : index
    %c0_21 = arith.constant 0 : index
    %c0_22 = arith.constant 0 : index
    %31 = vector.load %arg5[%c1_20, %c0_21, %c0_22] : memref<9x4x4xf32, #tpu.memory_space<vmem>>, vector<1x4x4xf32>
    %32 = vector.shape_cast %31 : vector<1x4x4xf32> to vector<4x4xf32>
    %33 = vector.extract_strided_slice %12 {offsets = [0, 1], sizes = [4, 1086], strides = [1, 1]} : vector<4x1156xf32> to vector<4x1086xf32>
    %cst_23 = arith.constant dense<0.000000e+00> : vector<4x1086xf32>
    %34 = tpu.matmul %32, %33, %cst_23 {dimension_numbers = #tpu.dot_dimension_numbers<[1], [0], [0], [1], [0, 0, 1, 1], [], []>} : vector<4x4xf32>, vector<4x1086xf32>, vector<4x1086xf32> -> vector<4x1086xf32>
    %35 = arith.addf %30, %34 : vector<4x1086xf32>
    %c2 = arith.constant 2 : index
    %c0_24 = arith.constant 0 : index
    %c0_25 = arith.constant 0 : index
    %36 = vector.load %arg5[%c2, %c0_24, %c0_25] : memref<9x4x4xf32, #tpu.memory_space<vmem>>, vector<1x4x4xf32>
    %37 = vector.shape_cast %36 : vector<1x4x4xf32> to vector<4x4xf32>
    %38 = vector.extract_strided_slice %12 {offsets = [0, 2], sizes = [4, 1086], strides = [1, 1]} : vector<4x1156xf32> to vector<4x1086xf32>
    %cst_26 = arith.constant dense<0.000000e+00> : vector<4x1086xf32>
    %39 = tpu.matmul %37, %38, %cst_26 {dimension_numbers = #tpu.dot_dimension_numbers<[1], [0], [0], [1], [0, 0, 1, 1], [], []>} : vector<4x4xf32>, vector<4x1086xf32>, vector<4x1086xf32> -> vector<4x1086xf32>
    %40 = arith.addf %35, %39 : vector<4x1086xf32>
    %c3 = arith.constant 3 : index
    %c0_27 = arith.constant 0 : index
    %c0_28 = arith.constant 0 : index
    %41 = vector.load %arg5[%c3, %c0_27, %c0_28] : memref<9x4x4xf32, #tpu.memory_space<vmem>>, vector<1x4x4xf32>
    %42 = vector.shape_cast %41 : vector<1x4x4xf32> to vector<4x4xf32>
    %43 = vector.extract_strided_slice %12 {offsets = [0, 34], sizes = [4, 1086], strides = [1, 1]} : vector<4x1156xf32> to vector<4x1086xf32>
    %cst_29 = arith.constant dense<0.000000e+00> : vector<4x1086xf32>
    %44 = tpu.matmul %42, %43, %cst_29 {dimension_numbers = #tpu.dot_dimension_numbers<[1], [0], [0], [1], [0, 0, 1, 1], [], []>} : vector<4x4xf32>, vector<4x1086xf32>, vector<4x1086xf32> -> vector<4x1086xf32>
    %45 = arith.addf %40, %44 : vector<4x1086xf32>
    %c4 = arith.constant 4 : index
    %c0_30 = arith.constant 0 : index
    %c0_31 = arith.constant 0 : index
    %46 = vector.load %arg5[%c4, %c0_30, %c0_31] : memref<9x4x4xf32, #tpu.memory_space<vmem>>, vector<1x4x4xf32>
    %47 = vector.shape_cast %46 : vector<1x4x4xf32> to vector<4x4xf32>
    %48 = vector.extract_strided_slice %12 {offsets = [0, 35], sizes = [4, 1086], strides = [1, 1]} : vector<4x1156xf32> to vector<4x1086xf32>
    %cst_32 = arith.constant dense<0.000000e+00> : vector<4x1086xf32>
    %49 = tpu.matmul %47, %48, %cst_32 {dimension_numbers = #tpu.dot_dimension_numbers<[1], [0], [0], [1], [0, 0, 1, 1], [], []>} : vector<4x4xf32>, vector<4x1086xf32>, vector<4x1086xf32> -> vector<4x1086xf32>
    %50 = arith.addf %45, %49 : vector<4x1086xf32>
    %c5 = arith.constant 5 : index
    %c0_33 = arith.constant 0 : index
    %c0_34 = arith.constant 0 : index
    %51 = vector.load %arg5[%c5, %c0_33, %c0_34] : memref<9x4x4xf32, #tpu.memory_space<vmem>>, vector<1x4x4xf32>
    %52 = vector.shape_cast %51 : vector<1x4x4xf32> to vector<4x4xf32>
    %53 = vector.extract_strided_slice %12 {offsets = [0, 36], sizes = [4, 1086], strides = [1, 1]} : vector<4x1156xf32> to vector<4x1086xf32>
    %cst_35 = arith.constant dense<0.000000e+00> : vector<4x1086xf32>
    %54 = tpu.matmul %52, %53, %cst_35 {dimension_numbers = #tpu.dot_dimension_numbers<[1], [0], [0], [1], [0, 0, 1, 1], [], []>} : vector<4x4xf32>, vector<4x1086xf32>, vector<4x1086xf32> -> vector<4x1086xf32>
    %55 = arith.addf %50, %54 : vector<4x1086xf32>
    %c6 = arith.constant 6 : index
    %c0_36 = arith.constant 0 : index
    %c0_37 = arith.constant 0 : index
    %56 = vector.load %arg5[%c6, %c0_36, %c0_37] : memref<9x4x4xf32, #tpu.memory_space<vmem>>, vector<1x4x4xf32>
    %57 = vector.shape_cast %56 : vector<1x4x4xf32> to vector<4x4xf32>
    %58 = vector.extract_strided_slice %12 {offsets = [0, 68], sizes = [4, 1086], strides = [1, 1]} : vector<4x1156xf32> to vector<4x1086xf32>
    %cst_38 = arith.constant dense<0.000000e+00> : vector<4x1086xf32>
    %59 = tpu.matmul %57, %58, %cst_38 {dimension_numbers = #tpu.dot_dimension_numbers<[1], [0], [0], [1], [0, 0, 1, 1], [], []>} : vector<4x4xf32>, vector<4x1086xf32>, vector<4x1086xf32> -> vector<4x1086xf32>
    %60 = arith.addf %55, %59 : vector<4x1086xf32>
    %c7 = arith.constant 7 : index
    %c0_39 = arith.constant 0 : index
    %c0_40 = arith.constant 0 : index
    %61 = vector.load %arg5[%c7, %c0_39, %c0_40] : memref<9x4x4xf32, #tpu.memory_space<vmem>>, vector<1x4x4xf32>
    %62 = vector.shape_cast %61 : vector<1x4x4xf32> to vector<4x4xf32>
    %63 = vector.extract_strided_slice %12 {offsets = [0, 69], sizes = [4, 1086], strides = [1, 1]} : vector<4x1156xf32> to vector<4x1086xf32>
    %cst_41 = arith.constant dense<0.000000e+00> : vector<4x1086xf32>
    %64 = tpu.matmul %62, %63, %cst_41 {dimension_numbers = #tpu.dot_dimension_numbers<[1], [0], [0], [1], [0, 0, 1, 1], [], []>} : vector<4x4xf32>, vector<4x1086xf32>, vector<4x1086xf32> -> vector<4x1086xf32>
    %65 = arith.addf %60, %64 : vector<4x1086xf32>
    %c8 = arith.constant 8 : index
    %c0_42 = arith.constant 0 : index
    %c0_43 = arith.constant 0 : index
    %66 = vector.load %arg5[%c8, %c0_42, %c0_43] : memref<9x4x4xf32, #tpu.memory_space<vmem>>, vector<1x4x4xf32>
    %67 = vector.shape_cast %66 : vector<1x4x4xf32> to vector<4x4xf32>
    %68 = vector.extract_strided_slice %12 {offsets = [0, 70], sizes = [4, 1086], strides = [1, 1]} : vector<4x1156xf32> to vector<4x1086xf32>
    %cst_44 = arith.constant dense<0.000000e+00> : vector<4x1086xf32>
    %69 = tpu.matmul %67, %68, %cst_44 {dimension_numbers = #tpu.dot_dimension_numbers<[1], [0], [0], [1], [0, 0, 1, 1], [], []>} : vector<4x4xf32>, vector<4x1086xf32>, vector<4x1086xf32> -> vector<4x1086xf32>
    %70 = arith.addf %65, %69 : vector<4x1086xf32>
    %cst_45 = arith.constant 0.000000e+00 : f32
    %71 = vector.broadcast %cst_45 : f32 to vector<4x1086xf32>
    %c0_46 = arith.constant 0 : index
    %c0_47 = arith.constant 0 : index
    %c0_48 = arith.constant 0 : index
    %72 = vector.load %arg6[%c0_46, %c0_47, %c0_48] : memref<9x4x4xf32, #tpu.memory_space<vmem>>, vector<1x4x4xf32>
    %73 = vector.shape_cast %72 : vector<1x4x4xf32> to vector<4x4xf32>
    %74 = vector.extract_strided_slice %24 {offsets = [0, 0], sizes = [4, 1086], strides = [1, 1]} : vector<4x1156xf32> to vector<4x1086xf32>
    %cst_49 = arith.constant dense<0.000000e+00> : vector<4x1086xf32>
    %75 = tpu.matmul %73, %74, %cst_49 {dimension_numbers = #tpu.dot_dimension_numbers<[1], [0], [0], [1], [0, 0, 1, 1], [], []>} : vector<4x4xf32>, vector<4x1086xf32>, vector<4x1086xf32> -> vector<4x1086xf32>
    %76 = arith.addf %71, %75 : vector<4x1086xf32>
    %c1_50 = arith.constant 1 : index
    %c0_51 = arith.constant 0 : index
    %c0_52 = arith.constant 0 : index
    %77 = vector.load %arg6[%c1_50, %c0_51, %c0_52] : memref<9x4x4xf32, #tpu.memory_space<vmem>>, vector<1x4x4xf32>
    %78 = vector.shape_cast %77 : vector<1x4x4xf32> to vector<4x4xf32>
    %79 = vector.extract_strided_slice %24 {offsets = [0, 1], sizes = [4, 1086], strides = [1, 1]} : vector<4x1156xf32> to vector<4x1086xf32>
    %cst_53 = arith.constant dense<0.000000e+00> : vector<4x1086xf32>
    %80 = tpu.matmul %78, %79, %cst_53 {dimension_numbers = #tpu.dot_dimension_numbers<[1], [0], [0], [1], [0, 0, 1, 1], [], []>} : vector<4x4xf32>, vector<4x1086xf32>, vector<4x1086xf32> -> vector<4x1086xf32>
    %81 = arith.addf %76, %80 : vector<4x1086xf32>
    %c2_54 = arith.constant 2 : index
    %c0_55 = arith.constant 0 : index
    %c0_56 = arith.constant 0 : index
    %82 = vector.load %arg6[%c2_54, %c0_55, %c0_56] : memref<9x4x4xf32, #tpu.memory_space<vmem>>, vector<1x4x4xf32>
    %83 = vector.shape_cast %82 : vector<1x4x4xf32> to vector<4x4xf32>
    %84 = vector.extract_strided_slice %24 {offsets = [0, 2], sizes = [4, 1086], strides = [1, 1]} : vector<4x1156xf32> to vector<4x1086xf32>
    %cst_57 = arith.constant dense<0.000000e+00> : vector<4x1086xf32>
    %85 = tpu.matmul %83, %84, %cst_57 {dimension_numbers = #tpu.dot_dimension_numbers<[1], [0], [0], [1], [0, 0, 1, 1], [], []>} : vector<4x4xf32>, vector<4x1086xf32>, vector<4x1086xf32> -> vector<4x1086xf32>
    %86 = arith.addf %81, %85 : vector<4x1086xf32>
    %c3_58 = arith.constant 3 : index
    %c0_59 = arith.constant 0 : index
    %c0_60 = arith.constant 0 : index
    %87 = vector.load %arg6[%c3_58, %c0_59, %c0_60] : memref<9x4x4xf32, #tpu.memory_space<vmem>>, vector<1x4x4xf32>
    %88 = vector.shape_cast %87 : vector<1x4x4xf32> to vector<4x4xf32>
    %89 = vector.extract_strided_slice %24 {offsets = [0, 34], sizes = [4, 1086], strides = [1, 1]} : vector<4x1156xf32> to vector<4x1086xf32>
    %cst_61 = arith.constant dense<0.000000e+00> : vector<4x1086xf32>
    %90 = tpu.matmul %88, %89, %cst_61 {dimension_numbers = #tpu.dot_dimension_numbers<[1], [0], [0], [1], [0, 0, 1, 1], [], []>} : vector<4x4xf32>, vector<4x1086xf32>, vector<4x1086xf32> -> vector<4x1086xf32>
    %91 = arith.addf %86, %90 : vector<4x1086xf32>
    %c4_62 = arith.constant 4 : index
    %c0_63 = arith.constant 0 : index
    %c0_64 = arith.constant 0 : index
    %92 = vector.load %arg6[%c4_62, %c0_63, %c0_64] : memref<9x4x4xf32, #tpu.memory_space<vmem>>, vector<1x4x4xf32>
    %93 = vector.shape_cast %92 : vector<1x4x4xf32> to vector<4x4xf32>
    %94 = vector.extract_strided_slice %24 {offsets = [0, 35], sizes = [4, 1086], strides = [1, 1]} : vector<4x1156xf32> to vector<4x1086xf32>
    %cst_65 = arith.constant dense<0.000000e+00> : vector<4x1086xf32>
    %95 = tpu.matmul %93, %94, %cst_65 {dimension_numbers = #tpu.dot_dimension_numbers<[1], [0], [0], [1], [0, 0, 1, 1], [], []>} : vector<4x4xf32>, vector<4x1086xf32>, vector<4x1086xf32> -> vector<4x1086xf32>
    %96 = arith.addf %91, %95 : vector<4x1086xf32>
    %c5_66 = arith.constant 5 : index
    %c0_67 = arith.constant 0 : index
    %c0_68 = arith.constant 0 : index
    %97 = vector.load %arg6[%c5_66, %c0_67, %c0_68] : memref<9x4x4xf32, #tpu.memory_space<vmem>>, vector<1x4x4xf32>
    %98 = vector.shape_cast %97 : vector<1x4x4xf32> to vector<4x4xf32>
    %99 = vector.extract_strided_slice %24 {offsets = [0, 36], sizes = [4, 1086], strides = [1, 1]} : vector<4x1156xf32> to vector<4x1086xf32>
    %cst_69 = arith.constant dense<0.000000e+00> : vector<4x1086xf32>
    %100 = tpu.matmul %98, %99, %cst_69 {dimension_numbers = #tpu.dot_dimension_numbers<[1], [0], [0], [1], [0, 0, 1, 1], [], []>} : vector<4x4xf32>, vector<4x1086xf32>, vector<4x1086xf32> -> vector<4x1086xf32>
    %101 = arith.addf %96, %100 : vector<4x1086xf32>
    %c6_70 = arith.constant 6 : index
    %c0_71 = arith.constant 0 : index
    %c0_72 = arith.constant 0 : index
    %102 = vector.load %arg6[%c6_70, %c0_71, %c0_72] : memref<9x4x4xf32, #tpu.memory_space<vmem>>, vector<1x4x4xf32>
    %103 = vector.shape_cast %102 : vector<1x4x4xf32> to vector<4x4xf32>
    %104 = vector.extract_strided_slice %24 {offsets = [0, 68], sizes = [4, 1086], strides = [1, 1]} : vector<4x1156xf32> to vector<4x1086xf32>
    %cst_73 = arith.constant dense<0.000000e+00> : vector<4x1086xf32>
    %105 = tpu.matmul %103, %104, %cst_73 {dimension_numbers = #tpu.dot_dimension_numbers<[1], [0], [0], [1], [0, 0, 1, 1], [], []>} : vector<4x4xf32>, vector<4x1086xf32>, vector<4x1086xf32> -> vector<4x1086xf32>
    %106 = arith.addf %101, %105 : vector<4x1086xf32>
    %c7_74 = arith.constant 7 : index
    %c0_75 = arith.constant 0 : index
    %c0_76 = arith.constant 0 : index
    %107 = vector.load %arg6[%c7_74, %c0_75, %c0_76] : memref<9x4x4xf32, #tpu.memory_space<vmem>>, vector<1x4x4xf32>
    %108 = vector.shape_cast %107 : vector<1x4x4xf32> to vector<4x4xf32>
    %109 = vector.extract_strided_slice %24 {offsets = [0, 69], sizes = [4, 1086], strides = [1, 1]} : vector<4x1156xf32> to vector<4x1086xf32>
    %cst_77 = arith.constant dense<0.000000e+00> : vector<4x1086xf32>
    %110 = tpu.matmul %108, %109, %cst_77 {dimension_numbers = #tpu.dot_dimension_numbers<[1], [0], [0], [1], [0, 0, 1, 1], [], []>} : vector<4x4xf32>, vector<4x1086xf32>, vector<4x1086xf32> -> vector<4x1086xf32>
    %111 = arith.addf %106, %110 : vector<4x1086xf32>
    %c8_78 = arith.constant 8 : index
    %c0_79 = arith.constant 0 : index
    %c0_80 = arith.constant 0 : index
    %112 = vector.load %arg6[%c8_78, %c0_79, %c0_80] : memref<9x4x4xf32, #tpu.memory_space<vmem>>, vector<1x4x4xf32>
    %113 = vector.shape_cast %112 : vector<1x4x4xf32> to vector<4x4xf32>
    %114 = vector.extract_strided_slice %24 {offsets = [0, 70], sizes = [4, 1086], strides = [1, 1]} : vector<4x1156xf32> to vector<4x1086xf32>
    %cst_81 = arith.constant dense<0.000000e+00> : vector<4x1086xf32>
    %115 = tpu.matmul %113, %114, %cst_81 {dimension_numbers = #tpu.dot_dimension_numbers<[1], [0], [0], [1], [0, 0, 1, 1], [], []>} : vector<4x4xf32>, vector<4x1086xf32>, vector<4x1086xf32> -> vector<4x1086xf32>
    %116 = arith.addf %111, %115 : vector<4x1086xf32>
    %117 = arith.addf %70, %116 : vector<4x1086xf32>
    %c0_82 = arith.constant 0 : index
    %c0_83 = arith.constant 0 : index
    %118 = vector.load %arg7[%c0_82, %c0_83] : memref<4x1xf32, #tpu.memory_space<vmem>>, vector<4x1xf32>
    %119 = vector.broadcast %118 : vector<4x1xf32> to vector<4x1086xf32>
    %120 = arith.addf %117, %119 : vector<4x1086xf32>
    %cst_84 = arith.constant 0.000000e+00 : f32
    %121 = vector.broadcast %cst_84 : f32 to vector<1x4x1156xf32>
    %c0_85 = arith.constant 0 : index
    %c0_86 = arith.constant 0 : index
    %c0_87 = arith.constant 0 : index
    %122 = vector.load %arg9[%c0_85, %c0_86, %c0_87] : memref<1x4x1156xf32, #tpu.memory_space<vmem>>, vector<1x4x1156xf32>
    tpu.vector_store %arg9[%c0_85, %c0_86, %c0_87], %121 {strides = array<i32>} : memref<1x4x1156xf32, #tpu.memory_space<vmem>>, vector<1x4x1156xf32>,
    %c0_88 = arith.constant 0 : index
    %c0_89 = arith.constant 0 : index
    %c35 = arith.constant 35 : index
    %123 = vector.load %arg9[%c0_88, %c0_89, %c35] : memref<1x4x1156xf32, #tpu.memory_space<vmem>>, vector<1x4x1086xf32>
    %124 = vector.shape_cast %123 : vector<1x4x1086xf32> to vector<4x1086xf32>
    %125 = vector.shape_cast %120 : vector<4x1086xf32> to vector<1x4x1086xf32>
    tpu.vector_store %arg9[%c0_88, %c0_89, %c35], %125 {strides = array<i32>} : memref<1x4x1156xf32, #tpu.memory_space<vmem>>, vector<1x4x1086xf32>,
    %126 = vector.extract_strided_slice %0 {offsets = [0, 35], sizes = [1, 1086], strides = [1, 1]} : vector<1x1156xf32> to vector<1x1086xf32>
    %127 = vector.broadcast %126 : vector<1x1086xf32> to vector<4x1086xf32>
    %128 = arith.mulf %120, %127 : vector<4x1086xf32>
    %cst_90 = arith.constant dense<0.000000e+00> : vector<4xf32>
    %129 = vector.multi_reduction <add>, %128, %cst_90 [1] : vector<4x1086xf32> to vector<4xf32>
    %130 = vector.shape_cast %129 : vector<4xf32> to vector<4x1xf32>
    %c0_91 = arith.constant 0 : index
    %c0_92 = arith.constant 0 : index
    %c0_93 = arith.constant 0 : index
    %131 = vector.load %arg10[%c0_91, %c0_92, %c0_93] : memref<1x4x2xf32, #tpu.memory_space<vmem>>, vector<1x4x1xf32>
    %132 = vector.shape_cast %131 : vector<1x4x1xf32> to vector<4x1xf32>
    %133 = vector.shape_cast %130 : vector<4x1xf32> to vector<1x4x1xf32>
    tpu.vector_store %arg10[%c0_91, %c0_92, %c0_93], %133 {strides = array<i32>} : memref<1x4x2xf32, #tpu.memory_space<vmem>>, vector<1x4x1xf32>,
    %134 = arith.mulf %128, %128 : vector<4x1086xf32>
    %cst_94 = arith.constant dense<0.000000e+00> : vector<4xf32>
    %135 = vector.multi_reduction <add>, %134, %cst_94 [1] : vector<4x1086xf32> to vector<4xf32>
    %136 = vector.shape_cast %135 : vector<4xf32> to vector<4x1xf32>
    %c0_95 = arith.constant 0 : index
    %c0_96 = arith.constant 0 : index
    %c1_97 = arith.constant 1 : index
    %137 = vector.load %arg10[%c0_95, %c0_96, %c1_97] : memref<1x4x2xf32, #tpu.memory_space<vmem>>, vector<1x4x1xf32>
    %138 = vector.shape_cast %137 : vector<1x4x1xf32> to vector<4x1xf32>
    %139 = vector.shape_cast %136 : vector<4x1xf32> to vector<1x4x1xf32>
    tpu.vector_store %arg10[%c0_95, %c0_96, %c1_97], %139 {strides = array<i32>} : memref<1x4x2xf32, #tpu.memory_space<vmem>>, vector<1x4x1xf32>,
    return
  }
  func.func @transform_0(%arg0: i32) -> (i32, i32, i32) {
    %c0_i32 = arith.constant 0 : i32
    %c0_i32_0 = arith.constant 0 : i32
    %c0_i32_1 = arith.constant 0 : i32
    return %arg0, %c0_i32, %c0_i32_0 : i32, i32, i32
  }
  func.func @transform_1(%arg0: i32) -> (i32, i32, i32) {
    %c0_i32 = arith.constant 0 : i32
    %c0_i32_0 = arith.constant 0 : i32
    %c0_i32_1 = arith.constant 0 : i32
    return %arg0, %c0_i32, %c0_i32_0 : i32, i32, i32
  }
  func.func @transform_2(%arg0: i32) -> (i32, i32) {
    %c0_i32 = arith.constant 0 : i32
    %c0_i32_0 = arith.constant 0 : i32
    %c0_i32_1 = arith.constant 0 : i32
    return %c0_i32, %c0_i32_0 : i32, i32
  }
  func.func @transform_3(%arg0: i32) -> (i32, i32) {
    %c0_i32 = arith.constant 0 : i32
    %c0_i32_0 = arith.constant 0 : i32
    %c0_i32_1 = arith.constant 0 : i32
    return %c0_i32, %c0_i32_0 : i32, i32
  }
  func.func @transform_4(%arg0: i32) -> (i32, i32, i32) {
    %c0_i32 = arith.constant 0 : i32
    %c0_i32_0 = arith.constant 0 : i32
    %c0_i32_1 = arith.constant 0 : i32
    %c0_i32_2 = arith.constant 0 : i32
    return %c0_i32, %c0_i32_0, %c0_i32_1 : i32, i32, i32
  }
  func.func @transform_5(%arg0: i32) -> (i32, i32, i32) {
    %c0_i32 = arith.constant 0 : i32
    %c0_i32_0 = arith.constant 0 : i32
    %c0_i32_1 = arith.constant 0 : i32
    %c0_i32_2 = arith.constant 0 : i32
    return %c0_i32, %c0_i32_0, %c0_i32_1 : i32, i32, i32
  }
  func.func @transform_6(%arg0: i32) -> (i32, i32) {
    %c0_i32 = arith.constant 0 : i32
    %c0_i32_0 = arith.constant 0 : i32
    %c0_i32_1 = arith.constant 0 : i32
    return %c0_i32, %c0_i32_0 : i32, i32
  }
  func.func @transform_7(%arg0: i32) -> (i32, i32) {
    %c0_i32 = arith.constant 0 : i32
    %c0_i32_0 = arith.constant 0 : i32
    %c0_i32_1 = arith.constant 0 : i32
    return %c0_i32, %c0_i32_0 : i32, i32
  }
  func.func @transform_8(%arg0: i32) -> (i32, i32, i32) {
    %c0_i32 = arith.constant 0 : i32
    %c0_i32_0 = arith.constant 0 : i32
    %c0_i32_1 = arith.constant 0 : i32
    return %arg0, %c0_i32, %c0_i32_0 : i32, i32, i32
  }
  func.func @transform_9(%arg0: i32) -> (i32, i32, i32) {
    %c0_i32 = arith.constant 0 : i32
    %c0_i32_0 = arith.constant 0 : i32
    %c0_i32_1 = arith.constant 0 : i32
    return %arg0, %c0_i32, %c0_i32_0 : i32, i32, i32
  }
}

module attributes {stable_mosaic.version = 11 : i64} {
  func.func @_shortcut_stats_kernel(%arg0: i32, %arg1: memref<1x4x1156xf32, #tpu.memory_space<vmem>>, %arg2: memref<1x4x1156xf32, #tpu.memory_space<vmem>>, %arg3: memref<4x4xf32, #tpu.memory_space<vmem>>, %arg4: memref<4x4xf32, #tpu.memory_space<vmem>>, %arg5: memref<4x1xf32, #tpu.memory_space<vmem>>, %arg6: memref<1x4x1156xf32, #tpu.memory_space<vmem>>, %arg7: memref<1x4x2xf32, #tpu.memory_space<vmem>>, %arg8: memref<1x4x2xf32, #tpu.memory_space<vmem>>) attributes {dimension_semantics = [#tpu.dimension_semantics<parallel>], iteration_bounds = array<i64: 2>, scalar_prefetch = 0 : i64, scratch_operands = 0 : i64, tpu.core_type = #tpu.core_type<tc>, window_params = [{transform_indices = @transform_0, window_bounds = array<i64: 1, 4, 1156>}, {transform_indices = @transform_1, window_bounds = array<i64: 1, 4, 1156>}, {pipeline_mode = #tpu.pipeline_mode<synchronous>, transform_indices = @transform_2, window_bounds = array<i64: 4, 4>}, {pipeline_mode = #tpu.pipeline_mode<synchronous>, transform_indices = @transform_3, window_bounds = array<i64: 4, 4>}, {pipeline_mode = #tpu.pipeline_mode<synchronous>, transform_indices = @transform_4, window_bounds = array<i64: 4, 1>}, {transform_indices = @transform_5, window_bounds = array<i64: 1, 4, 1156>}, {transform_indices = @transform_6, window_bounds = array<i64: 1, 4, 2>}, {transform_indices = @transform_7, window_bounds = array<i64: 1, 4, 2>}]} {
    %c0 = arith.constant 0 : index
    %c0_0 = arith.constant 0 : index
    %c0_1 = arith.constant 0 : index
    %0 = vector.load %arg1[%c0, %c0_0, %c0_1] : memref<1x4x1156xf32, #tpu.memory_space<vmem>>, vector<1x4x1156xf32>
    %1 = vector.shape_cast %0 : vector<1x4x1156xf32> to vector<4x1156xf32>
    %c0_2 = arith.constant 0 : index
    %c0_3 = arith.constant 0 : index
    %c0_4 = arith.constant 0 : index
    %2 = vector.load %arg2[%c0_2, %c0_3, %c0_4] : memref<1x4x1156xf32, #tpu.memory_space<vmem>>, vector<1x4x1156xf32>
    %3 = vector.shape_cast %2 : vector<1x4x1156xf32> to vector<4x1156xf32>
    %c0_5 = arith.constant 0 : index
    %c0_6 = arith.constant 0 : index
    %4 = vector.load %arg3[%c0_5, %c0_6] : memref<4x4xf32, #tpu.memory_space<vmem>>, vector<4x4xf32>
    %cst = arith.constant dense<0.000000e+00> : vector<4x1156xf32>
    %5 = tpu.matmul %4, %1, %cst {dimension_numbers = #tpu.dot_dimension_numbers<[1], [0], [0], [1], [0, 0, 1, 1], [], []>} : vector<4x4xf32>, vector<4x1156xf32>, vector<4x1156xf32> -> vector<4x1156xf32>
    %c0_7 = arith.constant 0 : index
    %c0_8 = arith.constant 0 : index
    %6 = vector.load %arg4[%c0_7, %c0_8] : memref<4x4xf32, #tpu.memory_space<vmem>>, vector<4x4xf32>
    %cst_9 = arith.constant dense<0.000000e+00> : vector<4x1156xf32>
    %7 = tpu.matmul %6, %3, %cst_9 {dimension_numbers = #tpu.dot_dimension_numbers<[1], [0], [0], [1], [0, 0, 1, 1], [], []>} : vector<4x4xf32>, vector<4x1156xf32>, vector<4x1156xf32> -> vector<4x1156xf32>
    %8 = arith.addf %5, %7 : vector<4x1156xf32>
    %c0_10 = arith.constant 0 : index
    %c0_11 = arith.constant 0 : index
    %9 = vector.load %arg5[%c0_10, %c0_11] : memref<4x1xf32, #tpu.memory_space<vmem>>, vector<4x1xf32>
    %10 = vector.broadcast %9 : vector<4x1xf32> to vector<4x1156xf32>
    %11 = arith.addf %8, %10 : vector<4x1156xf32>
    %c0_12 = arith.constant 0 : index
    %c0_13 = arith.constant 0 : index
    %c0_14 = arith.constant 0 : index
    %12 = vector.load %arg6[%c0_12, %c0_13, %c0_14] : memref<1x4x1156xf32, #tpu.memory_space<vmem>>, vector<1x4x1156xf32>
    %13 = vector.shape_cast %12 : vector<1x4x1156xf32> to vector<4x1156xf32>
    %14 = vector.shape_cast %11 : vector<4x1156xf32> to vector<1x4x1156xf32>
    tpu.vector_store %arg6[%c0_12, %c0_13, %c0_14], %14 {strides = array<i32>} : memref<1x4x1156xf32, #tpu.memory_space<vmem>>, vector<1x4x1156xf32>,
    %cst_15 = arith.constant dense<0.000000e+00> : vector<4xf32>
    %15 = vector.multi_reduction <add>, %1, %cst_15 [1] : vector<4x1156xf32> to vector<4xf32>
    %16 = vector.shape_cast %15 : vector<4xf32> to vector<4x1xf32>
    %c0_16 = arith.constant 0 : index
    %c0_17 = arith.constant 0 : index
    %c0_18 = arith.constant 0 : index
    %17 = vector.load %arg7[%c0_16, %c0_17, %c0_18] : memref<1x4x2xf32, #tpu.memory_space<vmem>>, vector<1x4x1xf32>
    %18 = vector.shape_cast %17 : vector<1x4x1xf32> to vector<4x1xf32>
    %19 = vector.shape_cast %16 : vector<4x1xf32> to vector<1x4x1xf32>
    tpu.vector_store %arg7[%c0_16, %c0_17, %c0_18], %19 {strides = array<i32>} : memref<1x4x2xf32, #tpu.memory_space<vmem>>, vector<1x4x1xf32>,
    %20 = arith.mulf %1, %1 : vector<4x1156xf32>
    %cst_19 = arith.constant dense<0.000000e+00> : vector<4xf32>
    %21 = vector.multi_reduction <add>, %20, %cst_19 [1] : vector<4x1156xf32> to vector<4xf32>
    %22 = vector.shape_cast %21 : vector<4xf32> to vector<4x1xf32>
    %c0_20 = arith.constant 0 : index
    %c0_21 = arith.constant 0 : index
    %c1 = arith.constant 1 : index
    %23 = vector.load %arg7[%c0_20, %c0_21, %c1] : memref<1x4x2xf32, #tpu.memory_space<vmem>>, vector<1x4x1xf32>
    %24 = vector.shape_cast %23 : vector<1x4x1xf32> to vector<4x1xf32>
    %25 = vector.shape_cast %22 : vector<4x1xf32> to vector<1x4x1xf32>
    tpu.vector_store %arg7[%c0_20, %c0_21, %c1], %25 {strides = array<i32>} : memref<1x4x2xf32, #tpu.memory_space<vmem>>, vector<1x4x1xf32>,
    %cst_22 = arith.constant dense<0.000000e+00> : vector<4xf32>
    %26 = vector.multi_reduction <add>, %3, %cst_22 [1] : vector<4x1156xf32> to vector<4xf32>
    %27 = vector.shape_cast %26 : vector<4xf32> to vector<4x1xf32>
    %c0_23 = arith.constant 0 : index
    %c0_24 = arith.constant 0 : index
    %c0_25 = arith.constant 0 : index
    %28 = vector.load %arg8[%c0_23, %c0_24, %c0_25] : memref<1x4x2xf32, #tpu.memory_space<vmem>>, vector<1x4x1xf32>
    %29 = vector.shape_cast %28 : vector<1x4x1xf32> to vector<4x1xf32>
    %30 = vector.shape_cast %27 : vector<4x1xf32> to vector<1x4x1xf32>
    tpu.vector_store %arg8[%c0_23, %c0_24, %c0_25], %30 {strides = array<i32>} : memref<1x4x2xf32, #tpu.memory_space<vmem>>, vector<1x4x1xf32>,
    %31 = arith.mulf %3, %3 : vector<4x1156xf32>
    %cst_26 = arith.constant dense<0.000000e+00> : vector<4xf32>
    %32 = vector.multi_reduction <add>, %31, %cst_26 [1] : vector<4x1156xf32> to vector<4xf32>
    %33 = vector.shape_cast %32 : vector<4xf32> to vector<4x1xf32>
    %c0_27 = arith.constant 0 : index
    %c0_28 = arith.constant 0 : index
    %c1_29 = arith.constant 1 : index
    %34 = vector.load %arg8[%c0_27, %c0_28, %c1_29] : memref<1x4x2xf32, #tpu.memory_space<vmem>>, vector<1x4x1xf32>
    %35 = vector.shape_cast %34 : vector<1x4x1xf32> to vector<4x1xf32>
    %36 = vector.shape_cast %33 : vector<4x1xf32> to vector<1x4x1xf32>
    tpu.vector_store %arg8[%c0_27, %c0_28, %c1_29], %36 {strides = array<i32>} : memref<1x4x2xf32, #tpu.memory_space<vmem>>, vector<1x4x1xf32>,
    return
  }
  func.func @transform_0(%arg0: i32) -> (i32, i32, i32) {
    %c0_i32 = arith.constant 0 : i32
    %c0_i32_0 = arith.constant 0 : i32
    %c0_i32_1 = arith.constant 0 : i32
    return %arg0, %c0_i32, %c0_i32_0 : i32, i32, i32
  }
  func.func @transform_1(%arg0: i32) -> (i32, i32, i32) {
    %c0_i32 = arith.constant 0 : i32
    %c0_i32_0 = arith.constant 0 : i32
    %c0_i32_1 = arith.constant 0 : i32
    return %arg0, %c0_i32, %c0_i32_0 : i32, i32, i32
  }
  func.func @transform_2(%arg0: i32) -> (i32, i32) {
    %c0_i32 = arith.constant 0 : i32
    %c0_i32_0 = arith.constant 0 : i32
    %c0_i32_1 = arith.constant 0 : i32
    return %c0_i32, %c0_i32_0 : i32, i32
  }
  func.func @transform_3(%arg0: i32) -> (i32, i32) {
    %c0_i32 = arith.constant 0 : i32
    %c0_i32_0 = arith.constant 0 : i32
    %c0_i32_1 = arith.constant 0 : i32
    return %c0_i32, %c0_i32_0 : i32, i32
  }
  func.func @transform_4(%arg0: i32) -> (i32, i32) {
    %c0_i32 = arith.constant 0 : i32
    %c0_i32_0 = arith.constant 0 : i32
    %c0_i32_1 = arith.constant 0 : i32
    return %c0_i32, %c0_i32_0 : i32, i32
  }
  func.func @transform_5(%arg0: i32) -> (i32, i32, i32) {
    %c0_i32 = arith.constant 0 : i32
    %c0_i32_0 = arith.constant 0 : i32
    %c0_i32_1 = arith.constant 0 : i32
    return %arg0, %c0_i32, %c0_i32_0 : i32, i32, i32
  }
  func.func @transform_6(%arg0: i32) -> (i32, i32, i32) {
    %c0_i32 = arith.constant 0 : i32
    %c0_i32_0 = arith.constant 0 : i32
    %c0_i32_1 = arith.constant 0 : i32
    return %arg0, %c0_i32, %c0_i32_0 : i32, i32, i32
  }
  func.func @transform_7(%arg0: i32) -> (i32, i32, i32) {
    %c0_i32 = arith.constant 0 : i32
    %c0_i32_0 = arith.constant 0 : i32
    %c0_i32_1 = arith.constant 0 : i32
    return %arg0, %c0_i32, %c0_i32_0 : i32, i32, i32
  }
}

module attributes {stable_mosaic.version = 11 : i64} {
  func.func @_conv2_bn_add_kernel(%arg0: i32, %arg1: memref<1x4x1156xf32, #tpu.memory_space<vmem>>, %arg2: memref<1x4x1156xf32, #tpu.memory_space<vmem>>, %arg3: memref<4x2xf32, #tpu.memory_space<vmem>>, %arg4: memref<9x4x4xf32, #tpu.memory_space<vmem>>, %arg5: memref<4x1xf32, #tpu.memory_space<vmem>>, %arg6: memref<1x1156xf32, #tpu.memory_space<vmem>>, %arg7: memref<1x4x1156xf32, #tpu.memory_space<vmem>>) attributes {dimension_semantics = [#tpu.dimension_semantics<parallel>], iteration_bounds = array<i64: 2>, scalar_prefetch = 0 : i64, scratch_operands = 0 : i64, tpu.core_type = #tpu.core_type<tc>, window_params = [{transform_indices = @transform_0, window_bounds = array<i64: 1, 4, 1156>}, {transform_indices = @transform_1, window_bounds = array<i64: 1, 4, 1156>}, {pipeline_mode = #tpu.pipeline_mode<synchronous>, transform_indices = @transform_2, window_bounds = array<i64: 4, 2>}, {pipeline_mode = #tpu.pipeline_mode<synchronous>, transform_indices = @transform_3, window_bounds = array<i64: 9, 4, 4>}, {pipeline_mode = #tpu.pipeline_mode<synchronous>, transform_indices = @transform_4, window_bounds = array<i64: 4, 1>}, {pipeline_mode = #tpu.pipeline_mode<synchronous>, transform_indices = @transform_5, window_bounds = array<i64: 1, 1156>}, {transform_indices = @transform_6, window_bounds = array<i64: 1, 4, 1156>}]} {
    %c0 = arith.constant 0 : index
    %c0_0 = arith.constant 0 : index
    %0 = vector.load %arg6[%c0, %c0_0] : memref<1x1156xf32, #tpu.memory_space<vmem>>, vector<1x1156xf32>
    %c0_1 = arith.constant 0 : index
    %c0_2 = arith.constant 0 : index
    %c0_3 = arith.constant 0 : index
    %1 = vector.load %arg1[%c0_1, %c0_2, %c0_3] : memref<1x4x1156xf32, #tpu.memory_space<vmem>>, vector<1x4x1156xf32>
    %2 = vector.shape_cast %1 : vector<1x4x1156xf32> to vector<4x1156xf32>
    %c0_4 = arith.constant 0 : index
    %c0_5 = arith.constant 0 : index
    %3 = vector.load %arg3[%c0_4, %c0_5] : memref<4x2xf32, #tpu.memory_space<vmem>>, vector<4x1xf32>
    %4 = vector.broadcast %3 : vector<4x1xf32> to vector<4x1156xf32>
    %5 = arith.mulf %2, %4 : vector<4x1156xf32>
    %c0_6 = arith.constant 0 : index
    %c1 = arith.constant 1 : index
    %6 = vector.load %arg3[%c0_6, %c1] : memref<4x2xf32, #tpu.memory_space<vmem>>, vector<4x1xf32>
    %7 = vector.broadcast %6 : vector<4x1xf32> to vector<4x1156xf32>
    %8 = arith.addf %5, %7 : vector<4x1156xf32>
    %cst = arith.constant 0.000000e+00 : f32
    %9 = vector.broadcast %cst : f32 to vector<4x1156xf32>
    %10 = arith.maximumf %8, %9 : vector<4x1156xf32>
    %11 = vector.broadcast %0 : vector<1x1156xf32> to vector<4x1156xf32>
    %12 = arith.mulf %10, %11 : vector<4x1156xf32>
    %cst_7 = arith.constant 0.000000e+00 : f32
    %13 = vector.broadcast %cst_7 : f32 to vector<4x1086xf32>
    %c0_8 = arith.constant 0 : index
    %c0_9 = arith.constant 0 : index
    %c0_10 = arith.constant 0 : index
    %14 = vector.load %arg4[%c0_8, %c0_9, %c0_10] : memref<9x4x4xf32, #tpu.memory_space<vmem>>, vector<1x4x4xf32>
    %15 = vector.shape_cast %14 : vector<1x4x4xf32> to vector<4x4xf32>
    %16 = vector.extract_strided_slice %12 {offsets = [0, 0], sizes = [4, 1086], strides = [1, 1]} : vector<4x1156xf32> to vector<4x1086xf32>
    %cst_11 = arith.constant dense<0.000000e+00> : vector<4x1086xf32>
    %17 = tpu.matmul %15, %16, %cst_11 {dimension_numbers = #tpu.dot_dimension_numbers<[1], [0], [0], [1], [0, 0, 1, 1], [], []>} : vector<4x4xf32>, vector<4x1086xf32>, vector<4x1086xf32> -> vector<4x1086xf32>
    %18 = arith.addf %13, %17 : vector<4x1086xf32>
    %c1_12 = arith.constant 1 : index
    %c0_13 = arith.constant 0 : index
    %c0_14 = arith.constant 0 : index
    %19 = vector.load %arg4[%c1_12, %c0_13, %c0_14] : memref<9x4x4xf32, #tpu.memory_space<vmem>>, vector<1x4x4xf32>
    %20 = vector.shape_cast %19 : vector<1x4x4xf32> to vector<4x4xf32>
    %21 = vector.extract_strided_slice %12 {offsets = [0, 1], sizes = [4, 1086], strides = [1, 1]} : vector<4x1156xf32> to vector<4x1086xf32>
    %cst_15 = arith.constant dense<0.000000e+00> : vector<4x1086xf32>
    %22 = tpu.matmul %20, %21, %cst_15 {dimension_numbers = #tpu.dot_dimension_numbers<[1], [0], [0], [1], [0, 0, 1, 1], [], []>} : vector<4x4xf32>, vector<4x1086xf32>, vector<4x1086xf32> -> vector<4x1086xf32>
    %23 = arith.addf %18, %22 : vector<4x1086xf32>
    %c2 = arith.constant 2 : index
    %c0_16 = arith.constant 0 : index
    %c0_17 = arith.constant 0 : index
    %24 = vector.load %arg4[%c2, %c0_16, %c0_17] : memref<9x4x4xf32, #tpu.memory_space<vmem>>, vector<1x4x4xf32>
    %25 = vector.shape_cast %24 : vector<1x4x4xf32> to vector<4x4xf32>
    %26 = vector.extract_strided_slice %12 {offsets = [0, 2], sizes = [4, 1086], strides = [1, 1]} : vector<4x1156xf32> to vector<4x1086xf32>
    %cst_18 = arith.constant dense<0.000000e+00> : vector<4x1086xf32>
    %27 = tpu.matmul %25, %26, %cst_18 {dimension_numbers = #tpu.dot_dimension_numbers<[1], [0], [0], [1], [0, 0, 1, 1], [], []>} : vector<4x4xf32>, vector<4x1086xf32>, vector<4x1086xf32> -> vector<4x1086xf32>
    %28 = arith.addf %23, %27 : vector<4x1086xf32>
    %c3 = arith.constant 3 : index
    %c0_19 = arith.constant 0 : index
    %c0_20 = arith.constant 0 : index
    %29 = vector.load %arg4[%c3, %c0_19, %c0_20] : memref<9x4x4xf32, #tpu.memory_space<vmem>>, vector<1x4x4xf32>
    %30 = vector.shape_cast %29 : vector<1x4x4xf32> to vector<4x4xf32>
    %31 = vector.extract_strided_slice %12 {offsets = [0, 34], sizes = [4, 1086], strides = [1, 1]} : vector<4x1156xf32> to vector<4x1086xf32>
    %cst_21 = arith.constant dense<0.000000e+00> : vector<4x1086xf32>
    %32 = tpu.matmul %30, %31, %cst_21 {dimension_numbers = #tpu.dot_dimension_numbers<[1], [0], [0], [1], [0, 0, 1, 1], [], []>} : vector<4x4xf32>, vector<4x1086xf32>, vector<4x1086xf32> -> vector<4x1086xf32>
    %33 = arith.addf %28, %32 : vector<4x1086xf32>
    %c4 = arith.constant 4 : index
    %c0_22 = arith.constant 0 : index
    %c0_23 = arith.constant 0 : index
    %34 = vector.load %arg4[%c4, %c0_22, %c0_23] : memref<9x4x4xf32, #tpu.memory_space<vmem>>, vector<1x4x4xf32>
    %35 = vector.shape_cast %34 : vector<1x4x4xf32> to vector<4x4xf32>
    %36 = vector.extract_strided_slice %12 {offsets = [0, 35], sizes = [4, 1086], strides = [1, 1]} : vector<4x1156xf32> to vector<4x1086xf32>
    %cst_24 = arith.constant dense<0.000000e+00> : vector<4x1086xf32>
    %37 = tpu.matmul %35, %36, %cst_24 {dimension_numbers = #tpu.dot_dimension_numbers<[1], [0], [0], [1], [0, 0, 1, 1], [], []>} : vector<4x4xf32>, vector<4x1086xf32>, vector<4x1086xf32> -> vector<4x1086xf32>
    %38 = arith.addf %33, %37 : vector<4x1086xf32>
    %c5 = arith.constant 5 : index
    %c0_25 = arith.constant 0 : index
    %c0_26 = arith.constant 0 : index
    %39 = vector.load %arg4[%c5, %c0_25, %c0_26] : memref<9x4x4xf32, #tpu.memory_space<vmem>>, vector<1x4x4xf32>
    %40 = vector.shape_cast %39 : vector<1x4x4xf32> to vector<4x4xf32>
    %41 = vector.extract_strided_slice %12 {offsets = [0, 36], sizes = [4, 1086], strides = [1, 1]} : vector<4x1156xf32> to vector<4x1086xf32>
    %cst_27 = arith.constant dense<0.000000e+00> : vector<4x1086xf32>
    %42 = tpu.matmul %40, %41, %cst_27 {dimension_numbers = #tpu.dot_dimension_numbers<[1], [0], [0], [1], [0, 0, 1, 1], [], []>} : vector<4x4xf32>, vector<4x1086xf32>, vector<4x1086xf32> -> vector<4x1086xf32>
    %43 = arith.addf %38, %42 : vector<4x1086xf32>
    %c6 = arith.constant 6 : index
    %c0_28 = arith.constant 0 : index
    %c0_29 = arith.constant 0 : index
    %44 = vector.load %arg4[%c6, %c0_28, %c0_29] : memref<9x4x4xf32, #tpu.memory_space<vmem>>, vector<1x4x4xf32>
    %45 = vector.shape_cast %44 : vector<1x4x4xf32> to vector<4x4xf32>
    %46 = vector.extract_strided_slice %12 {offsets = [0, 68], sizes = [4, 1086], strides = [1, 1]} : vector<4x1156xf32> to vector<4x1086xf32>
    %cst_30 = arith.constant dense<0.000000e+00> : vector<4x1086xf32>
    %47 = tpu.matmul %45, %46, %cst_30 {dimension_numbers = #tpu.dot_dimension_numbers<[1], [0], [0], [1], [0, 0, 1, 1], [], []>} : vector<4x4xf32>, vector<4x1086xf32>, vector<4x1086xf32> -> vector<4x1086xf32>
    %48 = arith.addf %43, %47 : vector<4x1086xf32>
    %c7 = arith.constant 7 : index
    %c0_31 = arith.constant 0 : index
    %c0_32 = arith.constant 0 : index
    %49 = vector.load %arg4[%c7, %c0_31, %c0_32] : memref<9x4x4xf32, #tpu.memory_space<vmem>>, vector<1x4x4xf32>
    %50 = vector.shape_cast %49 : vector<1x4x4xf32> to vector<4x4xf32>
    %51 = vector.extract_strided_slice %12 {offsets = [0, 69], sizes = [4, 1086], strides = [1, 1]} : vector<4x1156xf32> to vector<4x1086xf32>
    %cst_33 = arith.constant dense<0.000000e+00> : vector<4x1086xf32>
    %52 = tpu.matmul %50, %51, %cst_33 {dimension_numbers = #tpu.dot_dimension_numbers<[1], [0], [0], [1], [0, 0, 1, 1], [], []>} : vector<4x4xf32>, vector<4x1086xf32>, vector<4x1086xf32> -> vector<4x1086xf32>
    %53 = arith.addf %48, %52 : vector<4x1086xf32>
    %c8 = arith.constant 8 : index
    %c0_34 = arith.constant 0 : index
    %c0_35 = arith.constant 0 : index
    %54 = vector.load %arg4[%c8, %c0_34, %c0_35] : memref<9x4x4xf32, #tpu.memory_space<vmem>>, vector<1x4x4xf32>
    %55 = vector.shape_cast %54 : vector<1x4x4xf32> to vector<4x4xf32>
    %56 = vector.extract_strided_slice %12 {offsets = [0, 70], sizes = [4, 1086], strides = [1, 1]} : vector<4x1156xf32> to vector<4x1086xf32>
    %cst_36 = arith.constant dense<0.000000e+00> : vector<4x1086xf32>
    %57 = tpu.matmul %55, %56, %cst_36 {dimension_numbers = #tpu.dot_dimension_numbers<[1], [0], [0], [1], [0, 0, 1, 1], [], []>} : vector<4x4xf32>, vector<4x1086xf32>, vector<4x1086xf32> -> vector<4x1086xf32>
    %58 = arith.addf %53, %57 : vector<4x1086xf32>
    %c0_37 = arith.constant 0 : index
    %c0_38 = arith.constant 0 : index
    %59 = vector.load %arg5[%c0_37, %c0_38] : memref<4x1xf32, #tpu.memory_space<vmem>>, vector<4x1xf32>
    %60 = vector.broadcast %59 : vector<4x1xf32> to vector<4x1086xf32>
    %61 = arith.addf %58, %60 : vector<4x1086xf32>
    %c0_39 = arith.constant 0 : index
    %c0_40 = arith.constant 0 : index
    %c35 = arith.constant 35 : index
    %62 = vector.load %arg2[%c0_39, %c0_40, %c35] : memref<1x4x1156xf32, #tpu.memory_space<vmem>>, vector<1x4x1086xf32>
    %63 = vector.shape_cast %62 : vector<1x4x1086xf32> to vector<4x1086xf32>
    %64 = arith.addf %61, %63 : vector<4x1086xf32>
    %cst_41 = arith.constant 0.000000e+00 : f32
    %65 = vector.broadcast %cst_41 : f32 to vector<1x4x1156xf32>
    %c0_42 = arith.constant 0 : index
    %c0_43 = arith.constant 0 : index
    %c0_44 = arith.constant 0 : index
    %66 = vector.load %arg7[%c0_42, %c0_43, %c0_44] : memref<1x4x1156xf32, #tpu.memory_space<vmem>>, vector<1x4x1156xf32>
    tpu.vector_store %arg7[%c0_42, %c0_43, %c0_44], %65 {strides = array<i32>} : memref<1x4x1156xf32, #tpu.memory_space<vmem>>, vector<1x4x1156xf32>,
    %c0_45 = arith.constant 0 : index
    %c0_46 = arith.constant 0 : index
    %c35_47 = arith.constant 35 : index
    %67 = vector.load %arg7[%c0_45, %c0_46, %c35_47] : memref<1x4x1156xf32, #tpu.memory_space<vmem>>, vector<1x4x1086xf32>
    %68 = vector.shape_cast %67 : vector<1x4x1086xf32> to vector<4x1086xf32>
    %69 = vector.shape_cast %64 : vector<4x1086xf32> to vector<1x4x1086xf32>
    tpu.vector_store %arg7[%c0_45, %c0_46, %c35_47], %69 {strides = array<i32>} : memref<1x4x1156xf32, #tpu.memory_space<vmem>>, vector<1x4x1086xf32>,
    return
  }
  func.func @transform_0(%arg0: i32) -> (i32, i32, i32) {
    %c0_i32 = arith.constant 0 : i32
    %c0_i32_0 = arith.constant 0 : i32
    %c0_i32_1 = arith.constant 0 : i32
    return %arg0, %c0_i32, %c0_i32_0 : i32, i32, i32
  }
  func.func @transform_1(%arg0: i32) -> (i32, i32, i32) {
    %c0_i32 = arith.constant 0 : i32
    %c0_i32_0 = arith.constant 0 : i32
    %c0_i32_1 = arith.constant 0 : i32
    return %arg0, %c0_i32, %c0_i32_0 : i32, i32, i32
  }
  func.func @transform_2(%arg0: i32) -> (i32, i32) {
    %c0_i32 = arith.constant 0 : i32
    %c0_i32_0 = arith.constant 0 : i32
    %c0_i32_1 = arith.constant 0 : i32
    return %c0_i32, %c0_i32_0 : i32, i32
  }
  func.func @transform_3(%arg0: i32) -> (i32, i32, i32) {
    %c0_i32 = arith.constant 0 : i32
    %c0_i32_0 = arith.constant 0 : i32
    %c0_i32_1 = arith.constant 0 : i32
    %c0_i32_2 = arith.constant 0 : i32
    return %c0_i32, %c0_i32_0, %c0_i32_1 : i32, i32, i32
  }
  func.func @transform_4(%arg0: i32) -> (i32, i32) {
    %c0_i32 = arith.constant 0 : i32
    %c0_i32_0 = arith.constant 0 : i32
    %c0_i32_1 = arith.constant 0 : i32
    return %c0_i32, %c0_i32_0 : i32, i32
  }
  func.func @transform_5(%arg0: i32) -> (i32, i32) {
    %c0_i32 = arith.constant 0 : i32
    %c0_i32_0 = arith.constant 0 : i32
    %c0_i32_1 = arith.constant 0 : i32
    return %c0_i32, %c0_i32_0 : i32, i32
  }
  func.func @transform_6(%arg0: i32) -> (i32, i32, i32) {
    %c0_i32 = arith.constant 0 : i32
    %c0_i32_0 = arith.constant 0 : i32
    %c0_i32_1 = arith.constant 0 : i32
    return %arg0, %c0_i32, %c0_i32_0 : i32, i32, i32
  }
}

</mosaic_0001>

<bundles_post_ra>
// kernel: decoder_block_forward.3
= control target key start
LH: loop header
LB: loop body
LE: loop exit
PB: predicated region body
PF: predicated region fallthrough
CT: control target
= control target key end

     0   :  { %s1547_s24 = smov 0   ;;  %s1731_s0 = inlined_call_operand.vmem [shape: f32[2,4,1156], index: 0, kind: input, shape index: {}]   ;;  %s1732_s1 = inlined_call_operand.vmem [shape: f32[2,4,1156], index: 1, kind: input, shape index: {}]   ;;  %s1733_s2 = inlined_call_operand.vmem [shape: f32[4,4], index: 2, kind: input, shape index: {}]   ;;  %s1734_s3 = inlined_call_operand.vmem [shape: f32[4,4], index: 3, kind: input, shape index: {}]   ;;  %s1735_s4 = inlined_call_operand.vmem [shape: f32[4,1], index: 4, kind: input, shape index: {}]   ;;  %s1736_s5 = inlined_call_operand.vmem [shape: f32[2,4,1156], index: 5, kind: output, shape index: {0}]   ;;  %s1737_s6 = inlined_call_operand.vmem [shape: f32[2,4,2], index: 6, kind: output, shape index: {1}]   ;;  %s1738_s7 = inlined_call_operand.vmem [shape: f32[2,4,2], index: 7, kind: output, shape index: {2}]  }
   0x1 LB: > { %s1423_s25 = sadd.s32 4294967295, %s1503_s24   ;;  %p1427_p0 = scmp.ge.s32.totalorder %s1503_s24, 1  ;;  %s1503_s24 = sphi %s1547_s24, %s18_s24  }
   0x2   : > { %p252_p1 = scmp.lt.s32.totalorder %s1503_s24, 3 }
   0x4   : > { %p253_p2 = pnand %p1427_p0, %p252_p1 }
   0x5   : > { %p297_p3 = scmp.lt.s32.totalorder (!%p253_p2), %s1423_s25, 1  ;;  %v1505_v0 = vmov (!%p253_p2), 0.0   ;;  %v1506_v1 = vmov (!%p253_p2), 0   ;;  %vm346_vm0 = vcmask (!%p253_p2), 1043456   ;;  %v1580_v10 = vld [vmem:[%s1734_s3] sm:$0xf] (!%p253_p2) }
   0x6   : > { %256 = sbr.rel (%p253_p2) target bundleno = 257 (0x101), region = 40  ;;  %431 = vmatprep.mubr.f32.mxu1 (!%p253_p2), %v1505_v0  ;;  %573 = vmatprep.mubr.f32.mxu0 (!%p253_p2), %v1505_v0  ;;  %vm342_vm1 = vcmask (!%p253_p2), 31744   ;;  %v1638_v41 = vld [vmem:[%s1733_s2] sm:$0xf] (!%p253_p2)  ;;  %vm1175_vm2 = vcmask (!%p253_p2), 27648   ;;  %vm1180_vm3 = vcmask (!%p253_p2), 3072  }
   0x7   : > { %1486 = vset.pattern.permute.xlu0 (!%p253_p2), %v1506_v1  ;;  %vm1223_vm4 = vcmask (!%p253_p2), 11272   ;;  %vm1150_vm5 = vcmask (!%p253_p2), 31748  }
   0x8   : > { %vm1151_vm6 = vmor (!%p253_p2), %vm1150_vm5, %vm346_vm0 }
   0xd   : > { %s1740_s25 = smov (!%p297_p3, %s1423_s25), 1 }
   0xe   : > { %s1560_s26 = smul.u32 40, %s1740_s25  ;;  %s1431_s16 = sshll.u32 %s1740_s25, 2 }
   0xf   : > { %s315_s19 = scalar_lea.vmem %s1737_s6, %s1431_s16  ;;  %s319_s22 = scalar_lea.vmem %s1738_s7, %s1431_s16 }
  0x10   : > { %s306_s29 = scalar_lea.vmem %s1732_s1, %s1560_s26  ;;  %s1572_s9 = scalar_lea.vmem %s1731_s0, %s1560_s26 }
  0x11   : > { %v325_v2 = vld [vmem:[%s306_s29] sm:$0xff]  ;;  %v326_v3 = vld [vmem:[%s306_s29 + $0x8] sm:$0xff]  ;;  %v1566_v4 = vld [vmem:[%s306_s29 + $0x10] sm:$0xff]  ;;  %s311_s27 = scalar_lea.vmem %s1736_s5, %s1560_s26 }
  0x12   : > { %v337_v5 = vcombine.high %v325_v2, %v325_v2  ;;  %v1230_v6 = vsel %vm346_vm0, %v325_v2, 0.0  ;;  %v1252_v7 = vmul.f32 %v325_v2, %v325_v2  ;;  %v338_v8 = vcombine.high %v326_v3, %v326_v3  ;;  %v1582_v11 = vld [vmem:[%s306_s29 + $0x20] sm:$0xff]  ;;  %v1587_v14 = vld [vmem:[%s306_s29 + $0x18] sm:$0xff]  ;;  %v321_v20 = vld [vmem:[%s1572_s9 + $0x8] sm:$0xff] }
  0x13   : > { %v339_v9 = vcombine.high %v1566_v4, %v1566_v4  ;;  %v1233_v13 = vsel %vm346_vm0, %v326_v3, 0.0  ;;  %v320_v15 = vld [vmem:[%s1572_s9] sm:$0xff]  ;;  %v1599_v19 = vcombine.high %v1582_v11, %v1582_v11  ;;  %v340_v22 = vcombine.high %v1587_v14, %v1587_v14  ;;  %v322_v31 = vld [vmem:[%s1572_s9 + $0x10] sm:$0xff]  ;;  %v323_v40 = vld [vmem:[%s1572_s9 + $0x18] sm:$0xff] }
  0x14   : > { %1433 = vmatprep.subr.msk.mxu1 %vm346_vm0, %v337_v5  ;;  %v1231_v12 = vsel %vm346_vm0, %v337_v5, 0.0  ;;  %v1262_v17 = vcombine.high %v1252_v7, %v1252_v7  ;;  %v1235_v18 = vsel %vm346_vm0, %v338_v8, 0.0  ;;  %v727_v23 = vcombine.high %v320_v15, %v320_v15  ;;  %v324_v45 = vld [vmem:[%s1572_s9 + $0x20] sm:$0xff] }
  0x15   : > { %v1232_v16 = vadd.f32 %v1231_v12, %v1230_v6  ;;  %1439 = vmatprep.subr.msk.mxu0 %vm346_vm0, %v339_v9  ;;  %1434 = vmatpush1.msk.msra.mxu1 %vm346_vm0, %v325_v2  ;;  %v1158_v24 = vsel %vm346_vm0, %v320_v15, 0.0  ;;  %v1237_v25 = vsel %vm346_vm0, %v1566_v4, 0.0  ;;  %v1182_v26 = vmul.f32 %v320_v15, %v320_v15 }
  0x16   : > { %1440 = vmatpush1.msk.msra.mxu0 %vm346_vm0, %v1566_v4  ;;  %1435 = vmatmul.mubr.msk.f32.vlgmr.msra.gmra.mrb[0].mxu1 %vm342_vm1, %v1580_v10  ;;  %v1159_v28 = vsel %vm346_vm0, %v727_v23, 0.0  ;;  %v728_v29 = vcombine.high %v321_v20, %v321_v20  ;;  %v1161_v30 = vsel %vm346_vm0, %v321_v20, 0.0  ;;  %v1619_v32 = vmul.f32 %v326_v3, %v326_v3 }
  0x17   : > { %v1234_v21 = vadd.f32 %v1233_v13, %v1232_v16  ;;  %1436 = vmatprep.subr.msk.mxu1 %vm346_vm0, %v338_v8  ;;  %1441 = vmatmul.mubr.msk.f32.vlgmr.msra.gmra.mrb[0].mxu0 %vm342_vm1, %v1580_v10  ;;  %v1272_v33 = vsel %vm346_vm0, %v1252_v7, 0.0  ;;  %v1239_v34 = vsel %vm346_vm0, %v339_v9, 0.0  ;;  %v1160_v35 = vadd.f32 %v1159_v28, %v1158_v24 }
  0x18   : > { %1445 = vmatprep.subr.msk.mxu0 %vm346_vm0, %v1599_v19  ;;  %1437 = vmatpush1.msk.msra.mxu1 %vm346_vm0, %v326_v3  ;;  %v1273_v36 = vsel %vm346_vm0, %v1262_v17, 0.0  ;;  %v1192_v38 = vcombine.high %v1182_v26, %v1182_v26  ;;  %v1163_v39 = vsel %vm346_vm0, %v728_v29, 0.0  ;;  %v1183_v43 = vmul.f32 %v321_v20, %v321_v20 }
  0x19   : > { %v1236_v27 = vadd.f32 %v1235_v18, %v1234_v21  ;;  %1446 = vmatpush1.msk.msra.mxu0 %vm346_vm0, %v1582_v11  ;;  %502 = vmatprep.mubr.f32.mxu1 %v1505_v0  ;;  %v1162_v42 = vadd.f32 %v1161_v30, %v1160_v35  ;;  %v729_v44 = vcombine.high %v322_v31, %v322_v31  ;;  %v1241_v47 = vsel %vm346_vm0, %v1587_v14, 0.0 }
  0x1a   : > { %715 = vmatprep.mubr.f32.mxu0 %v1505_v0  ;;  %1438 = vmatmul.mubr.msk.f32.vlgmr.msra.gmra.mrb[2].mxu1 %vm342_vm1, %v1580_v10  ;;  %v1645_v48 = vmul.f32 %v1566_v4, %v1566_v4  ;;  %v1165_v49 = vsel %vm346_vm0, %v322_v31, 0.0  ;;  %v1274_v50 = vadd.f32 %v1273_v36, %v1272_v33  ;;  %v1275_v51 = vsel %vm346_vm0, %v1619_v32, 0.0 }
  0x1b   : > { %v1238_v37 = vadd.f32 %v1237_v25, %v1236_v27  ;;  %1442 = vmatprep.subr.msk.mxu1 %vm346_vm0, %v340_v22  ;;  %1447 = vmatmul.mubr.msk.f32.vlgmr.msra.gmra.mrb[2].mxu0 %vm342_vm1, %v1580_v10  ;;  %v1164_v52 = vadd.f32 %v1163_v39, %v1162_v42  ;;  %v730_v53 = vcombine.high %v323_v40, %v323_v40  ;;  %v1167_v55 = vsel %vm346_vm0, %v729_v44, 0.0 }
  0x1c   : > { %1448 = vmatprep.subr.msk.mxu0 %vm346_vm0, %v727_v23  ;;  %1443 = vmatpush1.msk.msra.mxu1 %vm346_vm0, %v1587_v14  ;;  %v731_v54 = vcombine.high %v324_v45, %v324_v45  ;;  %v1184_v56 = vmul.f32 %v322_v31, %v322_v31  ;;  %v1202_v57 = vsel %vm346_vm0, %v1182_v26, 0.0  ;;  %v1193_v60 = vcombine.high %v1183_v43, %v1183_v43 }
  0x1d   : > { %v1240_v46 = vadd.f32 %v1239_v34, %v1238_v37  ;;  %1449 = vmatpush1.msk.msra.mxu0 %vm346_vm0, %v320_v15  ;;  %644 = vmatprep.mubr.f32.mxu1 %v1505_v0  ;;  %v1166_v59 = vadd.f32 %v1165_v49, %v1164_v52  ;;  %v1203_v61 = vsel %vm346_vm0, %v1192_v38, 0.0  ;;  %v1264_v62 = vcombine.high %v1645_v48, %v1645_v48 }
  0x1e   : > { %819 = vmatprep.mubr.f32.mxu0 %v1505_v0  ;;  %1444 = vmatmul.mubr.msk.f32.vlgmr.msra.gmra.mrb[4].mxu1 %vm342_vm1, %v1580_v10  ;;  %v1169_v63 = vsel %vm346_vm0, %v323_v40, 0.0  ;;  %v1243_v1 = vsel %vm346_vm0, %v340_v22, 0.0  ;;  %v1205_v2 = vsel %vm346_vm0, %v1183_v43, 0.0  ;;  %v1276_v3 = vadd.f32 %v1275_v51, %v1274_v50 }
  0x1f   : > { %1450 = vmatmul.mubr.msk.f32.vlgmr.msra.gmra.mrb[4].mxu0 %vm342_vm1, %v1638_v41  ;;  %1451 = vmatprep.subr.msk.mxu1 %vm346_vm0, %v728_v29  ;;  %v1242_v58 = vadd.f32 %v1241_v47, %v1240_v46  ;;  %v1168_v4 = vadd.f32 %v1167_v55, %v1166_v59  ;;  %v1204_v5 = vadd.f32 %v1203_v61, %v1202_v57  ;;  %v1171_v6 = vsel %vm346_vm0, %v730_v53, 0.0 }
  0x20   : > { %1454 = vmatprep.subr.msk.mxu0 %vm346_vm0, %v729_v44  ;;  %1452 = vmatpush1.msk.msra.mxu1 %vm346_vm0, %v321_v20  ;;  %v1185_v7 = vmul.f32 %v323_v40, %v323_v40  ;;  %v1194_v8 = vcombine.high %v1184_v56, %v1184_v56  ;;  %v1207_v9 = vsel %vm346_vm0, %v1193_v60, 0.0  ;;  %v1173_v15 = vsel %vm346_vm0, %v324_v45, 0.0 }
  0x21   : > { %1455 = vmatpush1.msk.msra.mxu0 %vm346_vm0, %v322_v31  ;;  %890 = vmatprep.mubr.f32.mxu1 %v1505_v0  ;;  %v1170_v10 = vadd.f32 %v1169_v63, %v1168_v4  ;;  %v1244_v12 = vadd.f32 %v1243_v1, %v1242_v58  ;;  %v1206_v13 = vadd.f32 %v1205_v2, %v1204_v5  ;;  %v1245_v16 = vsel %vm346_vm0, %v1582_v11, 0.0 }
  0x22   : > { %961 = vmatprep.mubr.f32.mxu0 %v1505_v0  ;;  %1453 = vmatmul.mubr.msk.f32.vlgmr.msra.gmra.mrb[2].mxu1 %vm342_vm1, %v1638_v41  ;;  %v1209_v17 = vsel %vm346_vm0, %v1184_v56, 0.0  ;;  %v1255_v18 = vmul.f32 %v1587_v14, %v1587_v14  ;;  %v1279_v20 = vsel %vm346_vm0, %v1645_v48, 0.0  ;;  %v1263_v23 = vcombine.high %v1619_v32, %v1619_v32  ;;  %v1110_v56 = vld [vmem:[%s1735_s4] sm:$0xf] }
  0x23   : > { %1456 = vmatmul.mubr.msk.f32.vlgmr.msra.gmra.mrb[0].mxu0 %vm342_vm1, %v1638_v41  ;;  %1457 = vmatprep.subr.msk.mxu1 %vm346_vm0, %v730_v53  ;;  %v1172_v21 = vadd.f32 %v1171_v6, %v1170_v10  ;;  %v1208_v22 = vadd.f32 %v1207_v9, %v1206_v13  ;;  %v1176_v24 = vsel %vm1175_vm2, %v731_v54, 0.0  ;;  %v1186_v25 = vmul.f32 %v324_v45, %v324_v45 }
  0x24   : > { %1460 = vmatprep.subr.msk.mxu0 %vm346_vm0, %v731_v54  ;;  %1458 = vmatpush1.msk.msra.mxu1 %vm346_vm0, %v323_v40  ;;  %v1195_v14 = vcombine.high %v1185_v7, %v1185_v7  ;;  %v1211_v26 = vsel %vm346_vm0, %v1194_v8, 0.0  ;;  %v1246_v28 = vadd.f32 %v1245_v16, %v1244_v12  ;;  %v1277_v29 = vsel %vm346_vm0, %v1263_v23, 0.0 }
  0x25   : > { %1461 = vmatpush1.msk.msra.mxu0 %vm346_vm0, %v324_v45  ;;  %1032 = vmatprep.mubr.f32.mxu1 %v1505_v0  ;;  %v1174_v27 = vadd.f32 %v1173_v15, %v1172_v21  ;;  %v1247_v30 = vsel %vm1175_vm2, %v1599_v19, 0.0  ;;  %v1213_v31 = vsel %vm346_vm0, %v1185_v7, 0.0  ;;  %v1256_v32 = vmul.f32 %v1582_v11, %v1582_v11 }
  0x26   : > { %1103 = vmatprep.mubr.f32.mxu0 %v1505_v0  ;;  %1459 = vmatmul.mubr.msk.f32.vlgmr.msra.gmra.mrb[4].mxu1 %vm342_vm1, %v1638_v41  ;;  %v1210_v0 = vadd.f32 %v1209_v17, %v1208_v22  ;;  %v1278_v33 = vadd.f32 %v1277_v29, %v1276_v3  ;;  %v1265_v36 = vcombine.high %v1255_v18, %v1255_v18  ;;  %v1281_v37 = vsel %vm346_vm0, %v1264_v62, 0.0 }
  0x27   : > { %1462 = vmatmul.mubr.msk.f32.vlgmr.msra.gmra.mrb[2].mxu0 %vm342_vm1, %v1638_v41  ;;  %v1177_v34 = vadd.f32 %v1176_v24, %v1174_v27  ;;  %v1196_v38 = vcombine.high %v1186_v25, %v1186_v25  ;;  %v1215_v39 = vsel %vm346_vm0, %v1195_v14, 0.0  ;;  %v1248_v41 = vadd.f32 %v1247_v30, %v1246_v28 }
  0x28   : > { %v1212_v35 = vadd.f32 %v1211_v26, %v1210_v0  ;;  %v1280_v40 = vadd.f32 %v1279_v20, %v1278_v33  ;;  %v1283_v19 = vsel %vm346_vm0, %v1255_v18, 0.0  ;;  %v1217_v43 = vsel %vm346_vm0, %v1186_v25, 0.0 }
  0x29   : > { %1178 = vadd.xlane.f32.xlu0 %v1177_v34  ;;  %v1266_v11 = vcombine.high %v1256_v32, %v1256_v32  ;;  %v1285_v46 = vsel %vm346_vm0, %v1265_v36, 0.0  ;;  %v1219_v47 = vsel %vm1175_vm2, %v1196_v38, 0.0  ;;  %v1287_v50 = vsel %vm346_vm0, %v1256_v32, 0.0 }
  0x2a   : > { %v1214_v42 = vadd.f32 %v1213_v31, %v1212_v35  ;;  %v1282_v44 = vadd.f32 %v1281_v37, %v1280_v40 }
  0x2b   : > { %v1289_v53 = vsel %vm1175_vm2, %v1266_v11, 0.0 }
  0x2c   : > { %v1216_v45 = vadd.f32 %v1215_v39, %v1214_v42  ;;  %v1284_v48 = vadd.f32 %v1283_v19, %v1282_v44 }
  0x2d   : > { %1249 = vadd.xlane.f32.xlu0 %v1248_v41 }
  0x2e   : > { %v1218_v49 = vadd.f32 %v1217_v43, %v1216_v45  ;;  %v1286_v51 = vadd.f32 %v1285_v46, %v1284_v48 }
  0x30   : > { %v1220_v52 = vadd.f32 %v1219_v47, %v1218_v49  ;;  %v1288_v54 = vadd.f32 %v1287_v50, %v1286_v51 }
  0x32   : > { %1221 = vadd.xlane.f32.xlu1 %v1220_v52  ;;  %v1290_v55 = vadd.f32 %v1289_v53, %v1288_v54 }
  0x36   : > { %1291 = vadd.xlane.f32.xlu1 %v1290_v55 }
  0x43   : > { %1113 = vperm.xlu0 %1486, %v1110_v56  }
  0xb6   : > { %v1179_v57 = vpop.xlane.xlu0 %1178 }
  0xb7   : > { %1181 = vst.msk [vmem:[%s315_s19] sm:$0xf] %vm1180_vm3, %v1179_v57 }
  0xba   : > { %v1250_v58 = vpop.xlane.xlu0 %1249 }
  0xbb   : > { %1251 = vst.msk [vmem:[%s319_s22] sm:$0xf] %vm1180_vm3, %v1250_v58 }
  0xbf   : > { %v1222_v59 = vpop.xlane.xlu1 %1221 }
  0xc0   : > { %1224 = vst.msk [vmem:[%s315_s19] sm:$0xf] %vm1223_vm4, %v1222_v59 }
  0xc2   : > { %v1114_v1 = vpop.permute.xlu0 %1113 }
  0xc3   : > { %v1292_v60 = vpop.xlane.xlu1 %1291 }
  0xc4   : > { %1293 = vst.msk [vmem:[%s319_s22] sm:$0xf] %vm1223_vm4, %v1292_v60 }
  0xe9   : > { %v433_v61 = vpop.f32.mrb[0].mxu1 }
  0xea   : > { %v435_v62 = vpop.f32.mrb[1].mxu1 }
  0xf2   : > { %v821_v63 = vpop.f32.mrb[4].mxu0 }
  0xf3   : > { %v822_v2 = vadd.f32 %v821_v63, %v433_v61  ;;  %v823_v3 = vpop.f32.mrb[5].mxu0 }
  0xf4   : > { %v824_v4 = vadd.f32 %v823_v3, %v435_v62 }
  0xf5   : > { %v892_v5 = vpop.f32.mrb[2].mxu1  ;;  %v1116_v6 = vadd.f32 %v1114_v1, %v822_v2 }
  0xf6   : > { %v1118_v7 = vadd.f32 %v1114_v1, %v892_v5  ;;  %v963_v8 = vpop.f32.mrb[0].mxu0  ;;  %v894_v9 = vpop.f32.mrb[3].mxu1  ;;  %v1117_v10 = vadd.f32 %v1114_v1, %v824_v4 }
  0xf7   : > { %v1120_v12 = vadd.f32 %v1114_v1, %v963_v8  ;;  %v1119_v13 = vadd.f32 %v1114_v1, %v894_v9  ;;  %v965_v15 = vpop.f32.mrb[1].mxu0 }
  0xf8   : > { %v1136_v16 = vcombine.low %v1116_v6, %v1117_v10  ;;  %v1121_v17 = vadd.f32 %v1114_v1, %v965_v15 }
  0xf9   : > { %v1137_v18 = vcombine.low %v1118_v7, %v1119_v13  ;;  %v1034_v20 = vpop.f32.mrb[4].mxu1 }
  0xfa   : > { %1146 = vst [vmem:[%s311_s27] sm:$0xff] %v1136_v16  ;;  %v1138_v21 = vcombine.low %v1120_v12, %v1121_v17  ;;  %v1122_v22 = vadd.f32 %v1114_v1, %v1034_v20  ;;  %v1105_v23 = vpop.f32.mrb[2].mxu0  ;;  %v1036_v24 = vpop.f32.mrb[5].mxu1 }
  0xfb   : > { %1147 = vst [vmem:[%s311_s27 + $0x8] sm:$0xff] %v1137_v18  ;;  %v1124_v25 = vadd.f32 %v1114_v1, %v1105_v23  ;;  %v1123_v14 = vadd.f32 %v1114_v1, %v1036_v24  ;;  %v1107_v26 = vpop.f32.mrb[3].mxu0 }
  0xfc   : > { %1148 = vst [vmem:[%s311_s27 + $0x10] sm:$0xff] %v1138_v21  ;;  %v1125_v27 = vadd.f32 %v1114_v1, %v1107_v26 }
  0xfd   : > { %v1139_v28 = vcombine.low %v1122_v22, %v1123_v14 }
  0xfe   : > { %v1140_v0 = vcombine.low %v1124_v25, %v1125_v27 }
  0xff   : > { %1149 = vst [vmem:[%s311_s27 + $0x18] sm:$0xff] %v1139_v28 }
 0x100   : > { %1152 = vst.msk [vmem:[%s311_s27 + $0x20] sm:$0xff] %vm1151_vm6, %v1140_v0 }
 0x101 PF: > { %s18_s24 = sadd.s32 1, %s1503_s24  }
 0x102   : > { %p15_p4 = scmp.ge.s32.totalorder %s18_s24, 4  }
 0x104   :  { %17 = sbr.rel (!%p15_p4) target bundleno = 1 (0x1), region = 97 }

// kernel: decoder_block_forward.4
= control target key start
LH: loop header
LB: loop body
LE: loop exit
PB: predicated region body
PF: predicated region fallthrough
CT: control target
= control target key end

     0   :  { %s8805_s30 = smov 0   ;;  %s10304_s0 = inlined_call_operand.vmem [shape: f32[2,4,1156], index: 0, kind: input, shape index: {}]   ;;  %s10305_s1 = inlined_call_operand.vmem [shape: f32[2,4,1156], index: 1, kind: input, shape index: {}]   ;;  %s10306_s2 = inlined_call_operand.vmem [shape: f32[4,2], index: 2, kind: input, shape index: {}]   ;;  %s10307_s3 = inlined_call_operand.vmem [shape: f32[4,2], index: 3, kind: input, shape index: {}]   ;;  %s10308_s4 = inlined_call_operand.vmem [shape: f32[9,4,4], index: 4, kind: input, shape index: {}]   ;;  %s10309_s5 = inlined_call_operand.vmem [shape: f32[9,4,4], index: 5, kind: input, shape index: {}]   ;;  %s10310_s6 = inlined_call_operand.vmem [shape: f32[4,1], index: 6, kind: input, shape index: {}]   ;;  %s10311_s7 = inlined_call_operand.vmem [shape: f32[1,1156], index: 7, kind: input, shape index: {}]   ;;  %s10312_s8 = inlined_call_operand.vmem [shape: f32[2,4,1156], index: 8, kind: output, shape index: {0}]   ;;  %s10313_s9 = inlined_call_operand.vmem [shape: f32[2,4,2], index: 9, kind: output, shape index: {1}]  }
   0x1 LB: > { %s8165_s10 = sadd.s32 4294967295, %s8739_s30   ;;  %p8169_p0 = scmp.ge.s32.totalorder %s8739_s30, 1  ;;  %s8739_s30 = sphi %s8805_s30, %s20_s30  }
   0x2   : > { %p300_p1 = scmp.lt.s32.totalorder %s8739_s30, 3 }
   0x4   : > { %p301_p2 = pnand %p8169_p0, %p300_p1 }
   0x6   : > { %304 = sbr.rel (%p301_p2) target bundleno = 992 (0x3e0), region = 52 }
   0xd   : > { %v371_v0 = vld [vmem:[%s10306_s2] sm:$0xf]  ;;  %v8741_v1 = vmov 1   ;;  %v8742_v3 = vmov 0   ;;  %p345_p3 = scmp.lt.s32.totalorder %s8165_s10, 1  ;;  %v379_v4 = vlaneseq  ;;  %s8744_s26 = smov 127  }
   0xe   : > { %8729 = vset.pattern.permute.xlu0 %v8741_v1  ;;  %v472_v2 = vld [vmem:[%s10307_s3] sm:$0xf]  ;;  %8731 = vset.pattern.permute.xlu1 %v8741_v1  ;;  %v8743_v5 = vmov 839922192   ;;  %v365_v18 = vld [vmem:[%s10311_s7 + $0x8] sm:$0x3] }
   0xf   : > { %390 = vperm.xlu0 %8729, %v371_v0   ;;  %491 = vperm.xlu1 %8731, %v472_v2   ;;  %s10327_s10 = smov (!%p345_p3, %s8165_s10), 1  ;;  %v377_v6 = vunpack.c.l.s4 %v8743_v5  ;;  %v380_v7 = vshrl.u32 %v379_v4, 7  ;;  %v364_v14 = vld [vmem:[%s10311_s7] sm:$0xff]  ;;  %s8745_s27 = smov 126   ;;  %vm546_vm0 = vcmask 1039360   ;;  %vm559_vm1 = vcmask 1043456  }
  0x10   : > { %s8822_s15 = smul.u32 40, %s10327_s10  ;;  %s8746_s28 = smov 94   ;;  %vm555_vm2 = vcmask 31744   ;;  %vm1327_vm3 = vcmask 1031168   ;;  %vm8753_vm4 = vmmov 0   ;;  %vm1740_vm5 = vcmask 769024  }
  0x11   : > { %v378_v8 = vunpack.c.0.s8 %v377_v6  ;;  %v422_v10 = vsub.s32 2, %v380_v7  ;;  %v426_v11 = vsub.s32 3, %v380_v7  ;;  %v430_v12 = vsub.s32 4, %v380_v7  ;;  %s8747_s29 = smov 93   ;;  %s8748_s11 = smov 92  }
  0x12   : > { %v434_v13 = vsub.s32 5, %v380_v7  ;;  %s349_s18 = scalar_lea.vmem %s10304_s0, %s8822_s15  ;;  %v414_v15 = vsub.s32 0, %v380_v7  ;;  %v418_v16 = vsub.s32 1, %v380_v7  ;;  %v438_v19 = vsub.s32 6, %v380_v7  ;;  %s354_s25 = scalar_lea.vmem %s10305_s1, %s8822_s15 }
  0x13   : > { %8730 = vset.pattern.permute.xlu0 %v8742_v3  ;;  %v381_v17 = vsub.s32 %v378_v8, %v380_v7  ;;  %v366_v21 = vld [vmem:[%s349_s18] sm:$0xff]  ;;  %v367_v22 = vld [vmem:[%s349_s18 + $0x8] sm:$0xff]  ;;  %v368_v23 = vld [vmem:[%s349_s18 + $0x10] sm:$0xff]  ;;  %v8834_v24 = vrot.slane %v364_v14, %v422_v10  ;;  %v8836_v25 = vrot.slane %v364_v14, %v426_v11  ;;  %v442_v26 = vsub.s32 7, %v380_v7  ;;  %s8749_s12 = smov 60   ;;  %s8750_s13 = smov 59  }
  0x14   : > { %374 = vperm.xlu0 %8730, %v371_v0   ;;  %v369_v27 = vld [vmem:[%s349_s18 + $0x18] sm:$0xff]  ;;  %v370_v28 = vld [vmem:[%s349_s18 + $0x20] sm:$0xff]  ;;  %v8838_v30 = vrot.slane %v364_v14, %v430_v12  ;;  %v8840_v31 = vrot.slane %v364_v14, %v434_v13  ;;  %v8842_v32 = vrot.slane %v364_v14, %v414_v15  ;;  %v8844_v33 = vrot.slane %v364_v14, %v418_v16  ;;  %v468_v51 = vld [vmem:[%s354_s25 + $0x8] sm:$0xff]  ;;  %s8945_s17 = scalar_lea.vmem %s10312_s8, %s8822_s15  ;;  %s8752_s18 = smov 58  }
  0x15   : > { %v8846_v34 = vrot.slane %v365_v18, %v414_v15  ;;  %v451_v35 = vrot.slane %v365_v18, %v418_v16  ;;  %v8852_v43 = vrot.slane %v364_v14, %v438_v19  ;;  %v453_v44 = vcombine.low %v8834_v24, %v8836_v25  ;;  %v467_v50 = vld [vmem:[%s354_s25] sm:$0xff]  ;;  %v469_v52 = vld [vmem:[%s354_s25 + $0x10] sm:$0xff]  ;;  %v470_v61 = vld [vmem:[%s354_s25 + $0x18] sm:$0xff]  ;;  %s8173_s23 = sshll.u32 %s10327_s10, 2 }
  0x16   : > { %v454_v49 = vcombine.low %v8838_v30, %v8840_v31  ;;  %v8858_v54 = vrot.slane %v364_v14, %v442_v26  ;;  %v452_v59 = vcombine.low %v8842_v32, %v8844_v33  ;;  %v471_v62 = vld [vmem:[%s354_s25 + $0x20] sm:$0xff]  ;;  %vm2153_vm6 = vcmask 760832  }
  0x17   : > { %10319 = vst [vmem:[#allocation2_spill] sm:$0xff] %v8846_v34  ;;  %10320 = vst [vmem:[#allocation3_spill] sm:$0xff] %v8852_v43  ;;  %v456_v60 = vcombine.low %v8846_v34, %v451_v35  ;;  %vm2566_vm7 = vcmask 752640   ;;  %vm2982_vm8 = vcmask 490496   ;;  %vm3398_vm9 = vcmask 482304  }
  0x18   : > { %475 = vperm.xlu0 %8730, %v472_v2   ;;  %10321 = vst [vmem:[#allocation4_spill] sm:$0xff] %v8858_v54  ;;  %v455_v10 = vcombine.low %v8852_v43, %v8858_v54  ;;  %v8174_v54 = vld [vmem:[%s10308_s4 + $0x4] sm:$0xf]  ;;  %vm3814_vm10 = vcmask 474112   ;;  %vm8030_vm11 = vcmask 502784   ;;  %vm7918_vm12 = vcmask 31748  }
  0x19   : > { %vm7919_vm13 = vmor %vm7918_vm12, %vm559_vm1  ;;  %vm7962_vm14 = vcmask 1043736   ;;  %vm7963_vm15 = vcmask 1047556  }
  0x8e   : > { %v391_v9 = vpop.permute.xlu0 %390  ;;  %v492_v40 = vpop.permute.xlu1 %491 }
  0x8f   : > { %v398_v36 = vrot.slane %v391_v9, %v381_v17  ;;  %v499_v56 = vrot.slane %v492_v40, %v381_v17 }
  0x93   : > { %v375_v20 = vpop.permute.xlu0 %374 }
  0x94   : > { %v382_v29 = vrot.slane %v375_v20, %v381_v17 }
  0x96   : > { %v384_v37 = vmul.f32 %v382_v29, %v366_v21  ;;  %v385_v38 = vmul.f32 %v382_v29, %v367_v22  ;;  %v386_v39 = vmul.f32 %v382_v29, %v368_v23  ;;  %v387_v41 = vmul.f32 %v382_v29, %v369_v27 }
  0x97   : > { %v388_v42 = vmul.f32 %v382_v29, %v370_v28  ;;  %v476_v45 = vpop.permute.xlu0 %475 }
  0x98   : > { %v400_v46 = vadd.f32 %v398_v36, %v384_v37  ;;  %v401_v47 = vadd.f32 %v398_v36, %v385_v38  ;;  %v402_v48 = vadd.f32 %v398_v36, %v386_v39  ;;  %v483_v55 = vrot.slane %v476_v45, %v381_v17 }
  0x99   : > { %v404_v53 = vadd.f32 %v398_v36, %v388_v42  ;;  %v403_v63 = vadd.f32 %v398_v36, %v387_v41  ;;  %v10314_v36 = vmov 0.0  }
  0x9a   : > { %v406_v57 = vmax.f32 %v401_v47, 0.0  ;;  %v407_v58 = vmax.f32 %v402_v48, 0.0  ;;  %v485_v0 = vmul.f32 %v483_v55, %v467_v50  ;;  %v486_v1 = vmul.f32 %v483_v55, %v468_v51  ;;  %713 = vmatprep.mubr.f32.mxu1 %v10314_v36  ;;  %7914 = vst [vmem:[%s8945_s17] sm:$0xff] %v10314_v36  ;;  %642 = vmatprep.mubr.f32.mxu0 %v10314_v36 }
  0x9b   : > { %v487_v2 = vmul.f32 %v483_v55, %v469_v52  ;;  %v405_v3 = vmax.f32 %v400_v46, 0.0  ;;  %v409_v4 = vmax.f32 %v404_v53, 0.0  ;;  %v488_v7 = vmul.f32 %v483_v55, %v470_v61 }
  0x9c   : > { %v8863_v5 = vmul.f32 %v453_v44, %v406_v57  ;;  %v8865_v6 = vmul.f32 %v454_v49, %v407_v58  ;;  %v489_v8 = vmul.f32 %v483_v55, %v471_v62  ;;  %v501_v9 = vadd.f32 %v499_v56, %v485_v0 }
  0x9d   : > { %v502_v11 = vadd.f32 %v499_v56, %v486_v1  ;;  %v503_v12 = vadd.f32 %v499_v56, %v487_v2  ;;  %v408_v13 = vmax.f32 %v403_v63, 0.0  ;;  %v504_v14 = vadd.f32 %v499_v56, %v488_v7 }
  0x9e   : > { %536 = vrot.lane.b32.xlu0 %v8865_v6, %s8744_s26  ;;  %532 = vrot.lane.b32.xlu1 %v8863_v5, %s8744_s26  ;;  %v505_v15 = vadd.f32 %v499_v56, %v489_v8  ;;  %v506_v16 = vmax.f32 %v501_v9, 0.0  ;;  %v8873_v17 = vmul.f32 %v452_v59, %v405_v3  ;;  %v8875_v18 = vmul.f32 %v456_v60, %v409_v4 }
  0x9f   : > { %v507_v19 = vmax.f32 %v502_v11, 0.0  ;;  %v508_v20 = vmax.f32 %v503_v12, 0.0  ;;  %v509_v21 = vmax.f32 %v504_v14, 0.0  ;;  %v8891_v35 = vmul.f32 %v455_v10, %v408_v13 }
  0xa0   : > { %v510_v22 = vmax.f32 %v505_v15, 0.0  ;;  %v8877_v23 = vmul.f32 %v506_v16, %v452_v59  ;;  %v8961_v37 = vcombine.high %v8873_v17, %v8873_v17  ;;  %v8969_v38 = vcombine.high %v8863_v5, %v8863_v5 }
  0xa1   : > { %v8879_v26 = vmul.f32 %v507_v19, %v453_v44  ;;  %v8881_v27 = vmul.f32 %v508_v20, %v454_v49  ;;  %v8887_v28 = vmul.f32 %v509_v21, %v455_v10  ;;  %v8977_v39 = vcombine.high %v8891_v35, %v8891_v35 }
  0xa2   : > { %544 = vrot.lane.b32.xlu0 %v8875_v18, %s8744_s26  ;;  %528 = vrot.lane.b32.xlu1 %v8873_v17, %s8744_s26  ;;  %v8889_v29 = vmul.f32 %v510_v22, %v456_v60  ;;  %v8989_v40 = vcombine.high %v8865_v6, %v8865_v6  ;;  %v2961_v52 = vcombine.high %v8875_v18, %v8875_v18 }
  0xa3   : > { %v9097_v62 = vcombine.high %v8879_v26, %v8879_v26  ;;  %v9109_v1 = vcombine.high %v8881_v27, %v8881_v27  ;;  %v9120_v4 = vcombine.high %v8887_v28, %v8887_v28  ;;  %v9124_v7 = vcombine.high %v8877_v23, %v8877_v23 }
  0xa6   : > { %1313 = vrot.lane.b32.xlu0 %v8863_v5, %s8745_s27  ;;  %540 = vrot.lane.b32.xlu1 %v8891_v35, %s8744_s26 }
  0xaa   : > { %1317 = vrot.lane.b32.xlu0 %v8865_v6, %s8745_s27  ;;  %1309 = vrot.lane.b32.xlu1 %v8873_v17, %s8745_s27 }
  0xae   : > { %1325 = vrot.lane.b32.xlu0 %v8875_v18, %s8745_s27  ;;  %1321 = vrot.lane.b32.xlu1 %v8891_v35, %s8745_s27 }
  0xb2   : > { %1722 = vrot.lane.b32.xlu0 %v8873_v17, %s8746_s28  ;;  %1726 = vrot.lane.b32.xlu1 %v8863_v5, %s8746_s28 }
  0xb6   : > { %1730 = vrot.lane.b32.xlu0 %v8865_v6, %s8746_s28  ;;  %2135 = vrot.lane.b32.xlu1 %v8873_v17, %s8747_s29 }
  0xba   : > { %1734 = vrot.lane.b32.xlu0 %v8891_v35, %s8746_s28  ;;  %2147 = vrot.lane.b32.xlu1 %v8891_v35, %s8747_s29 }
  0xbe   : > { %1738 = vrot.lane.b32.xlu0 %v8875_v18, %s8746_s28  ;;  %2552 = vrot.lane.b32.xlu1 %v8863_v5, %s8748_s11 }
  0xc2   : > { %2139 = vrot.lane.b32.xlu0 %v8863_v5, %s8747_s29  ;;  %2962 = vrot.lane.b32.xlu1 %v8873_v17, %s8749_s12 }
  0xc6   : > { %2143 = vrot.lane.b32.xlu0 %v8865_v6, %s8747_s29  ;;  %2974 = vrot.lane.b32.xlu1 %v8891_v35, %s8749_s12 }
  0xca   : > { %2151 = vrot.lane.b32.xlu0 %v8875_v18, %s8747_s29  ;;  %3378 = vrot.lane.b32.xlu1 %v8873_v17, %s8750_s13 }
  0xce   : > { %2548 = vrot.lane.b32.xlu0 %v8873_v17, %s8748_s11  ;;  %3386 = vrot.lane.b32.xlu1 %v8865_v6, %s8750_s13 }
  0xd2   : > { %2556 = vrot.lane.b32.xlu0 %v8865_v6, %s8748_s11  ;;  %3390 = vrot.lane.b32.xlu1 %v8891_v35, %s8750_s13 }
  0xd6   : > { %2560 = vrot.lane.b32.xlu0 %v8891_v35, %s8748_s11  ;;  %3394 = vrot.lane.b32.xlu1 %v8875_v18, %s8750_s13 }
  0xda   : > { %2564 = vrot.lane.b32.xlu0 %v8875_v18, %s8748_s11  ;;  %3798 = vrot.lane.b32.xlu1 %v8863_v5, %s8752_s18 }
  0xde   : > { %2966 = vrot.lane.b32.xlu0 %v8863_v5, %s8749_s12  ;;  %530 = vrot.lane.b32.xlu1 %v8961_v37, %s8744_s26 }
  0xe2   : > { %2970 = vrot.lane.b32.xlu0 %v8865_v6, %s8749_s12  ;;  %534 = vrot.lane.b32.xlu1 %v8969_v38, %s8744_s26 }
  0xe6   : > { %2978 = vrot.lane.b32.xlu0 %v8875_v18, %s8749_s12  ;;  %542 = vrot.lane.b32.xlu1 %v8977_v39, %s8744_s26 }
  0xea   : > { %3382 = vrot.lane.b32.xlu0 %v8863_v5, %s8750_s13  ;;  %1311 = vrot.lane.b32.xlu1 %v8961_v37, %s8745_s27 }
  0xee   : > { %538 = vrot.lane.b32.xlu0 %v8989_v40, %s8744_s26  ;;  %1315 = vrot.lane.b32.xlu1 %v8969_v38, %s8745_s27 }
  0xf2   : > { %1319 = vrot.lane.b32.xlu0 %v8989_v40, %s8745_s27  ;;  %1323 = vrot.lane.b32.xlu1 %v8977_v39, %s8745_s27 }
  0xf6   : > { %1724 = vrot.lane.b32.xlu0 %v8961_v37, %s8746_s28  ;;  %1728 = vrot.lane.b32.xlu1 %v8969_v38, %s8746_s28 }
  0xfa   : > { %2145 = vrot.lane.b32.xlu0 %v8989_v40, %s8747_s29  ;;  %1732 = vrot.lane.b32.xlu1 %v8989_v40, %s8746_s28 }
  0xfe   : > { %2550 = vrot.lane.b32.xlu0 %v8961_v37, %s8748_s11  ;;  %1736 = vrot.lane.b32.xlu1 %v8977_v39, %s8746_s28 }
 0x102   : > { %2972 = vrot.lane.b32.xlu0 %v8989_v40, %s8749_s12  ;;  %2137 = vrot.lane.b32.xlu1 %v8961_v37, %s8747_s29 }
 0x106   : > { %2976 = vrot.lane.b32.xlu0 %v8977_v39, %s8749_s12  ;;  %2141 = vrot.lane.b32.xlu1 %v8969_v38, %s8747_s29 }
 0x10a   : > { %3384 = vrot.lane.b32.xlu0 %v8969_v38, %s8750_s13  ;;  %2149 = vrot.lane.b32.xlu1 %v8977_v39, %s8747_s29 }
 0x10e   : > { %3388 = vrot.lane.b32.xlu0 %v8989_v40, %s8750_s13  ;;  %2554 = vrot.lane.b32.xlu1 %v8969_v38, %s8748_s11 }
 0x110   : > { %v9027_v41 = vpop.permute.xlu0 %536  ;;  %v9029_v42 = vpop.permute.xlu1 %532 }
 0x112   : > { %3392 = vrot.lane.b32.xlu0 %v8977_v39, %s8750_s13  ;;  %2558 = vrot.lane.b32.xlu1 %v8989_v40, %s8748_s11 }
 0x114   : > { %v9035_v44 = vpop.permute.xlu0 %544  ;;  %v9037_v45 = vpop.permute.xlu1 %528 }
 0x116   : > { %3796 = vrot.lane.b32.xlu0 %v8961_v37, %s8752_s18  ;;  %2562 = vrot.lane.b32.xlu1 %v8977_v39, %s8748_s11 }
 0x118   : > { %v9043_v46 = vpop.permute.xlu0 %1313  ;;  %v9045_v47 = vpop.permute.xlu1 %540 }
 0x11a   : > { %3794 = vrot.lane.b32.xlu0 %v8873_v17, %s8752_s18  ;;  %2964 = vrot.lane.b32.xlu1 %v8961_v37, %s8749_s12 }
 0x11c   : > { %v9051_v48 = vpop.permute.xlu0 %1317  ;;  %v9053_v49 = vpop.permute.xlu1 %1309 }
 0x11e   : > { %3804 = vrot.lane.b32.xlu0 %v8989_v40, %s8752_s18  ;;  %2968 = vrot.lane.b32.xlu1 %v8969_v38, %s8749_s12 }
 0x120   : > { %v9059_v50 = vpop.permute.xlu0 %1325  ;;  %v9061_v51 = vpop.permute.xlu1 %1321 }
 0x122   : > { %3802 = vrot.lane.b32.xlu0 %v8865_v6, %s8752_s18  ;;  %2980 = vrot.lane.b32.xlu1 %v2961_v52, %s8749_s12 }
 0x124   : > { %v9068_v53 = vpop.permute.xlu0 %1722  ;;  %v9070_v55 = vpop.permute.xlu1 %1726 }
 0x126   : > { %3810 = vrot.lane.b32.xlu0 %v8875_v18, %s8752_s18  ;;  %3380 = vrot.lane.b32.xlu1 %v8961_v37, %s8750_s13 }
 0x128   : > { %v9076_v56 = vpop.permute.xlu0 %1730  ;;  %v9078_v57 = vpop.permute.xlu1 %2135 }
 0x12a   : > { %3808 = vrot.lane.b32.xlu0 %v8977_v39, %s8752_s18  ;;  %3396 = vrot.lane.b32.xlu1 %v2961_v52, %s8750_s13 }
 0x12c   : > { %v9083_v58 = vpop.permute.xlu0 %1734  ;;  %v9085_v59 = vpop.permute.xlu1 %2147 }
 0x12e   : > { %4224 = vrot.lane.b32.xlu0 %v8879_v26, %s8744_s26  ;;  %3806 = vrot.lane.b32.xlu1 %v8891_v35, %s8752_s18 }
 0x130   : > { %v9091_v60 = vpop.permute.xlu0 %1738  ;;  %v9093_v61 = vpop.permute.xlu1 %2552 }
 0x132   : > { %4226 = vrot.lane.b32.xlu0 %v9097_v62, %s8744_s26  ;;  %3800 = vrot.lane.b32.xlu1 %v8969_v38, %s8752_s18 }
 0x134   : > { %v9103_v63 = vpop.permute.xlu0 %2139  ;;  %v9105_v0 = vpop.permute.xlu1 %2962 }
 0x136   : > { %4230 = vrot.lane.b32.xlu0 %v9109_v1, %s8744_s26  ;;  %3812 = vrot.lane.b32.xlu1 %v2961_v52, %s8752_s18 }
 0x138   : > { %v9114_v2 = vpop.permute.xlu0 %2143  ;;  %v9116_v3 = vpop.permute.xlu1 %2974 }
 0x13a   : > { %4234 = vrot.lane.b32.xlu0 %v9120_v4, %s8744_s26  ;;  %4222 = vrot.lane.b32.xlu1 %v9124_v7, %s8744_s26 }
 0x13c   : > { %v9130_v8 = vpop.permute.xlu0 %2151  ;;  %v9132_v9 = vpop.permute.xlu1 %3378 }
 0x13e   : > { %5000 = vrot.lane.b32.xlu0 %v9124_v7, %s8745_s27  ;;  %4220 = vrot.lane.b32.xlu1 %v8877_v23, %s8744_s26 }
 0x140   : > { %v9138_v10 = vpop.permute.xlu0 %2548  ;;  %v9140_v11 = vpop.permute.xlu1 %3386 }
 0x142   : > { %4998 = vrot.lane.b32.xlu0 %v8877_v23, %s8745_s27  ;;  %4228 = vrot.lane.b32.xlu1 %v8881_v27, %s8744_s26 }
 0x144   : > { %v9146_v12 = vpop.permute.xlu0 %2556  ;;  %v9148_v13 = vpop.permute.xlu1 %3390 }
 0x146   : > { %5006 = vrot.lane.b32.xlu0 %v8881_v27, %s8745_s27  ;;  %4232 = vrot.lane.b32.xlu1 %v8887_v28, %s8744_s26 }
 0x148   : > { %v9154_v14 = vpop.permute.xlu0 %2560  ;;  %v9156_v15 = vpop.permute.xlu1 %3394 }
 0x14a   : > { %5010 = vrot.lane.b32.xlu0 %v8887_v28, %s8745_s27  ;;  %4236 = vrot.lane.b32.xlu1 %v8889_v29, %s8744_s26  ;;  %s363_s26 = scalar_lea.vmem %s10313_s9, %s8173_s23 }
 0x14c   : > { %v9162_v16 = vpop.permute.xlu0 %2564  ;;  %v9164_v19 = vpop.permute.xlu1 %3798 }
 0x14e   : > { %5014 = vrot.lane.b32.xlu0 %v8889_v29, %s8745_s27  ;;  %5002 = vrot.lane.b32.xlu1 %v8879_v26, %s8745_s27 }
 0x150   : > { %v9170_v20 = vpop.permute.xlu0 %2966  ;;  %v531_v21 = vpop.permute.xlu1 %530 }
 0x151   : > { %v548_v22 = vsel %vm546_vm0, %v531_v21, %v9029_v42  ;;  %v547_v52 = vsel %vm546_vm0, %v9037_v45, %v531_v21 }
 0x152   : > { %5414 = vrot.lane.b32.xlu0 %v8879_v26, %s8746_s28  ;;  %5004 = vrot.lane.b32.xlu1 %v9097_v62, %s8745_s27 }
 0x153   : > { %8175 = vmatprep.subr.msk.mxu0 %vm559_vm1, %v548_v22  ;;  %v10322_v22 = vmov 0.0  }
 0x154   : > { %8176 = vmatpush1.msk.msra.mxu0 %vm559_vm1, %v547_v52  ;;  %v9182_v36 = vpop.permute.xlu0 %2970  ;;  %v535_v34 = vpop.permute.xlu1 %534 }
 0x155   : > { %v550_v45 = vsel %vm546_vm0, %v535_v34, %v9027_v41  ;;  %v549_v21 = vsel %vm546_vm0, %v9029_v42, %v535_v34  ;;  %8177 = vmatmul.mubr.msk.f32.vlgmr.msra.gmra.mrb[0].mxu0 %vm555_vm2, %v8174_v54 }
 0x156   : > { %5420 = vrot.lane.b32.xlu0 %v9109_v1, %s8746_s28  ;;  %5008 = vrot.lane.b32.xlu1 %v9109_v1, %s8745_s27 }
 0x157   : > { %8178 = vmatprep.subr.msk.mxu1 %vm559_vm1, %v550_v45  ;;  %784 = vmatprep.mubr.f32.mxu0 %v10322_v22 }
 0x158   : > { %8179 = vmatpush1.msk.msra.mxu1 %vm559_vm1, %v549_v21  ;;  %v9199_v52 = vpop.permute.xlu0 %2978  ;;  %v543_v43 = vpop.permute.xlu1 %542 }
 0x159   : > { %8180 = vmatmul.mubr.msk.f32.vlgmr.msra.gmra.mrb[0].mxu1 %vm555_vm2, %v8174_v54  ;;  %v553_v34 = vsel %vm546_vm0, %v9045_v47, %v543_v43  ;;  %v554_v42 = vsel %vm546_vm0, %v543_v43, %v9035_v44  ;;  %v9227_v43 = vld [vmem:[%s10308_s4] sm:$0xf] }
 0x15a   : > { %5418 = vrot.lane.b32.xlu0 %v8881_v27, %s8746_s28  ;;  %5012 = vrot.lane.b32.xlu1 %v9120_v4, %s8745_s27 }
 0x15b   : > { %8184 = vmatprep.subr.msk.mxu1 %vm559_vm1, %v554_v42  ;;  %855 = vmatprep.mubr.f32.mxu1 %v10322_v22 }
 0x15c   : > { %8185 = vmatpush1.msk.msra.mxu1 %vm559_vm1, %v553_v34  ;;  %v9213_v45 = vpop.permute.xlu0 %3382  ;;  %v9215_v21 = vpop.permute.xlu1 %1311 }
 0x15d   : > { %8186 = vmatmul.mubr.msk.f32.vlgmr.msra.gmra.mrb[2].mxu1 %vm555_vm2, %v8174_v54  ;;  %8192 = vmatprep.subr.msk.mxu1 %vm559_vm1, %v8969_v38 }
 0x15e   : > { %8193 = vmatpush1.msk.msra.mxu1 %vm559_vm1, %v8863_v5  ;;  %5426 = vrot.lane.b32.xlu0 %v8889_v29, %s8746_s28 }
 0x15f   : > { %5412 = vrot.lane.b32.xlu1 %v9124_v7, %s8746_s28  ;;  %8198 = vmatprep.subr.msk.mxu1 %vm559_vm1, %v8977_v39 }
 0x160   : > { %1088 = vmatprep.mubr.f32.mxu1 %v10322_v22  ;;  %v539_v38 = vpop.permute.xlu0 %538  ;;  %v1316_v34 = vpop.permute.xlu1 %1315 }
 0x161   : > { %v551_v5 = vsel %vm546_vm0, %v9027_v41, %v539_v38  ;;  %8194 = vmatmul.mubr.msk.f32.vlgmr.msra.gmra.mrb[0].mxu1 %vm555_vm2, %v9227_v43  ;;  %v552_v42 = vsel %vm546_vm0, %v539_v38, %v9045_v47 }
 0x162   : > { %8199 = vmatpush1.msk.msra.mxu1 %vm559_vm1, %v8891_v35  ;;  %5824 = vrot.lane.b32.xlu0 %v9124_v7, %s8747_s29  ;;  %v1331_v35 = vsel %vm1327_vm3, %v1316_v34, %v9051_v48 }
 0x163   : > { %5410 = vrot.lane.b32.xlu1 %v8877_v23, %s8746_s28  ;;  %8181 = vmatprep.subr.msk.mxu0 %vm559_vm1, %v552_v42  ;;  %v1329_v42 = vsel %vm1327_vm3, %v9215_v21, %v9043_v46 }
 0x164   : > { %8182 = vmatpush1.msk.msra.mxu0 %vm559_vm1, %v551_v5  ;;  %1230 = vmatprep.mubr.f32.mxu1 %v10322_v22  ;;  %v9249_v39 = vpop.permute.xlu0 %1319  ;;  %v1324_v41 = vpop.permute.xlu1 %1323 }
 0x165   : > { %8485 = vmatprep.subr.mxu1 %v10322_v22  ;;  %8183 = vmatmul.mubr.msk.f32.vlgmr.msra.gmra.mrb[2].mxu0 %vm555_vm2, %v8174_v54 }
 0x166   : > { %8480 = vmatprep.subr.mxu0 %v10322_v22  ;;  %8200 = vmatmul.mubr.msk.f32.vlgmr.msra.gmra.mrb[2].mxu1 %vm555_vm2, %v9227_v43 }
 0x167   : > { %8486 = vmatpush3.msk.msra.mxu1 %vm559_vm1, %v8875_v18  ;;  %8481 = vmatpush3.msk.msra.mxu0 %vm559_vm1, %v9035_v44  ;;  %v1330_v18 = vsel %vm1327_vm3, %v9043_v46, %v1316_v34 }
 0x168   : > { %8207 = vmatprep.subr.msk.mxu1 %vm559_vm1, %v1331_v35  ;;  %5822 = vrot.lane.b32.xlu0 %v8877_v23, %s8747_s29  ;;  %v9265_v47 = vpop.permute.xlu0 %1724  ;;  %v1729_v38 = vpop.permute.xlu1 %1728  ;;  %v1328_v35 = vsel %vm1327_vm3, %v9053_v49, %v9215_v21  ;;  %v1333_v49 = vsel %vm1327_vm3, %v9249_v39, %v9061_v51  ;;  %v9353_v21 = vld [vmem:[%s10308_s4 + $0xc] sm:$0xf] }
 0x169   : > { %5422 = vrot.lane.b32.xlu1 %v8887_v28, %s8746_s28  ;;  %8189 = vmatprep.subr.msk.mxu0 %vm559_vm1, %v8961_v37  ;;  %v1335_v37 = vsel %vm1327_vm3, %v1324_v41, %v9059_v50 }
 0x16a   : > { %8482 = vmatprep.mubr.msk.f32.mxu0 %vm8753_vm4, %v10322_v22  ;;  %8487 = vmatprep.mubr.msk.f32.mxu1 %vm8753_vm4, %v10322_v22 }
 0x16b   : > { %8483 = vmatmul.mubr.msk.f32.vlgmr.msra.gmra.mrb[4].mxu0 %vm555_vm2, %v8174_v54  ;;  %8488 = vmatmul.mubr.msk.f32.vlgmr.msra.gmra.mrb[4].mxu1 %vm555_vm2, %v9227_v43  ;;  %v9295_v54 = vld [vmem:[%s10308_s4 + $0x8] sm:$0xf] }
 0x16c   : > { %8190 = vmatpush1.msk.msra.mxu0 %vm559_vm1, %v8873_v17  ;;  %8208 = vmatpush1.msk.msra.mxu1 %vm559_vm1, %v1330_v18  ;;  %v9285_v44 = vpop.permute.xlu0 %2145  ;;  %v9287_v5 = vpop.permute.xlu1 %1732  ;;  %v1334_v17 = vsel %vm1327_vm3, %v9061_v51, %v1324_v41  ;;  %v1744_v41 = vsel %vm1740_vm5, %v1729_v38, %v9076_v56  ;;  %v1743_v18 = vsel %vm1740_vm5, %v9070_v55, %v1729_v38 }
 0x16d   : > { %8195 = vmatprep.subr.msk.mxu0 %vm559_vm1, %v8989_v40  ;;  %8213 = vmatprep.subr.msk.mxu1 %vm559_vm1, %v1335_v37  ;;  %v1332_v51 = vsel %vm1327_vm3, %v9051_v48, %v9249_v39 }
 0x16e   : > { %5830 = vrot.lane.b32.xlu0 %v8881_v27, %s8747_s29  ;;  %5416 = vrot.lane.b32.xlu1 %v9097_v62, %s8746_s28 }
 0x16f   : > { %1017 = vmatprep.mubr.f32.mxu0 %v10322_v22  ;;  %1492 = vmatprep.mubr.f32.mxu1 %v10322_v22 }
 0x170   : > { %8191 = vmatmul.mubr.msk.f32.vlgmr.msra.gmra.mrb[0].mxu0 %vm555_vm2, %v9227_v43  ;;  %8209 = vmatmul.mubr.msk.f32.vlgmr.msra.gmra.mrb[0].mxu1 %vm555_vm2, %v9295_v54  ;;  %v9309_v40 = vpop.permute.xlu0 %2550  ;;  %v1737_v34 = vpop.permute.xlu1 %1736 }
 0x171   : > { %8196 = vmatpush1.msk.msra.mxu0 %vm559_vm1, %v8865_v6  ;;  %8214 = vmatpush1.msk.msra.mxu1 %vm559_vm1, %v1334_v17  ;;  %v1748_v37 = vsel %vm1740_vm5, %v1737_v34, %v9091_v60  ;;  %v1747_v17 = vsel %vm1740_vm5, %v9083_v58, %v1737_v34 }
 0x172   : > { %8204 = vmatprep.subr.msk.mxu0 %vm559_vm1, %v1329_v42  ;;  %8222 = vmatprep.subr.msk.mxu1 %vm559_vm1, %v1744_v41  ;;  %v1742_v42 = vsel %vm1740_vm5, %v9265_v47, %v9070_v55 }
 0x173   : > { %5834 = vrot.lane.b32.xlu0 %v8887_v28, %s8747_s29  ;;  %5424 = vrot.lane.b32.xlu1 %v9120_v4, %s8746_s28 }
 0x174   : > { %1159 = vmatprep.mubr.f32.mxu0 %v10322_v22  ;;  %1634 = vmatprep.mubr.f32.mxu1 %v10322_v22  ;;  %v9327_v6 = vpop.permute.xlu0 %2972  ;;  %v9329_v46 = vpop.permute.xlu1 %2137 }
 0x175   : > { %8197 = vmatmul.mubr.msk.f32.vlgmr.msra.gmra.mrb[2].mxu0 %vm555_vm2, %v9227_v43  ;;  %8215 = vmatmul.mubr.msk.f32.vlgmr.msra.gmra.mrb[2].mxu1 %vm555_vm2, %v9295_v54 }
 0x176   : > { %8205 = vmatpush1.msk.msra.mxu0 %vm559_vm1, %v1328_v35  ;;  %8223 = vmatpush1.msk.msra.mxu1 %vm559_vm1, %v1743_v18 }
 0x177   : > { %8210 = vmatprep.subr.msk.mxu0 %vm559_vm1, %v1333_v49  ;;  %5838 = vrot.lane.b32.xlu0 %v8889_v29, %s8747_s29  ;;  %v1745_v49 = vsel %vm1740_vm5, %v9076_v56, %v9287_v5  ;;  %v2155_v56 = vsel %vm2153_vm6, %v9329_v46, %v9103_v63 }
 0x178   : > { %5826 = vrot.lane.b32.xlu1 %v8879_v26, %s8747_s29  ;;  %8228 = vmatprep.subr.msk.mxu1 %vm559_vm1, %v1748_v37  ;;  %v9358_v43 = vpop.permute.xlu0 %2976  ;;  %v2142_v38 = vpop.permute.xlu1 %2141 }
 0x179   : > { %1421 = vmatprep.mubr.f32.mxu0 %v10322_v22  ;;  %1905 = vmatprep.mubr.f32.mxu1 %v10322_v22  ;;  %v2157_v34 = vsel %vm2153_vm6, %v2142_v38, %v9114_v2  ;;  %v2156_v55 = vsel %vm2153_vm6, %v9103_v63, %v2142_v38  ;;  %v2154_v63 = vsel %vm2153_vm6, %v9078_v57, %v9329_v46  ;;  %v9491_v57 = vld [vmem:[%s10308_s4 + $0x14] sm:$0xf] }
 0x17a   : > { %8206 = vmatmul.mubr.msk.f32.vlgmr.msra.gmra.mrb[0].mxu0 %vm555_vm2, %v9295_v54  ;;  %8224 = vmatmul.mubr.msk.f32.vlgmr.msra.gmra.mrb[0].mxu1 %vm555_vm2, %v9353_v21 }
 0x17b   : > { %8211 = vmatpush1.msk.msra.mxu0 %vm559_vm1, %v1332_v51  ;;  %8229 = vmatpush1.msk.msra.mxu1 %vm559_vm1, %v1747_v17 }
 0x17c   : > { %6238 = vrot.lane.b32.xlu0 %v8879_v26, %s8748_s11  ;;  %5828 = vrot.lane.b32.xlu1 %v9097_v62, %s8747_s29  ;;  %v9377_v48 = vpop.permute.xlu0 %3384  ;;  %v2150_v39 = vpop.permute.xlu1 %2149 }
 0x17d   : > { %1563 = vmatprep.mubr.f32.mxu0 %v10322_v22  ;;  %8490 = vmatprep.subr.mxu0 %v10322_v22  ;;  %v2160_v38 = vsel %vm2153_vm6, %v9085_v59, %v2150_v39 }
 0x17e   : > { %2047 = vmatprep.mubr.f32.mxu1 %v10322_v22  ;;  %8495 = vmatprep.subr.mxu1 %v10322_v22 }
 0x17f   : > { %8212 = vmatmul.mubr.msk.f32.vlgmr.msra.gmra.mrb[2].mxu0 %vm555_vm2, %v9295_v54  ;;  %8230 = vmatmul.mubr.msk.f32.vlgmr.msra.gmra.mrb[2].mxu1 %vm555_vm2, %v9353_v21 }
 0x180   : > { %8491 = vmatpush3.msk.msra.mxu0 %vm559_vm1, %v9059_v50  ;;  %8496 = vmatpush3.msk.msra.mxu1 %vm559_vm1, %v9091_v60  ;;  %v9396_v41 = vpop.permute.xlu0 %3388  ;;  %v2555_v35 = vpop.permute.xlu1 %2554  ;;  %v1741_v50 = vsel %vm1740_vm5, %v9068_v53, %v9265_v47  ;;  %v2161_v60 = vsel %vm2153_vm6, %v2150_v39, %v9130_v8  ;;  %v1746_v53 = vsel %vm1740_vm5, %v9287_v5, %v9083_v58  ;;  %v9434_v47 = vld [vmem:[%s10308_s4 + $0x10] sm:$0xf] }
 0x181   : > { %8219 = vmatprep.subr.msk.mxu0 %vm559_vm1, %v1742_v42  ;;  %6244 = vrot.lane.b32.xlu0 %v9109_v1, %s8748_s11  ;;  %v2570_v51 = vsel %vm2566_vm7, %v2555_v35, %v9146_v12  ;;  %v2569_v39 = vsel %vm2566_vm7, %v9093_v61, %v2555_v35  ;;  %v2158_v42 = vsel %vm2153_vm6, %v9114_v2, %v9285_v44 }
 0x182   : > { %5832 = vrot.lane.b32.xlu1 %v9109_v1, %s8747_s29  ;;  %8237 = vmatprep.subr.msk.mxu1 %vm559_vm1, %v2157_v34  ;;  %v2159_v34 = vsel %vm2153_vm6, %v9285_v44, %v9085_v59  ;;  %v2568_v44 = vsel %vm2566_vm7, %v9309_v40, %v9093_v61  ;;  %v2567_v61 = vsel %vm2566_vm7, %v9138_v10, %v9309_v40 }
 0x183   : > { %8492 = vmatprep.mubr.msk.f32.mxu0 %vm8753_vm4, %v10322_v22  ;;  %8497 = vmatprep.mubr.msk.f32.mxu1 %vm8753_vm4, %v10322_v22 }
 0x184   : > { %8493 = vmatmul.mubr.msk.f32.vlgmr.msra.gmra.mrb[6].mxu0 %vm555_vm2, %v9295_v54  ;;  %8498 = vmatmul.mubr.msk.f32.vlgmr.msra.gmra.mrb[6].mxu1 %vm555_vm2, %v9353_v21  ;;  %v9419_v18 = vpop.permute.xlu0 %3392  ;;  %v9421_v37 = vpop.permute.xlu1 %2558 }
 0x185   : > { %8220 = vmatpush1.msk.msra.mxu0 %vm559_vm1, %v1741_v50  ;;  %8238 = vmatpush1.msk.msra.mxu1 %vm559_vm1, %v2156_v55  ;;  %v2572_v40 = vsel %vm2566_vm7, %v9421_v37, %v9154_v14 }
 0x186   : > { %8225 = vmatprep.subr.msk.mxu0 %vm559_vm1, %v1746_v53  ;;  %6242 = vrot.lane.b32.xlu0 %v8881_v27, %s8748_s11 }
 0x187   : > { %5836 = vrot.lane.b32.xlu1 %v9120_v4, %s8747_s29  ;;  %8243 = vmatprep.subr.msk.mxu1 %vm559_vm1, %v2161_v60 }
 0x188   : > { %1834 = vmatprep.mubr.f32.mxu0 %v10322_v22  ;;  %2318 = vmatprep.mubr.f32.mxu1 %v10322_v22  ;;  %v9441_v58 = vpop.permute.xlu0 %3796  ;;  %v2563_v54 = vpop.permute.xlu1 %2562 }
 0x189   : > { %8221 = vmatmul.mubr.msk.f32.vlgmr.msra.gmra.mrb[0].mxu0 %vm555_vm2, %v9353_v21  ;;  %8239 = vmatmul.mubr.msk.f32.vlgmr.msra.gmra.mrb[0].mxu1 %vm555_vm2, %v9434_v47  ;;  %v2574_v59 = vsel %vm2566_vm7, %v2563_v54, %v9162_v16  ;;  %v2573_v35 = vsel %vm2566_vm7, %v9154_v14, %v2563_v54 }
 0x18a   : > { %8226 = vmatpush1.msk.msra.mxu0 %vm559_vm1, %v1745_v49  ;;  %8244 = vmatpush1.msk.msra.mxu1 %vm559_vm1, %v2160_v38  ;;  %v2571_v49 = vsel %vm2566_vm7, %v9146_v12, %v9421_v37  ;;  %v2990_v38 = vsel %vm2982_vm8, %v9358_v43, %v9199_v52  ;;  %v2989_v12 = vsel %vm2982_vm8, %v9116_v3, %v9358_v43 }
 0x18b   : > { %8234 = vmatprep.subr.msk.mxu0 %vm559_vm1, %v2155_v56  ;;  %6250 = vrot.lane.b32.xlu0 %v8889_v29, %s8748_s11  ;;  %v3402_v37 = vsel %vm3398_vm9, %v9377_v48, %v9140_v11  ;;  %v3401_v43 = vsel %vm3398_vm9, %v9213_v45, %v9377_v48  ;;  %v3406_v48 = vsel %vm3398_vm9, %v9419_v18, %v9156_v15 }
 0x18c   : > { %6236 = vrot.lane.b32.xlu1 %v9124_v7, %s8748_s11  ;;  %8252 = vmatprep.subr.msk.mxu1 %vm559_vm1, %v2570_v51  ;;  %v9465_v5 = vpop.permute.xlu0 %3794  ;;  %v9467_v17 = vpop.permute.xlu1 %2964 }
 0x18d   : > { %1976 = vmatprep.mubr.f32.mxu0 %v10322_v22  ;;  %2460 = vmatprep.mubr.f32.mxu1 %v10322_v22  ;;  %v2984_v51 = vsel %vm2982_vm8, %v9467_v17, %v9170_v20 }
 0x18e   : > { %8227 = vmatmul.mubr.msk.f32.vlgmr.msra.gmra.mrb[2].mxu0 %vm555_vm2, %v9353_v21  ;;  %8245 = vmatmul.mubr.msk.f32.vlgmr.msra.gmra.mrb[2].mxu1 %vm555_vm2, %v9434_v47 }
 0x18f   : > { %8235 = vmatpush1.msk.msra.mxu0 %vm559_vm1, %v2154_v63  ;;  %8253 = vmatpush1.msk.msra.mxu1 %vm559_vm1, %v2569_v39  ;;  %v2983_v63 = vsel %vm2982_vm8, %v9105_v0, %v9467_v17  ;;  %v2988_v39 = vsel %vm2982_vm8, %v9327_v6, %v9116_v3  ;;  %v9645_v17 = vld [vmem:[%s10308_s4 + $0x1c] sm:$0xf]  ;;  %v2987_v3 = vsel %vm2982_vm8, %v9182_v36, %v9327_v6 }
 0x190   : > { %8240 = vmatprep.subr.msk.mxu0 %vm559_vm1, %v2159_v34  ;;  %6649 = vrot.lane.b32.xlu0 %v9124_v7, %s8749_s12  ;;  %v9493_v46 = vpop.permute.xlu0 %3804  ;;  %v2969_v21 = vpop.permute.xlu1 %2968 }
 0x191   : > { %6234 = vrot.lane.b32.xlu1 %v8877_v23, %s8748_s11  ;;  %2247 = vmatprep.mubr.f32.mxu0 %v10322_v22  ;;  %v2985_v10 = vsel %vm2982_vm8, %v9170_v20, %v2969_v21 }
 0x192   : > { %2731 = vmatprep.mubr.f32.mxu1 %v10322_v22  ;;  %8236 = vmatmul.mubr.msk.f32.vlgmr.msra.gmra.mrb[0].mxu0 %vm555_vm2, %v9434_v47 }
 0x193   : > { %8241 = vmatpush1.msk.msra.mxu0 %vm559_vm1, %v2158_v42  ;;  %8254 = vmatmul.mubr.msk.f32.vlgmr.msra.gmra.mrb[0].mxu1 %vm555_vm2, %v9491_v57 }
 0x194   : > { %6647 = vrot.lane.b32.xlu0 %v8877_v23, %s8749_s12  ;;  %8258 = vmatprep.subr.msk.mxu1 %vm559_vm1, %v2574_v59  ;;  %v9514_v50 = vpop.permute.xlu0 %3802  ;;  %v9516_v2 = vpop.permute.xlu1 %2980 }
 0x195   : > { %6246 = vrot.lane.b32.xlu1 %v8887_v28, %s8748_s11  ;;  %2389 = vmatprep.mubr.f32.mxu0 %v10322_v22 }
 0x196   : > { %8500 = vmatprep.subr.mxu0 %v10322_v22  ;;  %8259 = vmatpush1.msk.msra.mxu1 %vm559_vm1, %v2573_v35 }
 0x197   : > { %2873 = vmatprep.mubr.f32.mxu1 %v10322_v22  ;;  %8242 = vmatmul.mubr.msk.f32.vlgmr.msra.gmra.mrb[2].mxu0 %vm555_vm2, %v9434_v47 }
 0x198   : > { %8501 = vmatpush3.msk.msra.mxu0 %vm559_vm1, %v9130_v8  ;;  %8260 = vmatmul.mubr.msk.f32.vlgmr.msra.gmra.mrb[2].mxu1 %vm555_vm2, %v9491_v57  ;;  %v9533_v55 = vpop.permute.xlu0 %3810  ;;  %v9535_v60 = vpop.permute.xlu1 %3380  ;;  %v2986_v8 = vsel %vm2982_vm8, %v2969_v21, %v9182_v36  ;;  %v9665_v21 = vcombine.high %v8889_v29, %v8889_v29 }
 0x199   : > { %8505 = vmatprep.subr.mxu1 %v10322_v22  ;;  %8249 = vmatprep.subr.msk.mxu0 %vm559_vm1, %v2568_v44  ;;  %v3400_v44 = vsel %vm3398_vm9, %v9535_v60, %v9213_v45  ;;  %v3399_v45 = vsel %vm3398_vm9, %v9132_v9, %v9535_v60 }
 0x19a   : > { %8506 = vmatpush3.msk.msra.mxu1 %vm559_vm1, %v9162_v16  ;;  %6655 = vrot.lane.b32.xlu0 %v8881_v27, %s8749_s12 }
 0x19b   : > { %6240 = vrot.lane.b32.xlu1 %v9097_v62, %s8748_s11  ;;  %8502 = vmatprep.mubr.msk.f32.mxu0 %vm8753_vm4, %v10322_v22 }
 0x19c   : > { %8507 = vmatprep.mubr.msk.f32.mxu1 %vm8753_vm4, %v10322_v22  ;;  %8503 = vmatmul.mubr.msk.f32.vlgmr.msra.gmra.mrb[8].mxu0 %vm555_vm2, %v9434_v47  ;;  %v9556_v16 = vpop.permute.xlu0 %3808  ;;  %v9558_v53 = vpop.permute.xlu1 %3396  ;;  %v9577_v47 = vld [vmem:[%s10308_s4 + $0x18] sm:$0xf] }
 0x19d   : > { %8250 = vmatpush1.msk.msra.mxu0 %vm559_vm1, %v2567_v61  ;;  %8508 = vmatmul.mubr.msk.f32.vlgmr.msra.gmra.mrb[8].mxu1 %vm555_vm2, %v9491_v57  ;;  %v3407_v35 = vsel %vm3398_vm9, %v9156_v15, %v9558_v53  ;;  %v3403_v53 = vsel %vm3398_vm9, %v9140_v11, %v9396_v41 }
 0x19e   : > { %8255 = vmatprep.subr.msk.mxu0 %vm559_vm1, %v2572_v40  ;;  %6659 = vrot.lane.b32.xlu0 %v8887_v28, %s8749_s12  ;;  %v3816_v40 = vsel %vm3814_vm10, %v9441_v58, %v9164_v19 }
 0x19f   : > { %6248 = vrot.lane.b32.xlu1 %v9120_v4, %s8748_s11  ;;  %8267 = vmatprep.subr.msk.mxu1 %vm559_vm1, %v2986_v8  ;;  %v3404_v8 = vsel %vm3398_vm9, %v9396_v41, %v9148_v13 }
 0x1a0   : > { %2660 = vmatprep.mubr.f32.mxu0 %v10322_v22  ;;  %8268 = vmatpush1.msk.msra.mxu1 %vm559_vm1, %v2985_v10  ;;  %v9581_v14 = vpop.permute.xlu0 %4224  ;;  %v9583_v54 = vpop.permute.xlu1 %3806  ;;  %v3822_v10 = vsel %vm3814_vm10, %v9556_v16, %v9533_v55 }
 0x1a1   : > { %3148 = vmatprep.mubr.f32.mxu1 %v10322_v22  ;;  %8251 = vmatmul.mubr.msk.f32.vlgmr.msra.gmra.mrb[0].mxu0 %vm555_vm2, %v9491_v57  ;;  %v3821_v11 = vsel %vm3814_vm10, %v9583_v54, %v9556_v16 }
 0x1a2   : > { %8256 = vmatpush1.msk.msra.mxu0 %vm559_vm1, %v2571_v49  ;;  %8269 = vmatmul.mubr.msk.f32.vlgmr.msra.gmra.mrb[0].mxu1 %vm555_vm2, %v9577_v47  ;;  %v3820_v49 = vsel %vm3814_vm10, %v9493_v46, %v9583_v54 }
 0x1a3   : > { %8273 = vmatprep.subr.msk.mxu1 %vm559_vm1, %v2990_v38  ;;  %8264 = vmatprep.subr.msk.mxu0 %vm559_vm1, %v2984_v51 }
 0x1a4   : > { %8274 = vmatpush1.msk.msra.mxu1 %vm559_vm1, %v2989_v12  ;;  %6663 = vrot.lane.b32.xlu0 %v8889_v29, %s8749_s12  ;;  %v9611_v56 = vpop.permute.xlu0 %4226  ;;  %v3801_v20 = vpop.permute.xlu1 %3800 }
 0x1a5   : > { %6651 = vrot.lane.b32.xlu1 %v8879_v26, %s8749_s12  ;;  %8282 = vmatprep.subr.msk.mxu1 %vm559_vm1, %v3402_v37  ;;  %v3817_v61 = vsel %vm3814_vm10, %v9164_v19, %v3801_v20  ;;  %v3815_v19 = vsel %vm3814_vm10, %v9465_v5, %v9441_v58  ;;  %v3819_v5 = vsel %vm3814_vm10, %v9514_v50, %v9493_v46 }
 0x1a6   : > { %2802 = vmatprep.mubr.f32.mxu0 %v10322_v22  ;;  %3290 = vmatprep.mubr.f32.mxu1 %v10322_v22  ;;  %v4240_v12 = vsel %vm546_vm0, %v9581_v14, %v9611_v56 }
 0x1a7   : > { %8257 = vmatmul.mubr.msk.f32.vlgmr.msra.gmra.mrb[2].mxu0 %vm555_vm2, %v9491_v57  ;;  %8275 = vmatmul.mubr.msk.f32.vlgmr.msra.gmra.mrb[2].mxu1 %vm555_vm2, %v9577_v47  ;;  %v3405_v57 = vsel %vm3398_vm9, %v9148_v13, %v9419_v18  ;;  %v2991_v18 = vsel %vm2982_vm8, %v9199_v52, %v9516_v2  ;;  %v3818_v2 = vsel %vm3814_vm10, %v3801_v20, %v9514_v50  ;;  %v8293_v13 = vld [vmem:[%s10308_s4 + $0x20] sm:$0xf]  ;;  %v8308_v50 = vld [vmem:[%s10309_s5 + $0x4] sm:$0xf] }
 0x1a8   : > { %8265 = vmatpush1.msk.msra.mxu0 %vm559_vm1, %v2983_v63  ;;  %8283 = vmatpush1.msk.msra.mxu1 %vm559_vm1, %v3401_v43  ;;  %v9636_v34 = vpop.permute.xlu0 %4230  ;;  %v9638_v0 = vpop.permute.xlu1 %3812 }
 0x1a9   : > { %8270 = vmatprep.subr.msk.mxu0 %vm559_vm1, %v2988_v39  ;;  %8288 = vmatprep.subr.msk.mxu1 %vm559_vm1, %v3406_v48  ;;  %v3823_v46 = vsel %vm3814_vm10, %v9533_v55, %v9638_v0 }
 0x1aa   : > { %7066 = vrot.lane.b32.xlu0 %v8879_v26, %s8750_s13  ;;  %6653 = vrot.lane.b32.xlu1 %v9097_v62, %s8749_s12 }
 0x1ab   : > { %3077 = vmatprep.mubr.f32.mxu0 %v10322_v22  ;;  %3564 = vmatprep.mubr.f32.mxu1 %v10322_v22 }
 0x1ac   : > { %8266 = vmatmul.mubr.msk.f32.vlgmr.msra.gmra.mrb[0].mxu0 %vm555_vm2, %v9577_v47  ;;  %8284 = vmatmul.mubr.msk.f32.vlgmr.msra.gmra.mrb[0].mxu1 %vm555_vm2, %v9645_v17  ;;  %v9667_v59 = vpop.permute.xlu0 %4234  ;;  %v9669_v42 = vpop.permute.xlu1 %4222 }
 0x1ad   : > { %8271 = vmatpush1.msk.msra.mxu0 %vm559_vm1, %v2987_v3  ;;  %8289 = vmatpush1.msk.msra.mxu1 %vm559_vm1, %v3405_v57  ;;  %v4239_v37 = vsel %vm546_vm0, %v9669_v42, %v9581_v14  ;;  %v4208_v57 = vld [vmem:[%s10309_s5] sm:$0xf] }
 0x1ae   : > { %6665 = vrot.lane.b32.xlu0 %v9665_v21, %s8749_s12  ;;  %6657 = vrot.lane.b32.xlu1 %v9109_v1, %s8749_s12 }
 0x1af   : > { %3219 = vmatprep.mubr.f32.mxu0 %v10322_v22  ;;  %8510 = vmatprep.subr.mxu0 %v10322_v22 }
 0x1b0   : > { %3706 = vmatprep.mubr.f32.mxu1 %v10322_v22  ;;  %8515 = vmatprep.subr.mxu1 %v10322_v22  ;;  %v9681_v36 = vpop.permute.xlu0 %5000  ;;  %v9683_v6 = vpop.permute.xlu1 %4220 }
 0x1b1   : > { %8272 = vmatmul.mubr.msk.f32.vlgmr.msra.gmra.mrb[2].mxu0 %vm555_vm2, %v9577_v47  ;;  %8290 = vmatmul.mubr.msk.f32.vlgmr.msra.gmra.mrb[2].mxu1 %vm555_vm2, %v9645_v17  ;;  %v4238_v43 = vsel %vm546_vm0, %v9683_v6, %v9669_v42 }
 0x1b2   : > { %8511 = vmatpush3.msk.msra.mxu0 %vm559_vm1, %v2991_v18  ;;  %8516 = vmatpush3.msk.msra.mxu1 %vm559_vm1, %v3407_v35 }
 0x1b3   : > { %8279 = vmatprep.subr.msk.mxu0 %vm559_vm1, %v3400_v44  ;;  %7074 = vrot.lane.b32.xlu0 %v8887_v28, %s8750_s13 }
 0x1b4   : > { %6661 = vrot.lane.b32.xlu1 %v9120_v4, %s8749_s12  ;;  %8512 = vmatprep.mubr.msk.f32.mxu0 %vm8753_vm4, %v10322_v22  ;;  %v9707_v15 = vpop.permute.xlu0 %4998  ;;  %v9709_v52 = vpop.permute.xlu1 %4228 }
 0x1b5   : > { %8513 = vmatmul.mubr.msk.f32.vlgmr.msra.gmra.mrb[10].mxu0 %vm555_vm2, %v9577_v47  ;;  %8517 = vmatprep.mubr.msk.f32.mxu1 %vm8753_vm4, %v10322_v22  ;;  %v4241_v16 = vsel %vm546_vm0, %v9611_v56, %v9709_v52  ;;  %v4242_v0 = vsel %vm546_vm0, %v9709_v52, %v9636_v34  ;;  %v5016_v42 = vsel %vm1327_vm3, %v9707_v15, %v9681_v36 }
 0x1b6   : > { %8280 = vmatpush1.msk.msra.mxu0 %vm559_vm1, %v3399_v45  ;;  %8518 = vmatmul.mubr.msk.f32.vlgmr.msra.gmra.mrb[10].mxu1 %vm555_vm2, %v9645_v17 }
 0x1b7   : > { %8285 = vmatprep.subr.msk.mxu0 %vm559_vm1, %v3404_v8  ;;  %7068 = vrot.lane.b32.xlu0 %v9097_v62, %s8750_s13 }
 0x1b8   : > { %7064 = vrot.lane.b32.xlu1 %v9124_v7, %s8750_s13  ;;  %8297 = vmatprep.subr.msk.mxu1 %vm559_vm1, %v3818_v2  ;;  %v9734_v9 = vpop.permute.xlu0 %5006  ;;  %v9736_v60 = vpop.permute.xlu1 %4232 }
 0x1b9   : > { %3493 = vmatprep.mubr.f32.mxu0 %v10322_v22  ;;  %8298 = vmatpush1.msk.msra.mxu1 %vm559_vm1, %v3817_v61  ;;  %v4243_v14 = vsel %vm546_vm0, %v9636_v34, %v9736_v60  ;;  %v4244_v48 = vsel %vm546_vm0, %v9736_v60, %v9667_v59  ;;  %v7899_v34 = vld [vmem:[%s10310_s6] sm:$0xf] }
 0x1ba   : > { %8281 = vmatmul.mubr.msk.f32.vlgmr.msra.gmra.mrb[0].mxu0 %vm555_vm2, %v9645_v17  ;;  %3980 = vmatprep.mubr.f32.mxu1 %v10322_v22 }
 0x1bb   : > { %8286 = vmatpush1.msk.msra.mxu0 %vm559_vm1, %v3403_v53  ;;  %8303 = vmatprep.subr.msk.mxu1 %vm559_vm1, %v3822_v10 }
 0x1bc   : > { %8294 = vmatprep.subr.msk.mxu0 %vm559_vm1, %v3816_v40  ;;  %8299 = vmatmul.mubr.msk.f32.vlgmr.msra.gmra.mrb[0].mxu1 %vm555_vm2, %v8293_v13  ;;  %v9762_v41 = vpop.permute.xlu0 %5010  ;;  %v9764_v47 = vpop.permute.xlu1 %4236 }
 0x1bd   : > { %8304 = vmatpush1.msk.msra.mxu1 %vm559_vm1, %v3821_v11  ;;  %7080 = vrot.lane.b32.xlu0 %v9665_v21, %s8750_s13  ;;  %v4245_v55 = vsel %vm546_vm0, %v9667_v59, %v9764_v47  ;;  %vm7948_vm0 = vcmask 285696  }
 0x1be   : > { %7062 = vrot.lane.b32.xlu1 %v8877_v23, %s8750_s13  ;;  %3635 = vmatprep.mubr.f32.mxu0 %v10322_v22 }
 0x1bf   : > { %8287 = vmatmul.mubr.msk.f32.vlgmr.msra.gmra.mrb[2].mxu0 %vm555_vm2, %v9645_v17  ;;  %4122 = vmatprep.mubr.f32.mxu1 %v10322_v22 }
 0x1c0   : > { %8295 = vmatpush1.msk.msra.mxu0 %vm559_vm1, %v3815_v19  ;;  %3909 = vmatprep.mubr.f32.mxu0 %v10322_v22  ;;  %v9786_v38 = vpop.permute.xlu0 %5014  ;;  %v9788_v58 = vpop.permute.xlu1 %5002 }
 0x1c1   : > { %8300 = vmatprep.subr.msk.mxu0 %vm559_vm1, %v3820_v49  ;;  %7479 = vrot.lane.b32.xlu0 %v9124_v7, %s8752_s18 }
 0x1c2   : > { %7072 = vrot.lane.b32.xlu1 %v9109_v1, %s8750_s13  ;;  %8312 = vmatprep.subr.msk.mxu1 %vm559_vm1, %v4241_v16 }
 0x1c3   : > { %8296 = vmatmul.mubr.msk.f32.vlgmr.msra.gmra.mrb[0].mxu0 %vm555_vm2, %v8293_v13  ;;  %8305 = vmatmul.mubr.msk.f32.vlgmr.msra.gmra.mrb[2].mxu1 %vm555_vm2, %v8293_v13 }
 0x1c4   : > { %8301 = vmatpush1.msk.msra.mxu0 %vm559_vm1, %v3819_v5  ;;  %4051 = vmatprep.mubr.f32.mxu0 %v10322_v22  ;;  %v9803_v54 = vpop.permute.xlu0 %5414  ;;  %v9805_v51 = vpop.permute.xlu1 %5004 }
 0x1c5   : > { %7477 = vrot.lane.b32.xlu0 %v8877_v23, %s8752_s18  ;;  %8520 = vmatprep.subr.mxu0 %v10322_v22 }
 0x1c6   : > { %7070 = vrot.lane.b32.xlu1 %v8881_v27, %s8750_s13  ;;  %8313 = vmatpush1.msk.msra.mxu1 %vm559_vm1, %v4240_v12 }
 0x1c7   : > { %8302 = vmatmul.mubr.msk.f32.vlgmr.msra.gmra.mrb[2].mxu0 %vm555_vm2, %v8293_v13  ;;  %4402 = vmatprep.mubr.f32.mxu1 %v10322_v22 }
 0x1c8   : > { %8521 = vmatpush3.msk.msra.mxu0 %vm559_vm1, %v3823_v46  ;;  %8522 = vmatprep.mubr.msk.f32.mxu0 %vm8753_vm4, %v10322_v22  ;;  %v9833_v56 = vpop.permute.xlu0 %5420  ;;  %v9835_v20 = vpop.permute.xlu1 %5008 }
 0x1c9   : > { %8309 = vmatprep.subr.msk.mxu0 %vm559_vm1, %v4239_v37  ;;  %7485 = vrot.lane.b32.xlu0 %v8881_v27, %s8752_s18  ;;  %v5021_v6 = vsel %vm1327_vm3, %v9835_v20, %v9762_v41  ;;  %v5020_v35 = vsel %vm1327_vm3, %v9734_v9, %v9835_v20  ;;  %v8382_v20 = vld [vmem:[%s10309_s5 + $0x14] sm:$0xf] }
 0x1ca   : > { %7078 = vrot.lane.b32.xlu1 %v8889_v29, %s8750_s13  ;;  %8314 = vmatmul.mubr.msk.f32.vlgmr.msra.gmra.mrb[0].mxu1 %vm555_vm2, %v8308_v50 }
 0x1cb   : > { %8523 = vmatmul.mubr.msk.f32.vlgmr.msra.gmra.mrb[12].mxu0 %vm555_vm2, %v8293_v13  ;;  %8318 = vmatprep.subr.msk.mxu1 %vm559_vm1, %v4245_v55 }
 0x1cc   : > { %8310 = vmatpush1.msk.msra.mxu0 %vm559_vm1, %v4238_v43  ;;  %4331 = vmatprep.mubr.f32.mxu0 %v10322_v22  ;;  %v9853_v63 = vpop.permute.xlu0 %5418  ;;  %v9855_v39 = vpop.permute.xlu1 %5012 }
 0x1cd   : > { %7489 = vrot.lane.b32.xlu0 %v8887_v28, %s8752_s18  ;;  %8315 = vmatprep.subr.msk.mxu0 %vm559_vm1, %v4243_v14  ;;  %v5432_v60 = vsel %vm1740_vm5, %v9853_v63, %v9833_v56 }
 0x1ce   : > { %7076 = vrot.lane.b32.xlu1 %v9120_v4, %s8750_s13  ;;  %8319 = vmatpush1.msk.msra.mxu1 %vm559_vm1, %v4244_v48  ;;  %s8754_s13 = smov 35  }
 0x1cf   : > { %8311 = vmatmul.mubr.msk.f32.vlgmr.msra.gmra.mrb[0].mxu0 %vm555_vm2, %v8308_v50  ;;  %4544 = vmatprep.mubr.f32.mxu1 %v10322_v22 }
 0x1d0   : > { %8316 = vmatpush1.msk.msra.mxu0 %vm559_vm1, %v4242_v0  ;;  %4473 = vmatprep.mubr.f32.mxu0 %v10322_v22  ;;  %v9873_v17 = vpop.permute.xlu0 %5426  ;;  %v9889_v22 = vld [vmem:[%s8945_s17] sm:$0xff] }
 0x1d1   : > { %8323 = vmatprep.subr.msk.mxu0 %vm559_vm1, %v9124_v7  ;;  %7493 = vrot.lane.b32.xlu0 %v8889_v29, %s8752_s18  ;;  %v9879_v3 = vpop.permute.xlu1 %5412  ;;  %v10325_v0 = vld [vmem:[#allocation2_spill] sm:$0xff]  ;;  %7920 = vst.msk [vmem:[%s8945_s17 + $0x20] sm:$0xff] %vm7919_vm13, %v9889_v22 }
 0x1d2   : > { %7481 = vrot.lane.b32.xlu1 %v8879_v26, %s8752_s18  ;;  %8320 = vmatmul.mubr.msk.f32.vlgmr.msra.gmra.mrb[2].mxu1 %vm555_vm2, %v8308_v50  ;;  %v5429_v18 = vsel %vm1740_vm5, %v9879_v3, %v9803_v54 }
 0x1d3   : > { %8317 = vmatmul.mubr.msk.f32.vlgmr.msra.gmra.mrb[2].mxu0 %vm555_vm2, %v8308_v50  ;;  %8525 = vmatprep.subr.mxu1 %v9889_v22 }
 0x1d4   : > { %8324 = vmatpush1.msk.msra.mxu0 %vm559_vm1, %v8877_v23  ;;  %8526 = vmatpush3.msk.msra.mxu1 %vm559_vm1, %v9764_v47  ;;  %v9896_v7 = vpop.permute.xlu0 %5824 }
 0x1d5   : > { %8329 = vmatprep.subr.msk.mxu0 %vm559_vm1, %v9109_v1  ;;  %7902 = vperm.xlu0 %8730, %v7899_v34   ;;  %v5411_v59 = vpop.permute.xlu1 %5410 }
 0x1d6   : > { %7483 = vrot.lane.b32.xlu1 %v9097_v62, %s8752_s18  ;;  %8326 = vmatprep.subr.msk.mxu1 %vm559_vm1, %v9097_v62  ;;  %v5428_v52 = vsel %vm1740_vm5, %v5411_v59, %v9879_v3 }
 0x1d7   : > { %8527 = vmatprep.mubr.msk.f32.mxu1 %vm8753_vm4, %v9889_v22  ;;  %4706 = vmatprep.mubr.f32.mxu0 %v9889_v22 }
 0x1d8   : > { %8528 = vmatmul.mubr.msk.f32.vlgmr.msra.gmra.mrb[12].mxu1 %vm555_vm2, %v8308_v50  ;;  %8325 = vmatmul.mubr.msk.f32.vlgmr.msra.gmra.mrb[0].mxu0 %vm555_vm2, %v4208_v57 }
 0x1d9   : > { %8327 = vmatpush1.msk.msra.mxu1 %vm559_vm1, %v8879_v26  ;;  %8330 = vmatpush1.msk.msra.mxu0 %vm559_vm1, %v8881_v27  ;;  %v5019_v26 = vsel %vm1327_vm3, %v9805_v51, %v9734_v9  ;;  %v5017_v27 = vsel %vm1327_vm3, %v9681_v36, %v9788_v58  ;;  %v8337_v36 = vld [vmem:[%s10309_s5 + $0x8] sm:$0xf]  ;;  %v8352_v9 = vld [vmem:[%s10309_s5 + $0xc] sm:$0xf] }
 0x1da   : > { %8332 = vmatprep.subr.msk.mxu1 %vm559_vm1, %v9120_v4  ;;  %7487 = vrot.lane.b32.xlu1 %v9109_v1, %s8752_s18  ;;  %v9920_v23 = vpop.permute.xlu0 %5822 }
 0x1db   : > { %4777 = vmatprep.mubr.f32.mxu1 %v9889_v22  ;;  %4848 = vmatprep.mubr.f32.mxu0 %v9889_v22  ;;  %v9924_v62 = vpop.permute.xlu1 %5422 }
 0x1dc   : > { %8530 = vmatprep.subr.mxu0 %v9889_v22  ;;  %8328 = vmatmul.mubr.msk.f32.vlgmr.msra.gmra.mrb[0].mxu1 %vm555_vm2, %v4208_v57  ;;  %v5433_v45 = vsel %vm1740_vm5, %v9833_v56, %v9924_v62 }
 0x1dd   : > { %8331 = vmatmul.mubr.msk.f32.vlgmr.msra.gmra.mrb[2].mxu0 %vm555_vm2, %v4208_v57  ;;  %8333 = vmatpush1.msk.msra.mxu1 %vm559_vm1, %v8887_v28 }
 0x1de   : > { %8531 = vmatpush3.msk.msra.mxu0 %vm559_vm1, %v8889_v29  ;;  %8341 = vmatprep.subr.msk.mxu1 %vm559_vm1, %v5019_v26  ;;  %v5018_v29 = vsel %vm1327_vm3, %v9788_v58, %v9805_v51  ;;  %v8367_v58 = vld [vmem:[%s10309_s5 + $0x10] sm:$0xf] }
 0x1df   : > { %8338 = vmatprep.subr.msk.mxu0 %vm559_vm1, %v5017_v27  ;;  %7491 = vrot.lane.b32.xlu1 %v9120_v4, %s8752_s18  ;;  %v5023_v4 = vsel %vm1327_vm3, %v9855_v39, %v9786_v38  ;;  %v8397_v27 = vld [vmem:[%s10309_s5 + $0x18] sm:$0xf] }
 0x1e0   : > { %4919 = vmatprep.mubr.f32.mxu1 %v9889_v22  ;;  %8532 = vmatprep.mubr.msk.f32.mxu0 %vm8753_vm4, %v9889_v22  ;;  %v9946_v28 = vpop.permute.xlu0 %5830  ;;  %v5417_v1 = vpop.permute.xlu1 %5416 }
 0x1e1   : > { %8334 = vmatmul.mubr.msk.f32.vlgmr.msra.gmra.mrb[2].mxu1 %vm555_vm2, %v4208_v57  ;;  %8533 = vmatmul.mubr.msk.f32.vlgmr.msra.gmra.mrb[14].mxu0 %vm555_vm2, %v4208_v57  ;;  %v5431_v61 = vsel %vm1740_vm5, %v5417_v1, %v9853_v63 }
 0x1e2   : > { %8339 = vmatpush1.msk.msra.mxu0 %vm559_vm1, %v5016_v42  ;;  %8342 = vmatpush1.msk.msra.mxu1 %vm559_vm1, %v5018_v29 }
 0x1e3   : > { %8344 = vmatprep.subr.msk.mxu0 %vm559_vm1, %v5021_v6  ;;  %7495 = vrot.lane.b32.xlu1 %v9665_v21, %s8752_s18  ;;  %v5022_v21 = vsel %vm1327_vm3, %v9762_v41, %v9855_v39  ;;  %v10323_v39 = vld [vmem:[#allocation3_spill] sm:$0xff]  ;;  %vm8035_vm3 = vcmask 3072  }
 0x1e4   : > { %8347 = vmatprep.subr.msk.mxu1 %vm559_vm1, %v5023_v4  ;;  %5109 = vmatprep.mubr.f32.mxu0 %v9889_v22 }
 0x1e5   : > { %5180 = vmatprep.mubr.f32.mxu1 %v9889_v22  ;;  %8340 = vmatmul.mubr.msk.f32.vlgmr.msra.gmra.mrb[0].mxu0 %vm555_vm2, %v8337_v36  ;;  %v9980_v44 = vpop.permute.xlu0 %5834  ;;  %v5425_v15 = vpop.permute.xlu1 %5424 }
 0x1e6   : > { %8343 = vmatmul.mubr.msk.f32.vlgmr.msra.gmra.mrb[0].mxu1 %vm555_vm2, %v8337_v36  ;;  %8345 = vmatpush1.msk.msra.mxu0 %vm559_vm1, %v5020_v35  ;;  %v5435_v13 = vsel %vm1740_vm5, %v5425_v15, %v9873_v17  ;;  %v5434_v40 = vsel %vm1740_vm5, %v9924_v62, %v5425_v15 }
 0x1e7   : > { %8348 = vmatpush1.msk.msra.mxu1 %vm559_vm1, %v5022_v21  ;;  %8353 = vmatprep.subr.msk.mxu0 %vm559_vm1, %v5429_v18 }
 0x1e8   : > { %5322 = vmatprep.mubr.f32.mxu1 %v9889_v22  ;;  %8535 = vmatprep.subr.mxu1 %v9889_v22 }
 0x1e9   : > { %5251 = vmatprep.mubr.f32.mxu0 %v9889_v22  ;;  %v9997_v2 = vpop.permute.xlu0 %5838  ;;  %7971 = vrot.lane.b32.xlu1 %v8842_v32, %s8747_s29  ;;  %v5430_v32 = vsel %vm1740_vm5, %v9803_v54, %v5417_v1  ;;  %vm7969_vm5 = vcmask 789504  }
 0x1ea   : > { %8349 = vmatmul.mubr.msk.f32.vlgmr.msra.gmra.mrb[2].mxu1 %vm555_vm2, %v8337_v36  ;;  %8346 = vmatmul.mubr.msk.f32.vlgmr.msra.gmra.mrb[2].mxu0 %vm555_vm2, %v8337_v36  ;;  %v5827_v8 = vpop.permute.xlu1 %5826 }
 0x1eb   : > { %8536 = vmatpush3.msk.msra.mxu1 %vm559_vm1, %v9786_v38  ;;  %8354 = vmatpush1.msk.msra.mxu0 %vm559_vm1, %v5428_v52  ;;  %v5841_v11 = vsel %vm2153_vm6, %v9896_v7, %v5827_v8  ;;  %v5840_v38 = vsel %vm2153_vm6, %v9920_v23, %v9896_v7 }
 0x1ec   : > { %5521 = vmatprep.mubr.f32.mxu0 %v9889_v22  ;;  %8359 = vmatprep.subr.msk.mxu0 %vm559_vm1, %v5433_v45 }
 0x1ed   : > { %8537 = vmatprep.mubr.msk.f32.mxu1 %vm8753_vm4, %v9889_v22  ;;  %8356 = vmatprep.subr.msk.mxu1 %vm559_vm1, %v5431_v61 }
 0x1ee   : > { %8355 = vmatmul.mubr.msk.f32.vlgmr.msra.gmra.mrb[0].mxu0 %vm555_vm2, %v8352_v9  ;;  %8538 = vmatmul.mubr.msk.f32.vlgmr.msra.gmra.mrb[14].mxu1 %vm555_vm2, %v8337_v36  ;;  %v10025_v53 = vpop.permute.xlu0 %6238  ;;  %v5829_v10 = vpop.permute.xlu1 %5828 }
 0x1ef   : > { %8360 = vmatpush1.msk.msra.mxu0 %vm559_vm1, %v5432_v60  ;;  %5663 = vmatprep.mubr.f32.mxu0 %v9889_v22  ;;  %v5843_v41 = vsel %vm2153_vm6, %v5829_v10, %v9946_v28  ;;  %v5842_v19 = vsel %vm2153_vm6, %v5827_v8, %v5829_v10 }
 0x1f0   : > { %8540 = vmatprep.subr.mxu0 %v9889_v22  ;;  %8357 = vmatpush1.msk.msra.mxu1 %vm559_vm1, %v5430_v32  ;;  %v8412_v32 = vld [vmem:[%s10309_s5 + $0x1c] sm:$0xf] }
 0x1f1   : > { %5592 = vmatprep.mubr.f32.mxu1 %v9889_v22  ;;  %8362 = vmatprep.subr.msk.mxu1 %vm559_vm1, %v5435_v13 }
 0x1f2   : > { %8361 = vmatmul.mubr.msk.f32.vlgmr.msra.gmra.mrb[2].mxu0 %vm555_vm2, %v8352_v9  ;;  %8358 = vmatmul.mubr.msk.f32.vlgmr.msra.gmra.mrb[0].mxu1 %vm555_vm2, %v8352_v9 }
 0x1f3   : > { %8541 = vmatpush3.msk.msra.mxu0 %vm559_vm1, %v9873_v17  ;;  %8363 = vmatpush1.msk.msra.mxu1 %vm559_vm1, %v5434_v40  ;;  %v6245_v47 = vpop.permute.xlu0 %6244 }
 0x1f4   : > { %8542 = vmatprep.mubr.msk.f32.mxu0 %vm8753_vm4, %v9889_v22  ;;  %8368 = vmatprep.subr.msk.mxu0 %vm559_vm1, %v5841_v11  ;;  %v5833_v16 = vpop.permute.xlu1 %5832 }
 0x1f5   : > { %5734 = vmatprep.mubr.f32.mxu1 %v9889_v22  ;;  %8371 = vmatprep.subr.msk.mxu1 %vm559_vm1, %v5843_v41  ;;  %v5845_v49 = vsel %vm2153_vm6, %v5833_v16, %v9980_v44  ;;  %v5844_v5 = vsel %vm2153_vm6, %v9946_v28, %v5833_v16 }
 0x1f6   : > { %8543 = vmatmul.mubr.msk.f32.vlgmr.msra.gmra.mrb[16].mxu0 %vm555_vm2, %v8352_v9  ;;  %8364 = vmatmul.mubr.msk.f32.vlgmr.msra.gmra.mrb[2].mxu1 %vm555_vm2, %v8352_v9 }
 0x1f7   : > { %8369 = vmatpush1.msk.msra.mxu0 %vm559_vm1, %v5840_v38  ;;  %8372 = vmatpush1.msk.msra.mxu1 %vm559_vm1, %v5842_v19 }
 0x1f8   : > { %5933 = vmatprep.mubr.f32.mxu0 %v9889_v22  ;;  %8374 = vmatprep.subr.msk.mxu0 %vm559_vm1, %v5845_v49  ;;  %v6243_v54 = vpop.permute.xlu0 %6242 }
 0x1f9   : > { %6004 = vmatprep.mubr.f32.mxu1 %v9889_v22  ;;  %v5837_v51 = vpop.permute.xlu1 %5836  ;;  %7973 = vrot.lane.b32.xlu0 %v8844_v33, %s8747_s29  ;;  %v6256_v63 = vsel %vm2566_vm7, %v6243_v54, %v6245_v47 }
 0x1fa   : > { %8370 = vmatmul.mubr.msk.f32.vlgmr.msra.gmra.mrb[0].mxu0 %vm555_vm2, %v8367_v58  ;;  %v5846_v12 = vsel %vm2153_vm6, %v9980_v44, %v5837_v51  ;;  %v5847_v46 = vsel %vm2153_vm6, %v5837_v51, %v9997_v2  ;;  %8373 = vmatmul.mubr.msk.f32.vlgmr.msra.gmra.mrb[0].mxu1 %vm555_vm2, %v8367_v58 }
 0x1fb   : > { %8375 = vmatpush1.msk.msra.mxu0 %vm559_vm1, %v5844_v5  ;;  %8377 = vmatprep.subr.msk.mxu1 %vm559_vm1, %v5847_v46 }
 0x1fc   : > { %8378 = vmatpush1.msk.msra.mxu1 %vm559_vm1, %v5846_v12  ;;  %6146 = vmatprep.mubr.f32.mxu1 %v9889_v22 }
 0x1fd   : > { %v6251_v50 = vpop.permute.xlu0 %6250  ;;  %8545 = vmatprep.subr.mxu1 %v9889_v22  ;;  %6075 = vmatprep.mubr.f32.mxu0 %v9889_v22 }
 0x1fe   : > { %v6237_v33 = vpop.permute.xlu1 %6236  ;;  %8379 = vmatmul.mubr.msk.f32.vlgmr.msra.gmra.mrb[2].mxu1 %vm555_vm2, %v8367_v58  ;;  %8376 = vmatmul.mubr.msk.f32.vlgmr.msra.gmra.mrb[2].mxu0 %vm555_vm2, %v8367_v58 }
 0x1ff   : > { %v6253_v37 = vsel %vm2566_vm7, %v6237_v33, %v10025_v53  ;;  %8546 = vmatpush3.msk.msra.mxu1 %vm559_vm1, %v9997_v2  ;;  %8547 = vmatprep.mubr.msk.f32.mxu1 %vm8753_vm4, %v9889_v22 }
 0x200   : > { %8383 = vmatprep.subr.msk.mxu0 %vm559_vm1, %v6253_v37  ;;  %6345 = vmatprep.mubr.f32.mxu0 %v9889_v22 }
 0x201   : > { %7975 = vrot.lane.b32.xlu1 %v8834_v24, %s8747_s29  ;;  %7977 = vrot.lane.b32.xlu0 %v8836_v25, %s8747_s29 }
 0x202   : > { %v6650_v55 = vpop.permute.xlu0 %6649  ;;  %8548 = vmatmul.mubr.msk.f32.vlgmr.msra.gmra.mrb[16].mxu1 %vm555_vm2, %v8367_v58 }
 0x203   : > { %v6235_v56 = vpop.permute.xlu1 %6234  ;;  %6416 = vmatprep.mubr.f32.mxu1 %v9889_v22 }
 0x204   : > { %v6252_v14 = vsel %vm2566_vm7, %v6235_v56, %v6237_v33 }
 0x205   : > { %8384 = vmatpush1.msk.msra.mxu0 %vm559_vm1, %v6252_v14  ;;  %7979 = vrot.lane.b32.xlu1 %v8838_v30, %s8747_s29  ;;  %v10324_v30 = vld [vmem:[#allocation4_spill] sm:$0xff] }
 0x206   : > { %v6648_v24 = vpop.permute.xlu0 %6647  ;;  %8385 = vmatmul.mubr.msk.f32.vlgmr.msra.gmra.mrb[0].mxu0 %vm555_vm2, %v8382_v20  ;;  %7981 = vrot.lane.b32.xlu0 %v8840_v31, %s8747_s29 }
 0x207   : > { %v6247_v25 = vpop.permute.xlu1 %6246  ;;  %6487 = vmatprep.mubr.f32.mxu0 %v9889_v22  ;;  %v6667_v28 = vsel %vm2982_vm8, %v6648_v24, %v6650_v55 }
 0x208   : > { %v6257_v43 = vsel %vm2566_vm7, %v6245_v47, %v6247_v25 }
 0x209   : > { %8389 = vmatprep.subr.msk.mxu0 %vm559_vm1, %v6257_v43  ;;  %7983 = vrot.lane.b32.xlu1 %v10323_v39, %s8747_s29 }
 0x20a   : > { %8390 = vmatpush1.msk.msra.mxu0 %vm559_vm1, %v6256_v63  ;;  %7985 = vrot.lane.b32.xlu0 %v10324_v30, %s8747_s29 }
 0x20b   : > { %8391 = vmatmul.mubr.msk.f32.vlgmr.msra.gmra.mrb[2].mxu0 %vm555_vm2, %v8382_v20  ;;  %8550 = vmatprep.subr.mxu0 %v9889_v22 }
 0x20c   : > { %v6656_v31 = vpop.permute.xlu0 %6655  ;;  %8551 = vmatpush3.msk.msra.mxu0 %vm559_vm1, %v6251_v50  ;;  %8552 = vmatprep.mubr.msk.f32.mxu0 %vm8753_vm4, %v9889_v22 }
 0x20d   : > { %v6241_v48 = vpop.permute.xlu1 %6240  ;;  %7987 = vrot.lane.b32.xlu1 %v10325_v0, %s8747_s29 }
 0x20e   : > { %v6254_v17 = vsel %vm2566_vm7, %v10025_v53, %v6241_v48  ;;  %v6255_v3 = vsel %vm2566_vm7, %v6241_v48, %v6243_v54 }
 0x20f   : > { %8386 = vmatprep.subr.msk.mxu1 %vm559_vm1, %v6255_v3  ;;  %8553 = vmatmul.mubr.msk.f32.vlgmr.msra.gmra.mrb[18].mxu0 %vm555_vm2, %v8382_v20 }
 0x210   : > { %8387 = vmatpush1.msk.msra.mxu1 %vm559_vm1, %v6254_v17  ;;  %v6660_v34 = vpop.permute.xlu0 %6659  ;;  %6761 = vmatprep.mubr.f32.mxu0 %v9889_v22 }
 0x211   : > { %v6249_v7 = vpop.permute.xlu1 %6248  ;;  %8388 = vmatmul.mubr.msk.f32.vlgmr.msra.gmra.mrb[0].mxu1 %vm555_vm2, %v8382_v20 }
 0x212   : > { %v6258_v57 = vsel %vm2566_vm7, %v6247_v25, %v6249_v7  ;;  %v6259_v59 = vsel %vm2566_vm7, %v6249_v7, %v6251_v50  ;;  %6558 = vmatprep.mubr.f32.mxu1 %v9889_v22 }
 0x213   : > { %8392 = vmatprep.subr.msk.mxu1 %vm559_vm1, %v6259_v59 }
 0x214   : > { %8393 = vmatpush1.msk.msra.mxu1 %vm559_vm1, %v6258_v57 }
 0x215   : > { %8394 = vmatmul.mubr.msk.f32.vlgmr.msra.gmra.mrb[2].mxu1 %vm555_vm2, %v8382_v20  ;;  %v8427_v20 = vld [vmem:[%s10309_s5 + $0x20] sm:$0xf] }
 0x216   : > { %v6664_v23 = vpop.permute.xlu0 %6663  ;;  %6832 = vmatprep.mubr.f32.mxu1 %v9889_v22 }
 0x217   : > { %v6652_v62 = vpop.permute.xlu1 %6651 }
 0x218   : > { %v6668_v26 = vsel %vm2982_vm8, %v6650_v55, %v6652_v62 }
 0x219   : > { %8398 = vmatprep.subr.msk.mxu0 %vm559_vm1, %v6668_v26 }
 0x21a   : > { %8399 = vmatpush1.msk.msra.mxu0 %vm559_vm1, %v6667_v28 }
 0x21b   : > { %8400 = vmatmul.mubr.msk.f32.vlgmr.msra.gmra.mrb[0].mxu0 %vm555_vm2, %v8397_v27 }
 0x21c   : > { %v7067_v1 = vpop.permute.xlu0 %7066  ;;  %v6654_v42 = vpop.permute.xlu1 %6653  ;;  %6903 = vmatprep.mubr.f32.mxu0 %v9889_v22 }
 0x21d   : > { %v6669_v29 = vsel %vm2982_vm8, %v6652_v62, %v6654_v42  ;;  %v6670_v4 = vsel %vm2982_vm8, %v6654_v42, %v6656_v31 }
 0x21e   : > { %8401 = vmatprep.subr.msk.mxu1 %vm559_vm1, %v6670_v4 }
 0x21f   : > { %8402 = vmatpush1.msk.msra.mxu1 %vm559_vm1, %v6669_v29 }
 0x220   : > { %v6658_v6 = vpop.permute.xlu1 %6657  ;;  %8403 = vmatmul.mubr.msk.f32.vlgmr.msra.gmra.mrb[0].mxu1 %vm555_vm2, %v8397_v27  ;;  %v6666_v36 = vpop.permute.xlu0 %6665 }
 0x221   : > { %v6671_v18 = vsel %vm2982_vm8, %v6656_v31, %v6658_v6  ;;  %v6672_v35 = vsel %vm2982_vm8, %v6658_v6, %v6660_v34  ;;  %6974 = vmatprep.mubr.f32.mxu1 %v9889_v22  ;;  %v6675_v45 = vsel %vm2982_vm8, %v6664_v23, %v6666_v36 }
 0x222   : > { %8404 = vmatprep.subr.msk.mxu0 %vm559_vm1, %v6672_v35 }
 0x223   : > { %8405 = vmatpush1.msk.msra.mxu0 %vm559_vm1, %v6671_v18 }
 0x224   : > { %8406 = vmatmul.mubr.msk.f32.vlgmr.msra.gmra.mrb[2].mxu0 %vm555_vm2, %v8397_v27 }
 0x225   : > { %7176 = vmatprep.mubr.f32.mxu0 %v9889_v22  ;;  %v7075_v15 = vpop.permute.xlu0 %7074 }
 0x226   : > { %v6662_v44 = vpop.permute.xlu1 %6661 }
 0x227   : > { %v6673_v21 = vsel %vm2982_vm8, %v6660_v34, %v6662_v44  ;;  %v6674_v52 = vsel %vm2982_vm8, %v6662_v44, %v6664_v23 }
 0x228   : > { %8407 = vmatprep.subr.msk.mxu1 %vm559_vm1, %v6674_v52 }
 0x229   : > { %8408 = vmatpush1.msk.msra.mxu1 %vm559_vm1, %v6673_v21  ;;  %v7069_v8 = vpop.permute.xlu0 %7068 }
 0x22a   : > { %8409 = vmatmul.mubr.msk.f32.vlgmr.msra.gmra.mrb[2].mxu1 %vm555_vm2, %v8397_v27  ;;  %8555 = vmatprep.subr.mxu1 %v9889_v22  ;;  %v7065_v2 = vpop.permute.xlu1 %7064  ;;  %v7084_v19 = vsel %vm3398_vm9, %v7067_v1, %v7069_v8 }
 0x22b   : > { %v7083_v61 = vsel %vm3398_vm9, %v7065_v2, %v7067_v1  ;;  %8556 = vmatpush3.msk.msra.mxu1 %vm559_vm1, %v6675_v45  ;;  %8557 = vmatprep.mubr.msk.f32.mxu1 %vm8753_vm4, %v9889_v22 }
 0x22c   : > { %8413 = vmatprep.subr.msk.mxu0 %vm559_vm1, %v7083_v61 }
 0x22e   : > { %8558 = vmatmul.mubr.msk.f32.vlgmr.msra.gmra.mrb[18].mxu1 %vm555_vm2, %v8397_v27 }
 0x22f   : > { %7247 = vmatprep.mubr.f32.mxu1 %v9889_v22  ;;  %v7081_v13 = vpop.permute.xlu0 %7080 }
 0x230   : > { %v7063_v9 = vpop.permute.xlu1 %7062 }
 0x231   : > { %v7082_v60 = vsel %vm3398_vm9, %v7063_v9, %v7065_v2 }
 0x232   : > { %8414 = vmatpush1.msk.msra.mxu0 %vm559_vm1, %v7082_v60 }
 0x233   : > { %8415 = vmatmul.mubr.msk.f32.vlgmr.msra.gmra.mrb[0].mxu0 %vm555_vm2, %v8412_v32  ;;  %v7480_v11 = vpop.permute.xlu0 %7479 }
 0x234   : > { %v7073_v53 = vpop.permute.xlu1 %7072  ;;  %7318 = vmatprep.mubr.f32.mxu0 %v9889_v22 }
 0x235   : > { %v7087_v10 = vsel %vm3398_vm9, %v7073_v53, %v7075_v15 }
 0x236   : > { %8419 = vmatprep.subr.msk.mxu0 %vm559_vm1, %v7087_v10 }
 0x237   : > { %v7478_v5 = vpop.permute.xlu0 %7477 }
 0x238   : > { %v7071_v40 = vpop.permute.xlu1 %7070  ;;  %v7497_v14 = vsel %vm3814_vm10, %v7478_v5, %v7480_v11 }
 0x239   : > { %v7085_v41 = vsel %vm3398_vm9, %v7069_v8, %v7071_v40  ;;  %v7086_v47 = vsel %vm3398_vm9, %v7071_v40, %v7073_v53 }
 0x23a   : > { %8416 = vmatprep.subr.msk.mxu1 %vm559_vm1, %v7085_v41  ;;  %8420 = vmatpush1.msk.msra.mxu0 %vm559_vm1, %v7086_v47 }
 0x23b   : > { %8417 = vmatpush1.msk.msra.mxu1 %vm559_vm1, %v7084_v19  ;;  %8421 = vmatmul.mubr.msk.f32.vlgmr.msra.gmra.mrb[2].mxu0 %vm555_vm2, %v8412_v32  ;;  %v7486_v55 = vpop.permute.xlu0 %7485 }
 0x23c   : > { %v7079_v16 = vpop.permute.xlu1 %7078  ;;  %8560 = vmatprep.subr.mxu0 %v9889_v22  ;;  %8562 = vmatprep.mubr.msk.f32.mxu0 %vm8753_vm4, %v9889_v22 }
 0x23d   : > { %v7090_v49 = vsel %vm3398_vm9, %v7079_v16, %v7081_v13  ;;  %8418 = vmatmul.mubr.msk.f32.vlgmr.msra.gmra.mrb[0].mxu1 %vm555_vm2, %v8412_v32 }
 0x23e   : > { %8561 = vmatpush3.msk.msra.mxu0 %vm559_vm1, %v7090_v49  ;;  %7389 = vmatprep.mubr.f32.mxu1 %v9889_v22  ;;  %v928_v38 = vpop.f32.mrb[4].mxu0  ;;  %v1303_v58 = vpop.f32.mrb[4].mxu1 }
 0x23f   : > { %8563 = vmatmul.mubr.msk.f32.vlgmr.msra.gmra.mrb[20].mxu0 %vm555_vm2, %v8412_v32  ;;  %v8484_v54 = vpop.f32.mrb[5].mxu0  ;;  %v1304_v51 = vadd.f32 %v1303_v58, %v928_v38  ;;  %v8489_v46 = vpop.f32.mrb[5].mxu1 }
 0x240   : > { %v7077_v12 = vpop.permute.xlu1 %7076  ;;  %7591 = vmatprep.mubr.f32.mxu0 %v9889_v22  ;;  %v7490_v63 = vpop.permute.xlu0 %7489 }
 0x241   : > { %v7088_v50 = vsel %vm3398_vm9, %v7075_v15, %v7077_v12  ;;  %v7089_v33 = vsel %vm3398_vm9, %v7077_v12, %v7079_v16 }
 0x242   : > { %8422 = vmatprep.subr.msk.mxu1 %vm559_vm1, %v7089_v33 }
 0x243   : > { %8423 = vmatpush1.msk.msra.mxu1 %vm559_vm1, %v7088_v50 }
 0x244   : > { %v7482_v37 = vpop.permute.xlu1 %7481  ;;  %8424 = vmatmul.mubr.msk.f32.vlgmr.msra.gmra.mrb[2].mxu1 %vm555_vm2, %v8412_v32  ;;  %v7494_v48 = vpop.permute.xlu0 %7493 }
 0x245   : > { %v7498_v56 = vsel %vm3814_vm10, %v7480_v11, %v7482_v37  ;;  %7662 = vmatprep.mubr.f32.mxu1 %v9889_v22 }
 0x246   : > { %8428 = vmatprep.subr.msk.mxu0 %vm559_vm1, %v7498_v56 }
 0x247   : > { %8429 = vmatpush1.msk.msra.mxu0 %vm559_vm1, %v7497_v14 }
 0x248   : > { %8430 = vmatmul.mubr.msk.f32.vlgmr.msra.gmra.mrb[0].mxu0 %vm555_vm2, %v8427_v20  ;;  %v7484_v24 = vpop.permute.xlu1 %7483 }
 0x249   : > { %v7499_v25 = vsel %vm3814_vm10, %v7482_v37, %v7484_v24  ;;  %v7500_v43 = vsel %vm3814_vm10, %v7484_v24, %v7486_v55  ;;  %7733 = vmatprep.mubr.f32.mxu0 %v9889_v22 }
 0x24a   : > { %8431 = vmatprep.subr.msk.mxu1 %vm559_vm1, %v7500_v43 }
 0x24b   : > { %8432 = vmatpush1.msk.msra.mxu1 %vm559_vm1, %v7499_v25 }
 0x24c   : > { %8433 = vmatmul.mubr.msk.f32.vlgmr.msra.gmra.mrb[0].mxu1 %vm555_vm2, %v8427_v20  ;;  %v7488_v39 = vpop.permute.xlu1 %7487 }
 0x24d   : > { %v7501_v30 = vsel %vm3814_vm10, %v7486_v55, %v7488_v39  ;;  %v7502_v31 = vsel %vm3814_vm10, %v7488_v39, %v7490_v63  ;;  %7804 = vmatprep.mubr.f32.mxu1 %v9889_v22 }
 0x24e   : > { %8434 = vmatprep.subr.msk.mxu0 %vm559_vm1, %v7502_v31 }
 0x24f   : > { %8435 = vmatpush1.msk.msra.mxu0 %vm559_vm1, %v7501_v30 }
 0x250   : > { %8436 = vmatmul.mubr.msk.f32.vlgmr.msra.gmra.mrb[2].mxu0 %vm555_vm2, %v8427_v20 }
 0x251   : > { %v7492_v0 = vpop.permute.xlu1 %7491 }
 0x252   : > { %v7503_v17 = vsel %vm3814_vm10, %v7490_v63, %v7492_v0  ;;  %v7504_v3 = vsel %vm3814_vm10, %v7492_v0, %v7494_v48 }
 0x253   : > { %8437 = vmatprep.subr.msk.mxu1 %vm559_vm1, %v7504_v3 }
 0x254   : > { %8438 = vmatpush1.msk.msra.mxu1 %vm559_vm1, %v7503_v17  ;;  %v10237_v46 = vpop.permute.xlu0 %7902 }
 0x255   : > { %8439 = vmatmul.mubr.msk.f32.vlgmr.msra.gmra.mrb[2].mxu1 %vm555_vm2, %v8427_v20  ;;  %v7496_v34 = vpop.permute.xlu1 %7495  ;;  %8565 = vmatprep.subr.mxu1 %v9889_v22 }
 0x256   : > { %v7505_v7 = vsel %vm3814_vm10, %v7494_v48, %v7496_v34  ;;  %8567 = vmatprep.mubr.msk.f32.mxu1 %vm8753_vm4, %v9889_v22  ;;  %vm8065_vm4 = vcmask 11272  }
 0x257   : > { %8566 = vmatpush3.msk.msra.mxu1 %vm559_vm1, %v7505_v7  ;;  %v1707_v57 = vpop.f32.mrb[6].mxu0  ;;  %v2120_v59 = vpop.f32.mrb[6].mxu1 }
 0x258   : > { %v1719_v23 = vadd.f32 %v1707_v57, %v1304_v51  ;;  %v8494_v62 = vpop.f32.mrb[7].mxu0  ;;  %v8499_v26 = vpop.f32.mrb[7].mxu1 }
 0x259   : > { %8568 = vmatmul.mubr.msk.f32.vlgmr.msra.gmra.mrb[20].mxu1 %vm555_vm2, %v8427_v20  ;;  %vm7964_vm2 = vmor %vm7963_vm15, %vm7962_vm14 }
 0x25a   : > { %v2132_v27 = vadd.f32 %v2120_v59, %v1719_v23 }
 0x25b   : > { %v7972_v12 = vpop.permute.xlu1 %7971 }
 0x26b   : > { %v7974_v55 = vpop.permute.xlu0 %7973 }
 0x26c   : > { %v7989_v25 = vsel %vm2153_vm6, %v7972_v12, %v7974_v55 }
 0x26f   : > { %v2533_v28 = vpop.f32.mrb[8].mxu0 }
 0x270   : > { %v2545_v1 = vadd.f32 %v2533_v28, %v2132_v27  ;;  %v2946_v42 = vpop.f32.mrb[8].mxu1  ;;  %v8504_v29 = vpop.f32.mrb[9].mxu0 }
 0x271   : > { %v8509_v4 = vpop.f32.mrb[9].mxu1 }
 0x272   : > { %v2958_v6 = vadd.f32 %v2946_v42, %v2545_v1 }
 0x273   : > { %v7976_v56 = vpop.permute.xlu1 %7975  ;;  %v7978_v20 = vpop.permute.xlu0 %7977 }
 0x274   : > { %v7990_v39 = vsel %vm2153_vm6, %v7974_v55, %v7976_v56  ;;  %v7991_v3 = vsel %vm2153_vm6, %v7976_v56, %v7978_v20 }
 0x277   : > { %v7980_v14 = vpop.permute.xlu1 %7979 }
 0x278   : > { %v7982_v34 = vpop.permute.xlu0 %7981  ;;  %v7992_v62 = vsel %vm2153_vm6, %v7978_v20, %v7980_v14 }
 0x27b   : > { %v7984_v26 = vpop.permute.xlu1 %7983 }
 0x288   : > { %v3363_v36 = vpop.f32.mrb[10].mxu0 }
 0x289   : > { %v3375_v18 = vadd.f32 %v3363_v36, %v2958_v6  ;;  %v3779_v35 = vpop.f32.mrb[10].mxu1  ;;  %v8514_v44 = vpop.f32.mrb[11].mxu0  ;;  %v7993_v6 = vsel %vm2153_vm6, %v7980_v14, %v7982_v34 }
 0x28a   : > { %v8519_v15 = vpop.f32.mrb[11].mxu1 }
 0x28b   : > { %v3791_v21 = vadd.f32 %v3779_v35, %v3375_v18  ;;  %v7994_v15 = vsel %vm2153_vm6, %v7982_v34, %v7984_v26 }
 0x29e   : > { %v4195_v52 = vpop.f32.mrb[12].mxu0 }
 0x29f   : > { %v10235_v45 = vadd.f32 %v4195_v52, %v3791_v21  ;;  %v8524_v2 = vpop.f32.mrb[13].mxu0 }
 0x2ab   : > { %v4617_v61 = vpop.f32.mrb[12].mxu1 }
 0x2ac   : > { %v8529_v8 = vpop.f32.mrb[13].mxu1 }
 0x2b4   : > { %v4992_v9 = vpop.f32.mrb[14].mxu0 }
 0x2b5   : > { %v4993_v32 = vadd.f32 %v4992_v9, %v4617_v61  ;;  %v8534_v60 = vpop.f32.mrb[15].mxu0 }
 0x2c1   : > { %v5395_v13 = vpop.f32.mrb[14].mxu1 }
 0x2c2   : > { %v5407_v53 = vadd.f32 %v5395_v13, %v4993_v32  ;;  %v8539_v10 = vpop.f32.mrb[15].mxu1 }
 0x2c9   : > { %v5807_v40 = vpop.f32.mrb[16].mxu0 }
 0x2ca   : > { %v5819_v11 = vadd.f32 %v5807_v40, %v5407_v53  ;;  %v8544_v41 = vpop.f32.mrb[17].mxu0  ;;  %v7986_v53 = vpop.permute.xlu0 %7985 }
 0x2d5   : > { %v6219_v47 = vpop.f32.mrb[16].mxu1 }
 0x2d6   : > { %v6231_v19 = vadd.f32 %v6219_v47, %v5819_v11  ;;  %v8549_v16 = vpop.f32.mrb[17].mxu1  ;;  %v7988_v11 = vpop.permute.xlu1 %7987 }
 0x2d7   : > { %v7996_v55 = vsel %vm2153_vm6, %v7986_v53, %v7988_v11 }
 0x2e2   : > { %v6631_v49 = vpop.f32.mrb[18].mxu0 }
 0x2e3   : > { %v6643_v38 = vadd.f32 %v6631_v49, %v6231_v19  ;;  %v8554_v58 = vpop.f32.mrb[19].mxu0 }
 0x301   : > { %v7047_v5 = vpop.f32.mrb[18].mxu1 }
 0x302   : > { %v7059_v54 = vadd.f32 %v7047_v5, %v6643_v38  ;;  %v8559_v51 = vpop.f32.mrb[19].mxu1 }
 0x312   : > { %v7462_v50 = vpop.f32.mrb[20].mxu0 }
 0x313   : > { %v10239_v33 = vadd.f32 %v7462_v50, %v7059_v54  ;;  %v8564_v37 = vpop.f32.mrb[21].mxu0  ;;  %v7995_v54 = vsel %vm2153_vm6, %v7984_v26, %v7986_v53 }
 0x31b   : > { %v7593_v24 = vpop.f32.mrb[0].mxu0 }
 0x31c   : > { %v7905_v43 = vadd.f32 %v10237_v46, %v7593_v24  ;;  %v7595_v63 = vpop.f32.mrb[1].mxu0 }
 0x31d   : > { %v7906_v30 = vadd.f32 %v10237_v46, %v7595_v63 }
 0x31e   : > { %v8006_v31 = vmul.f32 %v7989_v25, %v7905_v43 }
 0x31f   : > { %v7930_v48 = vcombine.low %v7905_v43, %v7906_v30  ;;  %v8007_v0 = vmul.f32 %v7990_v39, %v7906_v30  ;;  %v7664_v17 = vpop.f32.mrb[0].mxu1 }
 0x320   : > { %v8015_v7 = vsel %vm559_vm1, %v8006_v31, 0.0  ;;  %v8037_v57 = vmul.f32 %v8006_v31, %v8006_v31  ;;  %v7907_v59 = vadd.f32 %v10237_v46, %v7664_v17  ;;  %v7666_v23 = vpop.f32.mrb[1].mxu1 }
 0x321   : > { %v8016_v27 = vsel %vm559_vm1, %v8007_v0, 0.0  ;;  %v8038_v28 = vmul.f32 %v8007_v0, %v8007_v0  ;;  %v7908_v1 = vadd.f32 %v10237_v46, %v7666_v23  ;;  %7934 = vrot.lane.b32.xlu0 %v7930_v48, %s8754_s13 }
 0x322   : > { %v8046_v42 = vsel %vm559_vm1, %v8037_v57, 0.0  ;;  %v8017_v29 = vadd.f32 %v8016_v27, %v8015_v7  ;;  %v8008_v4 = vmul.f32 %v7991_v3, %v7907_v59 }
 0x323   : > { %v8047_v36 = vsel %vm559_vm1, %v8038_v28, 0.0  ;;  %v7931_v18 = vcombine.low %v7907_v59, %v7908_v1  ;;  %v8009_v35 = vmul.f32 %v7992_v62, %v7908_v1  ;;  %v7735_v44 = vpop.f32.mrb[2].mxu0 }
 0x324   : > { %v8048_v21 = vadd.f32 %v8047_v36, %v8046_v42  ;;  %v8018_v52 = vsel %vm559_vm1, %v8008_v4, 0.0  ;;  %v8039_v2 = vmul.f32 %v8008_v4, %v8008_v4  ;;  %v7909_v61 = vadd.f32 %v10237_v46, %v7735_v44  ;;  %v7737_v8 = vpop.f32.mrb[3].mxu0 }
 0x325   : > { %v8019_v9 = vadd.f32 %v8018_v52, %v8017_v29  ;;  %v8020_v32 = vsel %vm559_vm1, %v8009_v35, 0.0  ;;  %v8040_v60 = vmul.f32 %v8009_v35, %v8009_v35  ;;  %v7910_v13 = vadd.f32 %v10237_v46, %v7737_v8  ;;  %7936 = vrot.lane.b32.xlu1 %v7931_v18, %s8754_s13 }
 0x326   : > { %v8049_v10 = vsel %vm559_vm1, %v8039_v2, 0.0  ;;  %v8010_v40 = vmul.f32 %v7993_v6, %v7909_v61 }
 0x327   : > { %v8050_v41 = vadd.f32 %v8049_v10, %v8048_v21  ;;  %v8021_v47 = vadd.f32 %v8020_v32, %v8019_v9  ;;  %v8051_v19 = vsel %vm559_vm1, %v8040_v60, 0.0  ;;  %v7932_v16 = vcombine.low %v7909_v61, %v7910_v13 }
 0x328   : > { %v8022_v49 = vsel %vm559_vm1, %v8010_v40, 0.0  ;;  %v8041_v38 = vmul.f32 %v8010_v40, %v8010_v40  ;;  %v8011_v58 = vmul.f32 %v7994_v15, %v7910_v13  ;;  %v7806_v5 = vpop.f32.mrb[2].mxu1 }
 0x329   : > { %v8052_v51 = vadd.f32 %v8051_v19, %v8050_v41  ;;  %v8023_v12 = vadd.f32 %v8022_v49, %v8021_v47  ;;  %v7911_v50 = vadd.f32 %v10237_v46, %v7806_v5  ;;  %v7808_v37 = vpop.f32.mrb[3].mxu1  ;;  %7938 = vrot.lane.b32.xlu0 %v7932_v16, %s8754_s13 }
 0x32a   : > { %v8053_v56 = vsel %vm559_vm1, %v8041_v38, 0.0  ;;  %v8024_v20 = vsel %vm559_vm1, %v8011_v58, 0.0  ;;  %v8042_v14 = vmul.f32 %v8011_v58, %v8011_v58  ;;  %v7912_v24 = vadd.f32 %v10237_v46, %v7808_v37 }
 0x32b   : > { %v8054_v25 = vadd.f32 %v8053_v56, %v8052_v51  ;;  %v8025_v43 = vadd.f32 %v8024_v20, %v8023_v12  ;;  %v8012_v63 = vmul.f32 %v7995_v54, %v7911_v50 }
 0x32c   : > { %v8055_v39 = vsel %vm559_vm1, %v8042_v14, 0.0  ;;  %v7933_v30 = vcombine.low %v7911_v50, %v7912_v24  ;;  %v8013_v31 = vmul.f32 %v7996_v55, %v7912_v24  ;;  %v7877_v48 = vpop.f32.mrb[20].mxu1 }
 0x32d   : > { %v8056_v0 = vadd.f32 %v8055_v39, %v8054_v25  ;;  %v8026_v17 = vsel %vm559_vm1, %v8012_v63, 0.0  ;;  %v8043_v3 = vmul.f32 %v8012_v63, %v8012_v63  ;;  %v7889_v34 = vadd.f32 %v7877_v48, %v10239_v33  ;;  %v8569_v7 = vpop.f32.mrb[21].mxu1 }
 0x32e   : > { %v8027_v57 = vadd.f32 %v8026_v17, %v8025_v43  ;;  %v8028_v59 = vsel %vm559_vm1, %v8013_v31, 0.0  ;;  %v8044_v23 = vmul.f32 %v8013_v31, %v8013_v31 }
 0x32f   : > { %v8057_v62 = vsel %vm559_vm1, %v8043_v3, 0.0  ;;  %v7898_v26 = vadd.f32 %v7889_v34, %v10235_v45 }
 0x330   : > { %v8058_v27 = vadd.f32 %v8057_v62, %v8056_v0  ;;  %v8029_v28 = vadd.f32 %v8028_v59, %v8027_v57  ;;  %v8059_v1 = vsel %vm559_vm1, %v8044_v23, 0.0 }
 0x331   : > { %v7913_v42 = vadd.f32 %v10237_v46, %v7898_v26 }
 0x332   : > { %v8060_v29 = vadd.f32 %v8059_v1, %v8058_v27 }
 0x333   : > { %v8014_v4 = vmul.f32 %v7988_v11, %v7913_v42 }
 0x335   : > { %v8031_v33 = vsel %vm8030_vm11, %v8014_v4, 0.0  ;;  %v8045_v6 = vmul.f32 %v8014_v4, %v8014_v4 }
 0x336   : > { %v8032_v36 = vadd.f32 %v8031_v33, %v8029_v28 }
 0x337   : > { %v8061_v18 = vsel %vm8030_vm11, %v8045_v6, 0.0 }
 0x338   : > { %v8062_v35 = vadd.f32 %v8061_v18, %v8060_v29 }
 0x348   : > { %8033 = vadd.xlane.f32.xlu0 %v8032_v36 }
 0x349   : > { %8063 = vadd.xlane.f32.xlu1 %v8062_v35 }
 0x35a   : > { %7940 = vrot.lane.b32.xlu1 %v7933_v30, %s8754_s13 }
 0x35e   : > { %7942 = vrot.lane.b32.xlu0 %v7913_v42, %s8754_s13 }
 0x393   : > { %v7935_v45 = vpop.permute.xlu0 %7934 }
 0x394   : > { %v7944_v46 = vrot.slane %v7935_v45, 4 }
 0x396   : > { %v7949_v44 = vsel %vm7948_vm0, %v7944_v46, %v7935_v45 }
 0x397   : > { %7965 = vst.msk [vmem:[%s8945_s17] sm:$0xff] %vm7964_vm2, %v7949_v44  ;;  %v7937_v15 = vpop.permute.xlu1 %7936 }
 0x398   : > { %v7945_v21 = vrot.slane %v7937_v15, 4 }
 0x39a   : > { %v7950_v52 = vsel %vm559_vm1, %v7944_v46, %v7945_v21 }
 0x39b   : > { %v7951_v2 = vsel %vm7948_vm0, %v7950_v52, %v7937_v15  ;;  %v7939_v22 = vpop.permute.xlu0 %7938 }
 0x39c   : > { %7966 = vst [vmem:[%s8945_s17 + $0x8] sm:$0xff] %v7951_v2  ;;  %v7946_v61 = vrot.slane %v7939_v22, 4 }
 0x39e   : > { %v7952_v8 = vsel %vm559_vm1, %v7945_v21, %v7946_v61 }
 0x39f   : > { %v7953_v9 = vsel %vm7948_vm0, %v7952_v8, %v7939_v22 }
 0x3a0   : > { %7967 = vst [vmem:[%s8945_s17 + $0x10] sm:$0xff] %v7953_v9 }
 0x3d5   : > { %v8034_v32 = vpop.xlane.xlu0 %8033 }
 0x3d6   : > { %8036 = vst.msk [vmem:[%s363_s26] sm:$0xf] %vm8035_vm3, %v8034_v32  ;;  %v8064_v60 = vpop.xlane.xlu1 %8063 }
 0x3d7   : > { %8066 = vst.msk [vmem:[%s363_s26] sm:$0xf] %vm8065_vm4, %v8064_v60 }
 0x3d9   : > { %v7943_v10 = vpop.permute.xlu0 %7942 }
 0x3da   : > { %v7941_v13 = vpop.permute.xlu1 %7940 }
 0x3db   : > { %v7947_v53 = vrot.slane %v7941_v13, 4 }
 0x3dd   : > { %v7954_v40 = vsel %vm559_vm1, %v7946_v61, %v7947_v53  ;;  %v7956_v11 = vsel %vm7948_vm0, %v7947_v53, %v7943_v10 }
 0x3de   : > { %v7955_v41 = vsel %vm7948_vm0, %v7954_v40, %v7941_v13  ;;  %7970 = vst.msk [vmem:[%s8945_s17 + $0x20] sm:$0xf] %vm7969_vm5, %v7956_v11 }
 0x3df   : > { %7968 = vst [vmem:[%s8945_s17 + $0x18] sm:$0xff] %v7955_v41 }
 0x3e0 PF: > { %s20_s30 = sadd.s32 1, %s8739_s30  }
 0x3e1   : > { %p17_p4 = scmp.ge.s32.totalorder %s20_s30, 4  }
 0x3e3   :  { %19 = sbr.rel (!%p17_p4) target bundleno = 1 (0x1), region = 113 }

// kernel: decoder_block_forward.5
= control target key start
LH: loop header
LB: loop body
LE: loop exit
PB: predicated region body
PF: predicated region fallthrough
CT: control target
= control target key end

     0   :  { %s4622_s21 = smov 0   ;;  %s5315_s0 = inlined_call_operand.vmem [shape: f32[2,4,1156], index: 0, kind: input, shape index: {}]   ;;  %s5316_s1 = inlined_call_operand.vmem [shape: f32[2,4,1156], index: 1, kind: input, shape index: {}]   ;;  %s5317_s2 = inlined_call_operand.vmem [shape: f32[4,2], index: 2, kind: input, shape index: {}]   ;;  %s5318_s3 = inlined_call_operand.vmem [shape: f32[9,4,4], index: 3, kind: input, shape index: {}]   ;;  %s5319_s4 = inlined_call_operand.vmem [shape: f32[4,1], index: 4, kind: input, shape index: {}]   ;;  %s5320_s5 = inlined_call_operand.vmem [shape: f32[1,1156], index: 5, kind: input, shape index: {}]   ;;  %s5321_s6 = inlined_call_operand.vmem [shape: f32[2,4,1156], index: 6, kind: output, shape index: {}]  }
   0x1 LB: > { %s4264_s22 = sadd.s32 4294967295, %s4571_s21   ;;  %p4268_p0 = scmp.ge.s32.totalorder %s4571_s21, 1  ;;  %s4571_s21 = sphi %s4622_s21, %s16_s21  }
   0x2   : > { %p222_p1 = scmp.lt.s32.totalorder %s4571_s21, 3 }
   0x4   : > { %p223_p2 = pnand %p4268_p0, %p222_p1 }
   0x5   : > { %v279_v0 = vld [vmem:[%s5317_s2] sm:$0xf] (!%p223_p2)  ;;  %v4573_v1 = vmov (!%p223_p2), 0   ;;  %v4574_v2 = vmov (!%p223_p2), 1   ;;  %p257_p3 = scmp.lt.s32.totalorder (!%p223_p2), %s4264_s22, 1  ;;  %v287_v5 = vlaneseq (!%p223_p2)  ;;  %s4576_s9 = smov (!%p223_p2), 127  }
   0x6   : > { %226 = sbr.rel (%p223_p2) target bundleno = 754 (0x2f2), region = 44  ;;  %4558 = vset.pattern.permute.xlu0 (!%p223_p2), %v4573_v1  ;;  %v4575_v3 = vmov (!%p223_p2), 839922192   ;;  %v272_v14 = vld [vmem:[%s5320_s5] sm:$0xff] (!%p223_p2)  ;;  %v273_v47 = vld [vmem:[%s5320_s5 + $0x8] sm:$0x3] (!%p223_p2) }
   0x7   : > { %282 = vperm.xlu0 (!%p223_p2), %4558, %v279_v0   ;;  %v285_v4 = vunpack.c.l.s4 (!%p223_p2), %v4575_v3  ;;  %v288_v7 = vshrl.u32 (!%p223_p2), %v287_v5, 7  ;;  %s4577_s10 = smov (!%p223_p2), 126   ;;  %s4578_s11 = smov (!%p223_p2), 94   ;;  %v4581_v63 = vmov (!%p223_p2), 0.0   ;;  %vm405_vm0 = vcmask (!%p223_p2), 1039360  }
   0x8   : > { %s4579_s12 = smov (!%p223_p2), 93   ;;  %s4580_s13 = smov (!%p223_p2), 92   ;;  %501 = vmatprep.mubr.f32.mxu0 (!%p223_p2), %v4581_v63  ;;  %572 = vmatprep.mubr.f32.mxu1 (!%p223_p2), %v4581_v63  ;;  %vm418_vm1 = vcmask (!%p223_p2), 1043456   ;;  %vm414_vm2 = vcmask (!%p223_p2), 31744   ;;  %vm4585_vm3 = vmmov (!%p223_p2), 0   ;;  %vm1186_vm4 = vcmask (!%p223_p2), 1031168  }
   0x9   : > { %v286_v6 = vunpack.c.0.s8 (!%p223_p2), %v285_v4  ;;  %v330_v9 = vsub.s32 (!%p223_p2), 2, %v288_v7  ;;  %v334_v10 = vsub.s32 (!%p223_p2), 3, %v288_v7  ;;  %v338_v12 = vsub.s32 (!%p223_p2), 4, %v288_v7  ;;  %s4582_s17 = smov (!%p223_p2), 60   ;;  %s4583_s18 = smov (!%p223_p2), 59  }
   0xa   : > { %v342_v13 = vsub.s32 (!%p223_p2), 5, %v288_v7  ;;  %v322_v19 = vsub.s32 (!%p223_p2), 0, %v288_v7  ;;  %v326_v20 = vsub.s32 (!%p223_p2), 1, %v288_v7  ;;  %v346_v25 = vsub.s32 (!%p223_p2), 6, %v288_v7  ;;  %s4584_s19 = smov (!%p223_p2), 58  }
   0xb   : > { %4559 = vset.pattern.permute.xlu0 (!%p223_p2), %v4574_v2  ;;  %v289_v8 = vsub.s32 (!%p223_p2), %v286_v6, %v288_v7  ;;  %v331_v21 = vrot.slane (!%p223_p2), %v272_v14, %v330_v9  ;;  %v335_v22 = vrot.slane (!%p223_p2), %v272_v14, %v334_v10  ;;  %v339_v23 = vrot.slane (!%p223_p2), %v272_v14, %v338_v12 }
   0xc   : > { %298 = vperm.xlu0 (!%p223_p2), %4559, %v279_v0   ;;  %v343_v24 = vrot.slane (!%p223_p2), %v272_v14, %v342_v13  ;;  %v350_v32 = vsub.s32 (!%p223_p2), 7, %v288_v7  ;;  %v323_v33 = vrot.slane (!%p223_p2), %v272_v14, %v322_v19  ;;  %v327_v34 = vrot.slane (!%p223_p2), %v272_v14, %v326_v20 }
   0xd   : > { %s5323_s22 = smov (!%p257_p3, %s4264_s22), 1  ;;  %v361_v35 = vcombine.low %v331_v21, %v335_v22  ;;  %v347_v44 = vrot.slane %v272_v14, %v346_v25  ;;  %v355_v53 = vrot.slane %v273_v47, %v322_v19  ;;  %v359_v54 = vrot.slane %v273_v47, %v326_v20  ;;  %v4067_v21 = vld [vmem:[%s5319_s4] sm:$0xf]  ;;  %v4272_v47 = vld [vmem:[%s5318_s3 + $0x4] sm:$0xf] }
   0xe   : > { %s4633_s25 = smul.u32 40, %s5323_s22  ;;  %v362_v39 = vcombine.low %v339_v23, %v343_v24  ;;  %v351_v45 = vrot.slane %v272_v14, %v350_v32  ;;  %v360_v46 = vcombine.low %v323_v33, %v327_v34  ;;  %vm1599_vm5 = vcmask 769024   ;;  %s4586_s22 = smov 35  }
   0xf   : > { %v364_v60 = vcombine.low %v355_v53, %v359_v54  ;;  %vm2012_vm6 = vcmask 760832   ;;  %vm2425_vm7 = vcmask 752640   ;;  %vm2841_vm8 = vcmask 490496  }
  0x10   : > { %4560 = vset.pattern.permute.xlu0 %v4573_v1  ;;  %s4639_s28 = scalar_lea.vmem %s5315_s0, %s4633_s25  ;;  %v363_v57 = vcombine.low %v347_v44, %v351_v45  ;;  %s4710_s16 = scalar_lea.vmem %s5321_s6, %s4633_s25  ;;  %vm3257_vm9 = vcmask 482304   ;;  %vm3673_vm10 = vcmask 474112   ;;  %vm4144_vm11 = vcmask 31748  }
  0x11   : > { %v274_v16 = vld [vmem:[%s4639_s28] sm:$0xff]  ;;  %v275_v17 = vld [vmem:[%s4639_s28 + $0x8] sm:$0xff]  ;;  %v276_v18 = vld [vmem:[%s4639_s28 + $0x10] sm:$0xff]  ;;  %4140 = vst [vmem:[%s4710_s16] sm:$0xff] %v4581_v63  ;;  %s266_s26 = scalar_lea.vmem %s5316_s1, %s4633_s25  ;;  %vm4188_vm13 = vcmask 1043736   ;;  %vm4189_vm14 = vcmask 1047556   ;;  %vm4174_vm15 = vcmask 285696  }
  0x12   : > { %v277_v31 = vld [vmem:[%s4639_s28 + $0x18] sm:$0xff]  ;;  %v278_v43 = vld [vmem:[%s4639_s28 + $0x20] sm:$0xff]  ;;  %v4083_v22 = vld [vmem:[%s266_s26 + $0x8] sm:$0xff] }
  0x13   : > { %v4084_v25 = vld [vmem:[%s266_s26 + $0x10] sm:$0xff]  ;;  %v4086_v33 = vld [vmem:[%s266_s26 + $0x20] sm:$0xf]  ;;  %vm4145_vm12 = vmor %vm4144_vm11, %vm418_vm1 }
  0x14   : > { %4146 = vst.msk [vmem:[%s4710_s16 + $0x20] sm:$0xff] %vm4145_vm12, %v4581_v63 }
  0x86   : > { %v283_v11 = vpop.permute.xlu0 %282 }
  0x87   : > { %v290_v15 = vrot.slane %v283_v11, %v289_v8 }
  0x89   : > { %v292_v27 = vmul.f32 %v290_v15, %v274_v16  ;;  %v293_v28 = vmul.f32 %v290_v15, %v275_v17  ;;  %v294_v29 = vmul.f32 %v290_v15, %v276_v18  ;;  %v295_v40 = vmul.f32 %v290_v15, %v277_v31 }
  0x8a   : > { %v296_v52 = vmul.f32 %v290_v15, %v278_v43 }
  0x8b   : > { %v299_v26 = vpop.permute.xlu0 %298 }
  0x8c   : > { %v306_v30 = vrot.slane %v299_v26, %v289_v8 }
  0x8e   : > { %v308_v36 = vadd.f32 %v306_v30, %v292_v27  ;;  %v309_v37 = vadd.f32 %v306_v30, %v293_v28  ;;  %v310_v38 = vadd.f32 %v306_v30, %v294_v29  ;;  %v311_v48 = vadd.f32 %v306_v30, %v295_v40  ;;  %v4082_v28 = vld [vmem:[%s266_s26] sm:$0xff]  ;;  %v4085_v29 = vld [vmem:[%s266_s26 + $0x18] sm:$0xff] }
  0x8f   : > { %v312_v55 = vadd.f32 %v306_v30, %v296_v52  ;;  %v4092_v32 = vcombine.high %v4082_v28, %v4082_v28 }
  0x90   : > { %v314_v41 = vmax.f32 %v309_v37, 0.0  ;;  %v315_v42 = vmax.f32 %v310_v38, 0.0  ;;  %v313_v49 = vmax.f32 %v308_v36, 0.0  ;;  %v316_v56 = vmax.f32 %v311_v48, 0.0 }
  0x91   : > { %v317_v59 = vmax.f32 %v312_v55, 0.0  ;;  %v4093_v36 = vcombine.high %v4083_v22, %v4083_v22 }
  0x92   : > { %v4652_v50 = vmul.f32 %v361_v35, %v314_v41  ;;  %v4654_v51 = vmul.f32 %v362_v39, %v315_v42  ;;  %v4660_v58 = vmul.f32 %v360_v46, %v313_v49  ;;  %v4666_v61 = vmul.f32 %v363_v57, %v316_v56 }
  0x93   : > { %v4672_v62 = vmul.f32 %v364_v60, %v317_v59  ;;  %v4094_v39 = vcombine.high %v4084_v25, %v4084_v25  ;;  %v4095_v42 = vcombine.high %v4085_v29, %v4085_v29 }
  0x94   : > { %395 = vrot.lane.b32.xlu0 %v4654_v51, %s4576_s9  ;;  %391 = vrot.lane.b32.xlu1 %v4652_v50, %s4576_s9  ;;  %v4730_v0 = vcombine.high %v4654_v51, %v4654_v51  ;;  %v4734_v1 = vcombine.high %v4660_v58, %v4660_v58  ;;  %v4742_v2 = vcombine.high %v4666_v61, %v4666_v61 }
  0x95   : > { %v4746_v3 = vcombine.high %v4652_v50, %v4652_v50  ;;  %v2820_v14 = vcombine.high %v4672_v62, %v4672_v62 }
  0x98   : > { %1168 = vrot.lane.b32.xlu0 %v4660_v58, %s4577_s10  ;;  %387 = vrot.lane.b32.xlu1 %v4660_v58, %s4576_s9 }
  0x9c   : > { %1180 = vrot.lane.b32.xlu0 %v4666_v61, %s4577_s10  ;;  %399 = vrot.lane.b32.xlu1 %v4666_v61, %s4576_s9 }
  0xa0   : > { %1184 = vrot.lane.b32.xlu0 %v4672_v62, %s4577_s10  ;;  %403 = vrot.lane.b32.xlu1 %v4672_v62, %s4576_s9 }
  0xa4   : > { %1589 = vrot.lane.b32.xlu0 %v4654_v51, %s4578_s11  ;;  %1172 = vrot.lane.b32.xlu1 %v4652_v50, %s4577_s10 }
  0xa8   : > { %1597 = vrot.lane.b32.xlu0 %v4672_v62, %s4578_s11  ;;  %1176 = vrot.lane.b32.xlu1 %v4654_v51, %s4577_s10 }
  0xac   : > { %1593 = vrot.lane.b32.xlu0 %v4666_v61, %s4578_s11  ;;  %1585 = vrot.lane.b32.xlu1 %v4652_v50, %s4578_s11 }
  0xb0   : > { %1994 = vrot.lane.b32.xlu0 %v4660_v58, %s4579_s12  ;;  %1581 = vrot.lane.b32.xlu1 %v4660_v58, %s4578_s11 }
  0xb4   : > { %2006 = vrot.lane.b32.xlu0 %v4666_v61, %s4579_s12  ;;  %1998 = vrot.lane.b32.xlu1 %v4652_v50, %s4579_s12 }
  0xb8   : > { %2010 = vrot.lane.b32.xlu0 %v4672_v62, %s4579_s12  ;;  %2002 = vrot.lane.b32.xlu1 %v4654_v51, %s4579_s12 }
  0xbc   : > { %2415 = vrot.lane.b32.xlu0 %v4654_v51, %s4580_s13  ;;  %2411 = vrot.lane.b32.xlu1 %v4652_v50, %s4580_s13 }
  0xc0   : > { %2423 = vrot.lane.b32.xlu0 %v4672_v62, %s4580_s13  ;;  %2407 = vrot.lane.b32.xlu1 %v4660_v58, %s4580_s13 }
  0xc4   : > { %2419 = vrot.lane.b32.xlu0 %v4666_v61, %s4580_s13  ;;  %2825 = vrot.lane.b32.xlu1 %v4652_v50, %s4582_s17 }
  0xc8   : > { %2821 = vrot.lane.b32.xlu0 %v4660_v58, %s4582_s17  ;;  %2829 = vrot.lane.b32.xlu1 %v4654_v51, %s4582_s17 }
  0xcc   : > { %397 = vrot.lane.b32.xlu0 %v4730_v0, %s4576_s9  ;;  %389 = vrot.lane.b32.xlu1 %v4734_v1, %s4576_s9 }
  0xd0   : > { %401 = vrot.lane.b32.xlu0 %v4742_v2, %s4576_s9  ;;  %393 = vrot.lane.b32.xlu1 %v4746_v3, %s4576_s9 }
  0xd4   : > { %2833 = vrot.lane.b32.xlu0 %v4666_v61, %s4582_s17  ;;  %3253 = vrot.lane.b32.xlu1 %v4672_v62, %s4583_s18 }
  0xd8   : > { %2837 = vrot.lane.b32.xlu0 %v4672_v62, %s4582_s17  ;;  %1178 = vrot.lane.b32.xlu1 %v4730_v0, %s4577_s10 }
  0xdc   : > { %1170 = vrot.lane.b32.xlu0 %v4734_v1, %s4577_s10  ;;  %1182 = vrot.lane.b32.xlu1 %v4742_v2, %s4577_s10 }
  0xe0   : > { %1174 = vrot.lane.b32.xlu0 %v4746_v3, %s4577_s10  ;;  %1587 = vrot.lane.b32.xlu1 %v4746_v3, %s4578_s11 }
  0xe4   : > { %3245 = vrot.lane.b32.xlu0 %v4654_v51, %s4583_s18  ;;  %1595 = vrot.lane.b32.xlu1 %v4742_v2, %s4578_s11 }
  0xe8   : > { %3241 = vrot.lane.b32.xlu0 %v4652_v50, %s4583_s18  ;;  %1591 = vrot.lane.b32.xlu1 %v4730_v0, %s4578_s11 }
  0xec   : > { %1583 = vrot.lane.b32.xlu0 %v4734_v1, %s4578_s11  ;;  %3249 = vrot.lane.b32.xlu1 %v4666_v61, %s4583_s18 }
  0xf0   : > { %1996 = vrot.lane.b32.xlu0 %v4734_v1, %s4579_s12  ;;  %3657 = vrot.lane.b32.xlu1 %v4652_v50, %s4584_s19 }
  0xf4   : > { %2000 = vrot.lane.b32.xlu0 %v4746_v3, %s4579_s12  ;;  %3661 = vrot.lane.b32.xlu1 %v4654_v51, %s4584_s19 }
  0xf8   : > { %3237 = vrot.lane.b32.xlu0 %v4660_v58, %s4583_s18  ;;  %2004 = vrot.lane.b32.xlu1 %v4730_v0, %s4579_s12 }
  0xfc   : > { %2409 = vrot.lane.b32.xlu0 %v4734_v1, %s4580_s13  ;;  %2008 = vrot.lane.b32.xlu1 %v4742_v2, %s4579_s12 }
 0x100   : > { %2823 = vrot.lane.b32.xlu0 %v4734_v1, %s4582_s17  ;;  %2413 = vrot.lane.b32.xlu1 %v4746_v3, %s4580_s13 }
 0x104   : > { %2827 = vrot.lane.b32.xlu0 %v4746_v3, %s4582_s17  ;;  %2421 = vrot.lane.b32.xlu1 %v4742_v2, %s4580_s13 }
 0x106   : > { %v4804_v4 = vpop.permute.xlu0 %395  ;;  %v4806_v5 = vpop.permute.xlu1 %391 }
 0x108   : > { %3251 = vrot.lane.b32.xlu0 %v4742_v2, %s4583_s18  ;;  %2417 = vrot.lane.b32.xlu1 %v4730_v0, %s4580_s13 }
 0x10a   : > { %v4812_v6 = vpop.permute.xlu0 %1168  ;;  %v4814_v7 = vpop.permute.xlu1 %387 }
 0x10c   : > { %3247 = vrot.lane.b32.xlu0 %v4730_v0, %s4583_s18  ;;  %2831 = vrot.lane.b32.xlu1 %v4730_v0, %s4582_s17 }
 0x10e   : > { %v4820_v8 = vpop.permute.xlu0 %1180  ;;  %v4822_v9 = vpop.permute.xlu1 %399 }
 0x110   : > { %3655 = vrot.lane.b32.xlu0 %v4734_v1, %s4584_s19  ;;  %2835 = vrot.lane.b32.xlu1 %v4742_v2, %s4582_s17 }
 0x112   : > { %v4828_v10 = vpop.permute.xlu0 %1184  ;;  %v4830_v11 = vpop.permute.xlu1 %403 }
 0x114   : > { %3659 = vrot.lane.b32.xlu0 %v4746_v3, %s4584_s19  ;;  %3243 = vrot.lane.b32.xlu1 %v4746_v3, %s4583_s18 }
 0x116   : > { %v4836_v12 = vpop.permute.xlu0 %1589  ;;  %v4838_v13 = vpop.permute.xlu1 %1172 }
 0x118   : > { %3653 = vrot.lane.b32.xlu0 %v4660_v58, %s4584_s19  ;;  %2839 = vrot.lane.b32.xlu1 %v2820_v14, %s4582_s17 }
 0x11a   : > { %v4845_v15 = vpop.permute.xlu0 %1597  ;;  %v4847_v16 = vpop.permute.xlu1 %1176 }
 0x11c   : > { %3665 = vrot.lane.b32.xlu0 %v4666_v61, %s4584_s19  ;;  %3239 = vrot.lane.b32.xlu1 %v4734_v1, %s4583_s18 }
 0x11e   : > { %v4853_v17 = vpop.permute.xlu0 %1593  ;;  %v4855_v18 = vpop.permute.xlu1 %1585 }
 0x120   : > { %3669 = vrot.lane.b32.xlu0 %v4672_v62, %s4584_s19  ;;  %3255 = vrot.lane.b32.xlu1 %v2820_v14, %s4583_s18 }
 0x122   : > { %v4860_v19 = vpop.permute.xlu0 %1994  ;;  %v4862_v20 = vpop.permute.xlu1 %1581 }
 0x124   : > { %3663 = vrot.lane.b32.xlu1 %v4730_v0, %s4584_s19  ;;  %4070 = vperm.xlu0 %4560, %v4067_v21  }
 0x126   : > { %v4873_v23 = vpop.permute.xlu0 %2006  ;;  %v4875_v24 = vpop.permute.xlu1 %1998 }
 0x128   : > { %3667 = vrot.lane.b32.xlu1 %v4742_v2, %s4584_s19  ;;  %4100 = vrot.lane.b32.xlu0 %v4083_v22, %s4579_s12 }
 0x12a   : > { %v4880_v26 = vpop.permute.xlu0 %2010  ;;  %v4882_v27 = vpop.permute.xlu1 %2002 }
 0x12c   : > { %3671 = vrot.lane.b32.xlu1 %v2820_v14, %s4584_s19  ;;  %4104 = vrot.lane.b32.xlu0 %v4084_v25, %s4579_s12 }
 0x12e   : > { %v4886_v30 = vpop.permute.xlu0 %2415  ;;  %v4888_v31 = vpop.permute.xlu1 %2411 }
 0x130   : > { %4096 = vrot.lane.b32.xlu1 %v4082_v28, %s4579_s12  ;;  %4108 = vrot.lane.b32.xlu0 %v4085_v29, %s4579_s12 }
 0x132   : > { %v4892_v34 = vpop.permute.xlu0 %2423  ;;  %v4894_v35 = vpop.permute.xlu1 %2407 }
 0x134   : > { %4098 = vrot.lane.b32.xlu1 %v4092_v32, %s4579_s12  ;;  %4112 = vrot.lane.b32.xlu0 %v4086_v33, %s4579_s12 }
 0x136   : > { %v4898_v37 = vpop.permute.xlu0 %2419  ;;  %v4900_v38 = vpop.permute.xlu1 %2825 }
 0x138   : > { %4102 = vrot.lane.b32.xlu1 %v4093_v36, %s4579_s12  ;;  %v4316_v36 = vld [vmem:[%s5318_s3 + $0xc] sm:$0xf] }
 0x13a   : > { %v4903_v40 = vpop.permute.xlu0 %2821  ;;  %v4905_v41 = vpop.permute.xlu1 %2829 }
 0x13c   : > { %4106 = vrot.lane.b32.xlu1 %v4094_v39, %s4579_s12 }
 0x13e   : > { %v398_v43 = vpop.permute.xlu0 %397  ;;  %v390_v44 = vpop.permute.xlu1 %389 }
 0x13f   : > { %v407_v45 = vsel %vm405_vm0, %v390_v44, %v4806_v5  ;;  %v406_v46 = vsel %vm405_vm0, %v4814_v7, %v390_v44  ;;  %v411_v48 = vsel %vm405_vm0, %v398_v43, %v4822_v9  ;;  %v410_v49 = vsel %vm405_vm0, %v4804_v4, %v398_v43 }
 0x140   : > { %4273 = vmatprep.subr.msk.mxu0 %vm418_vm1, %v407_v45  ;;  %4110 = vrot.lane.b32.xlu1 %v4095_v42, %s4579_s12 }
 0x141   : > { %4274 = vmatpush1.msk.msra.mxu0 %vm418_vm1, %v406_v46 }
 0x142   : > { %v402_v52 = vpop.permute.xlu0 %401  ;;  %4275 = vmatmul.mubr.msk.f32.vlgmr.msra.gmra.mrb[0].mxu0 %vm414_vm2, %v4272_v47  ;;  %4279 = vmatprep.subr.msk.mxu0 %vm418_vm1, %v411_v48  ;;  %v394_v53 = vpop.permute.xlu1 %393 }
 0x143   : > { %4280 = vmatpush1.msk.msra.mxu0 %vm418_vm1, %v410_v49  ;;  %v409_v54 = vsel %vm405_vm0, %v394_v53, %v4804_v4  ;;  %v408_v55 = vsel %vm405_vm0, %v4806_v5, %v394_v53  ;;  %643 = vmatprep.mubr.f32.mxu0 %v4581_v63  ;;  %v413_v56 = vsel %vm405_vm0, %v402_v52, %v4830_v11 }
 0x144   : > { %4276 = vmatprep.subr.msk.mxu1 %vm418_vm1, %v409_v54  ;;  %4426 = vmatprep.subr.mxu0 %v4581_v63  ;;  %v412_v60 = vsel %vm405_vm0, %v4822_v9, %v402_v52  ;;  %vm4190_vm0 = vmor %vm4189_vm14, %vm4188_vm13 }
 0x145   : > { %4277 = vmatpush1.msk.msra.mxu1 %vm418_vm1, %v408_v55 }
 0x146   : > { %v4935_v57 = vpop.permute.xlu0 %2833  ;;  %4278 = vmatmul.mubr.msk.f32.vlgmr.msra.gmra.mrb[0].mxu1 %vm414_vm2, %v4272_v47  ;;  %4281 = vmatmul.mubr.msk.f32.vlgmr.msra.gmra.mrb[2].mxu0 %vm414_vm2, %v4272_v47  ;;  %v4939_v59 = vpop.permute.xlu1 %3253 }
 0x147   : > { %4282 = vmatprep.subr.msk.mxu1 %vm418_vm1, %v413_v56  ;;  %4427 = vmatpush3.msk.msra.mxu0 %vm418_vm1, %v4830_v11 }
 0x148   : > { %4283 = vmatpush1.msk.msra.mxu1 %vm418_vm1, %v412_v60  ;;  %4287 = vmatprep.subr.msk.mxu0 %vm418_vm1, %v4734_v1  ;;  %v375_v1 = vld [vmem:[%s5318_s3] sm:$0xf] }
 0x149   : > { %4290 = vmatprep.subr.msk.mxu1 %vm418_vm1, %v4746_v3  ;;  %714 = vmatprep.mubr.f32.mxu1 %v4581_v63 }
 0x14a   : > { %4428 = vmatprep.mubr.msk.f32.mxu0 %vm4585_vm3, %v4581_v63  ;;  %v4954_v4 = vpop.permute.xlu0 %2837  ;;  %4284 = vmatmul.mubr.msk.f32.vlgmr.msra.gmra.mrb[2].mxu1 %vm414_vm2, %v4272_v47  ;;  %v1179_v5 = vpop.permute.xlu1 %1178 }
 0x14b   : > { %4429 = vmatmul.mubr.msk.f32.vlgmr.msra.gmra.mrb[4].mxu0 %vm414_vm2, %v4272_v47  ;;  %4291 = vmatpush1.msk.msra.mxu1 %vm418_vm1, %v4652_v50  ;;  %v4331_v47 = vld [vmem:[%s5318_s3 + $0x10] sm:$0xf] }
 0x14c   : > { %4288 = vmatpush1.msk.msra.mxu0 %vm418_vm1, %v4660_v58  ;;  %4296 = vmatprep.subr.msk.mxu1 %vm418_vm1, %v4742_v2 }
 0x14d   : > { %4293 = vmatprep.subr.msk.mxu0 %vm418_vm1, %v4730_v0  ;;  %876 = vmatprep.mubr.f32.mxu0 %v4581_v63 }
 0x14e   : > { %947 = vmatprep.mubr.f32.mxu1 %v4581_v63  ;;  %v1171_v3 = vpop.permute.xlu0 %1170  ;;  %v1183_v50 = vpop.permute.xlu1 %1182 }
 0x14f   : > { %v1188_v58 = vsel %vm1186_vm4, %v1171_v3, %v4838_v13  ;;  %4289 = vmatmul.mubr.msk.f32.vlgmr.msra.gmra.mrb[0].mxu0 %vm414_vm2, %v375_v1  ;;  %4292 = vmatmul.mubr.msk.f32.vlgmr.msra.gmra.mrb[0].mxu1 %vm414_vm2, %v375_v1  ;;  %v1187_v7 = vsel %vm1186_vm4, %v4812_v6, %v1171_v3  ;;  %v1194_v21 = vsel %vm1186_vm4, %v1183_v50, %v4828_v10 }
 0x150   : > { %4294 = vmatpush1.msk.msra.mxu0 %vm418_vm1, %v4654_v51  ;;  %4297 = vmatpush1.msk.msra.mxu1 %vm418_vm1, %v4666_v61  ;;  %v1192_v51 = vsel %vm1186_vm4, %v1179_v5, %v4820_v8  ;;  %v4301_v61 = vld [vmem:[%s5318_s3 + $0x8] sm:$0xf]  ;;  %v1193_v22 = vsel %vm1186_vm4, %v4820_v8, %v1183_v50 }
 0x151   : > { %4302 = vmatprep.subr.msk.mxu0 %vm418_vm1, %v1188_v58  ;;  %1018 = vmatprep.mubr.f32.mxu0 %v4581_v63 }
 0x152   : > { %1089 = vmatprep.mubr.f32.mxu1 %v4581_v63  ;;  %4431 = vmatprep.subr.mxu1 %v4581_v63  ;;  %v1175_v0 = vpop.permute.xlu0 %1174  ;;  %v1588_v2 = vpop.permute.xlu1 %1587 }
 0x153   : > { %v1190_v9 = vsel %vm1186_vm4, %v1175_v0, %v4847_v16  ;;  %4295 = vmatmul.mubr.msk.f32.vlgmr.msra.gmra.mrb[2].mxu0 %vm414_vm2, %v375_v1  ;;  %4298 = vmatmul.mubr.msk.f32.vlgmr.msra.gmra.mrb[2].mxu1 %vm414_vm2, %v375_v1  ;;  %v1189_v14 = vsel %vm1186_vm4, %v4838_v13, %v1175_v0  ;;  %v1603_v25 = vsel %vm1599_vm5, %v1588_v2, %v4836_v12 }
 0x154   : > { %4432 = vmatpush3.msk.msra.mxu1 %vm418_vm1, %v4672_v62  ;;  %4303 = vmatpush1.msk.msra.mxu0 %vm418_vm1, %v1187_v7  ;;  %v1191_v62 = vsel %vm1186_vm4, %v4847_v16, %v1179_v5  ;;  %v1602_v29 = vsel %vm1599_vm5, %v4855_v18, %v1588_v2 }
 0x155   : > { %4308 = vmatprep.subr.msk.mxu0 %vm418_vm1, %v1192_v51  ;;  %4305 = vmatprep.subr.msk.mxu1 %vm418_vm1, %v1190_v9 }
 0x156   : > { %4433 = vmatprep.mubr.msk.f32.mxu1 %vm4585_vm3, %v4581_v63  ;;  %1280 = vmatprep.mubr.f32.mxu0 %v4581_v63  ;;  %v5002_v6 = vpop.permute.xlu0 %3245  ;;  %v1596_v11 = vpop.permute.xlu1 %1595 }
 0x157   : > { %4434 = vmatmul.mubr.msk.f32.vlgmr.msra.gmra.mrb[4].mxu1 %vm414_vm2, %v375_v1  ;;  %4304 = vmatmul.mubr.msk.f32.vlgmr.msra.gmra.mrb[0].mxu0 %vm414_vm2, %v4301_v61  ;;  %v1606_v39 = vsel %vm1599_vm5, %v4853_v17, %v1596_v11  ;;  %v4346_v1 = vld [vmem:[%s5318_s3 + $0x14] sm:$0xf] }
 0x158   : > { %4306 = vmatpush1.msk.msra.mxu1 %vm418_vm1, %v1189_v14  ;;  %4309 = vmatpush1.msk.msra.mxu0 %vm418_vm1, %v1191_v62  ;;  %v4361_v62 = vld [vmem:[%s5318_s3 + $0x18] sm:$0xf] }
 0x159   : > { %4311 = vmatprep.subr.msk.mxu1 %vm418_vm1, %v1194_v21  ;;  %1351 = vmatprep.mubr.f32.mxu1 %v4581_v63 }
 0x15a   : > { %1422 = vmatprep.mubr.f32.mxu0 %v4581_v63  ;;  %4436 = vmatprep.subr.mxu0 %v4581_v63  ;;  %v5018_v13 = vpop.permute.xlu0 %3241  ;;  %v1592_v16 = vpop.permute.xlu1 %1591 }
 0x15b   : > { %4307 = vmatmul.mubr.msk.f32.vlgmr.msra.gmra.mrb[0].mxu1 %vm414_vm2, %v4301_v61  ;;  %4310 = vmatmul.mubr.msk.f32.vlgmr.msra.gmra.mrb[2].mxu0 %vm414_vm2, %v4301_v61  ;;  %v1605_v42 = vsel %vm1599_vm5, %v1592_v16, %v4853_v17  ;;  %v1604_v44 = vsel %vm1599_vm5, %v4836_v12, %v1592_v16 }
 0x15c   : > { %4312 = vmatpush1.msk.msra.mxu1 %vm418_vm1, %v1193_v22  ;;  %4437 = vmatpush3.msk.msra.mxu0 %vm418_vm1, %v4828_v10  ;;  %v1607_v10 = vsel %vm1599_vm5, %v1596_v11, %v4845_v15 }
 0x15d   : > { %4320 = vmatprep.subr.msk.mxu1 %vm418_vm1, %v1603_v25  ;;  %1493 = vmatprep.mubr.f32.mxu1 %v4581_v63 }
 0x15e   : > { %4438 = vmatprep.mubr.msk.f32.mxu0 %vm4585_vm3, %v4581_v63  ;;  %v1584_v8 = vpop.permute.xlu0 %1583  ;;  %v5033_v28 = vpop.permute.xlu1 %3249 }
 0x15f   : > { %v1600_v32 = vsel %vm1599_vm5, %v4862_v20, %v1584_v8  ;;  %v1601_v33 = vsel %vm1599_vm5, %v1584_v8, %v4855_v18  ;;  %4313 = vmatmul.mubr.msk.f32.vlgmr.msra.gmra.mrb[2].mxu1 %vm414_vm2, %v4301_v61  ;;  %4439 = vmatmul.mubr.msk.f32.vlgmr.msra.gmra.mrb[6].mxu0 %vm414_vm2, %v4301_v61 }
 0x160   : > { %4321 = vmatpush1.msk.msra.mxu1 %vm418_vm1, %v1602_v29  ;;  %4317 = vmatprep.subr.msk.mxu0 %vm418_vm1, %v1601_v33  ;;  %v4376_v29 = vld [vmem:[%s5318_s3 + $0x1c] sm:$0xf] }
 0x161   : > { %4326 = vmatprep.subr.msk.mxu1 %vm418_vm1, %v1607_v10  ;;  %4318 = vmatpush1.msk.msra.mxu0 %vm418_vm1, %v1600_v32 }
 0x162   : > { %1693 = vmatprep.mubr.f32.mxu0 %v4581_v63  ;;  %1764 = vmatprep.mubr.f32.mxu1 %v4581_v63  ;;  %v1997_v18 = vpop.permute.xlu0 %1996  ;;  %v5054_v20 = vpop.permute.xlu1 %3657 }
 0x163   : > { %v2014_v43 = vsel %vm2012_vm6, %v1997_v18, %v4875_v24  ;;  %4319 = vmatmul.mubr.msk.f32.vlgmr.msra.gmra.mrb[0].mxu0 %vm414_vm2, %v4316_v36  ;;  %4322 = vmatmul.mubr.msk.f32.vlgmr.msra.gmra.mrb[0].mxu1 %vm414_vm2, %v4316_v36  ;;  %v2013_v46 = vsel %vm2012_vm6, %v4860_v19, %v1997_v18 }
 0x164   : > { %4323 = vmatprep.subr.msk.mxu0 %vm418_vm1, %v1605_v42  ;;  %4327 = vmatpush1.msk.msra.mxu1 %vm418_vm1, %v1606_v39 }
 0x165   : > { %4324 = vmatpush1.msk.msra.mxu0 %vm418_vm1, %v1604_v44  ;;  %1835 = vmatprep.mubr.f32.mxu0 %v4581_v63 }
 0x166   : > { %4332 = vmatprep.subr.msk.mxu0 %vm418_vm1, %v2014_v43  ;;  %1906 = vmatprep.mubr.f32.mxu1 %v4581_v63  ;;  %v2001_v17 = vpop.permute.xlu0 %2000  ;;  %v5072_v45 = vpop.permute.xlu1 %3661 }
 0x167   : > { %4441 = vmatprep.subr.mxu1 %v4581_v63  ;;  %v2016_v12 = vsel %vm2012_vm6, %v2001_v17, %v4882_v27  ;;  %4325 = vmatmul.mubr.msk.f32.vlgmr.msra.gmra.mrb[2].mxu0 %vm414_vm2, %v4316_v36 }
 0x168   : > { %4328 = vmatmul.mubr.msk.f32.vlgmr.msra.gmra.mrb[2].mxu1 %vm414_vm2, %v4316_v36  ;;  %4333 = vmatpush1.msk.msra.mxu0 %vm418_vm1, %v2013_v46 }
 0x169   : > { %4442 = vmatpush3.msk.msra.mxu1 %vm418_vm1, %v4845_v15  ;;  %4443 = vmatprep.mubr.msk.f32.mxu1 %vm4585_vm3, %v4581_v63  ;;  %v2015_v15 = vsel %vm2012_vm6, %v4875_v24, %v2001_v17 }
 0x16a   : > { %4335 = vmatprep.subr.msk.mxu1 %vm418_vm1, %v2016_v12  ;;  %2106 = vmatprep.mubr.f32.mxu0 %v4581_v63  ;;  %v5091_v19 = vpop.permute.xlu0 %3237  ;;  %v2005_v48 = vpop.permute.xlu1 %2004 }
 0x16b   : > { %4334 = vmatmul.mubr.msk.f32.vlgmr.msra.gmra.mrb[0].mxu0 %vm414_vm2, %v4331_v47  ;;  %v2017_v49 = vsel %vm2012_vm6, %v4882_v27, %v2005_v48  ;;  %v2018_v52 = vsel %vm2012_vm6, %v2005_v48, %v4873_v23 }
 0x16c   : > { %4444 = vmatmul.mubr.msk.f32.vlgmr.msra.gmra.mrb[6].mxu1 %vm414_vm2, %v4316_v36  ;;  %4338 = vmatprep.subr.msk.mxu0 %vm418_vm1, %v2018_v52 }
 0x16d   : > { %4336 = vmatpush1.msk.msra.mxu1 %vm418_vm1, %v2015_v15  ;;  %2177 = vmatprep.mubr.f32.mxu1 %v4581_v63 }
 0x16e   : > { %4339 = vmatpush1.msk.msra.mxu0 %vm418_vm1, %v2017_v49  ;;  %2248 = vmatprep.mubr.f32.mxu0 %v4581_v63  ;;  %v2410_v27 = vpop.permute.xlu0 %2409  ;;  %v2009_v53 = vpop.permute.xlu1 %2008 }
 0x16f   : > { %v2427_v54 = vsel %vm2425_vm7, %v2410_v27, %v4888_v31  ;;  %4340 = vmatmul.mubr.msk.f32.vlgmr.msra.gmra.mrb[2].mxu0 %vm414_vm2, %v4331_v47  ;;  %4446 = vmatprep.subr.mxu0 %v4581_v63  ;;  %v2019_v24 = vsel %vm2012_vm6, %v4873_v23, %v2009_v53  ;;  %v2020_v55 = vsel %vm2012_vm6, %v2009_v53, %v4880_v26 }
 0x170   : > { %4337 = vmatmul.mubr.msk.f32.vlgmr.msra.gmra.mrb[0].mxu1 %vm414_vm2, %v4331_v47  ;;  %4447 = vmatpush3.msk.msra.mxu0 %vm418_vm1, %v4880_v26  ;;  %v2426_v26 = vsel %vm2425_vm7, %v4894_v35, %v2410_v27 }
 0x171   : > { %4341 = vmatprep.subr.msk.mxu1 %vm418_vm1, %v2020_v55  ;;  %4347 = vmatprep.subr.msk.mxu0 %vm418_vm1, %v2427_v54 }
 0x172   : > { %4342 = vmatpush1.msk.msra.mxu1 %vm418_vm1, %v2019_v24  ;;  %2319 = vmatprep.mubr.f32.mxu1 %v4581_v63  ;;  %v2824_v56 = vpop.permute.xlu0 %2823  ;;  %v2414_v60 = vpop.permute.xlu1 %2413 }
 0x173   : > { %4448 = vmatprep.mubr.msk.f32.mxu0 %vm4585_vm3, %v4581_v63  ;;  %v2428_v23 = vsel %vm2425_vm7, %v4888_v31, %v2414_v60  ;;  %v2429_v5 = vsel %vm2425_vm7, %v2414_v60, %v4886_v30  ;;  %v2842_v61 = vsel %vm2841_vm8, %v4903_v40, %v2824_v56 }
 0x174   : > { %4343 = vmatmul.mubr.msk.f32.vlgmr.msra.gmra.mrb[2].mxu1 %vm414_vm2, %v4331_v47  ;;  %4449 = vmatmul.mubr.msk.f32.vlgmr.msra.gmra.mrb[8].mxu0 %vm414_vm2, %v4331_v47  ;;  %v4391_v47 = vld [vmem:[%s5318_s3 + $0x20] sm:$0xf] }
 0x175   : > { %4348 = vmatpush1.msk.msra.mxu0 %vm418_vm1, %v2426_v26  ;;  %4350 = vmatprep.subr.msk.mxu1 %vm418_vm1, %v2429_v5 }
 0x176   : > { %4351 = vmatpush1.msk.msra.mxu1 %vm418_vm1, %v2428_v23  ;;  %2590 = vmatprep.mubr.f32.mxu1 %v4581_v63  ;;  %v2828_v31 = vpop.permute.xlu0 %2827  ;;  %v2422_v3 = vpop.permute.xlu1 %2421 }
 0x177   : > { %v2432_v35 = vsel %vm2425_vm7, %v4898_v37, %v2422_v3  ;;  %v2433_v50 = vsel %vm2425_vm7, %v2422_v3, %v4892_v34  ;;  %2519 = vmatprep.mubr.f32.mxu0 %v4581_v63  ;;  %v2845_v9 = vsel %vm2841_vm8, %v2828_v31, %v4905_v41 }
 0x178   : > { %4352 = vmatmul.mubr.msk.f32.vlgmr.msra.gmra.mrb[0].mxu1 %vm414_vm2, %v4346_v1  ;;  %4356 = vmatprep.subr.msk.mxu1 %vm418_vm1, %v2433_v50 }
 0x179   : > { %4357 = vmatpush1.msk.msra.mxu1 %vm418_vm1, %v2432_v35  ;;  %2732 = vmatprep.mubr.f32.mxu1 %v4581_v63 }
 0x17a   : > { %v3252_v58 = vpop.permute.xlu0 %3251  ;;  %4349 = vmatmul.mubr.msk.f32.vlgmr.msra.gmra.mrb[0].mxu0 %vm414_vm2, %v4346_v1  ;;  %4451 = vmatprep.subr.mxu1 %v4581_v63  ;;  %v2418_v0 = vpop.permute.xlu1 %2417 }
 0x17b   : > { %v2430_v2 = vsel %vm2425_vm7, %v4886_v30, %v2418_v0  ;;  %v2431_v7 = vsel %vm2425_vm7, %v2418_v0, %v4898_v37  ;;  %2661 = vmatprep.mubr.f32.mxu0 %v4581_v63  ;;  %v2843_v30 = vsel %vm2841_vm8, %v2824_v56, %v4900_v38  ;;  %v3265_v8 = vsel %vm3257_vm9, %v3252_v58, %v4939_v59 }
 0x17c   : > { %4358 = vmatmul.mubr.msk.f32.vlgmr.msra.gmra.mrb[2].mxu1 %vm414_vm2, %v4346_v1  ;;  %4353 = vmatprep.subr.msk.mxu0 %vm418_vm1, %v2431_v7  ;;  %v3264_v10 = vsel %vm3257_vm9, %v5033_v28, %v3252_v58 }
 0x17d   : > { %4452 = vmatpush3.msk.msra.mxu1 %vm418_vm1, %v4892_v34  ;;  %4354 = vmatpush1.msk.msra.mxu0 %vm418_vm1, %v2430_v2  ;;  %v2844_v34 = vsel %vm2841_vm8, %v4900_v38, %v2828_v31 }
 0x17e   : > { %4365 = vmatprep.subr.msk.mxu1 %vm418_vm1, %v2845_v9  ;;  %4453 = vmatprep.mubr.msk.f32.mxu1 %vm4585_vm3, %v4581_v63  ;;  %v3248_v37 = vpop.permute.xlu0 %3247  ;;  %v2832_v51 = vpop.permute.xlu1 %2831 }
 0x17f   : > { %4355 = vmatmul.mubr.msk.f32.vlgmr.msra.gmra.mrb[2].mxu0 %vm414_vm2, %v4346_v1  ;;  %4362 = vmatprep.subr.msk.mxu0 %vm418_vm1, %v2843_v30  ;;  %v2847_v11 = vsel %vm2841_vm8, %v2832_v51, %v4935_v57  ;;  %v2846_v14 = vsel %vm2841_vm8, %v4905_v41, %v2832_v51  ;;  %v3263_v42 = vsel %vm3257_vm9, %v3248_v37, %v5033_v28 }
 0x180   : > { %4454 = vmatmul.mubr.msk.f32.vlgmr.msra.gmra.mrb[8].mxu1 %vm414_vm2, %v4346_v1  ;;  %4363 = vmatpush1.msk.msra.mxu0 %vm418_vm1, %v2842_v61  ;;  %v3262_v43 = vsel %vm3257_vm9, %v5002_v6, %v3248_v37 }
 0x181   : > { %4366 = vmatpush1.msk.msra.mxu1 %vm418_vm1, %v2844_v34  ;;  %4368 = vmatprep.subr.msk.mxu0 %vm418_vm1, %v2847_v11 }
 0x182   : > { %2936 = vmatprep.mubr.f32.mxu0 %v4581_v63  ;;  %v5182_v40 = vpop.permute.xlu0 %3655  ;;  %3007 = vmatprep.mubr.f32.mxu1 %v4581_v63  ;;  %v2836_v38 = vpop.permute.xlu1 %2835 }
 0x183   : > { %4364 = vmatmul.mubr.msk.f32.vlgmr.msra.gmra.mrb[0].mxu0 %vm414_vm2, %v4361_v62  ;;  %v2848_v21 = vsel %vm2841_vm8, %v4935_v57, %v2836_v38  ;;  %v2849_v16 = vsel %vm2841_vm8, %v2836_v38, %v4954_v4  ;;  %v3675_v44 = vsel %vm3673_vm10, %v5182_v40, %v5054_v20 }
 0x184   : > { %4369 = vmatpush1.msk.msra.mxu0 %vm418_vm1, %v2846_v14  ;;  %4367 = vmatmul.mubr.msk.f32.vlgmr.msra.gmra.mrb[0].mxu1 %vm414_vm2, %v4361_v62 }
 0x185   : > { %4371 = vmatprep.subr.msk.mxu1 %vm418_vm1, %v2849_v16  ;;  %3149 = vmatprep.mubr.f32.mxu1 %v4581_v63 }
 0x186   : > { %4372 = vmatpush1.msk.msra.mxu1 %vm418_vm1, %v2848_v21  ;;  %v3244_v41 = vpop.permute.xlu1 %3243  ;;  %3078 = vmatprep.mubr.f32.mxu0 %v4581_v63  ;;  %v3660_v25 = vpop.permute.xlu0 %3659 }
 0x187   : > { %v3260_v57 = vsel %vm3257_vm9, %v5018_v13, %v3244_v41  ;;  %v3261_v22 = vsel %vm3257_vm9, %v3244_v41, %v5002_v6  ;;  %4370 = vmatmul.mubr.msk.f32.vlgmr.msra.gmra.mrb[2].mxu0 %vm414_vm2, %v4361_v62  ;;  %4456 = vmatprep.subr.mxu0 %v4581_v63  ;;  %v3677_v17 = vsel %vm3673_vm10, %v3660_v25, %v5072_v45 }
 0x188   : > { %4373 = vmatmul.mubr.msk.f32.vlgmr.msra.gmra.mrb[2].mxu1 %vm414_vm2, %v4361_v62  ;;  %4380 = vmatprep.subr.msk.mxu1 %vm418_vm1, %v3261_v22  ;;  %v3676_v46 = vsel %vm3673_vm10, %v5054_v20, %v3660_v25 }
 0x189   : > { %4381 = vmatpush1.msk.msra.mxu1 %vm418_vm1, %v3260_v57  ;;  %3423 = vmatprep.mubr.f32.mxu1 %v4581_v63 }
 0x18a   : > { %4386 = vmatprep.subr.msk.mxu1 %vm418_vm1, %v3265_v8  ;;  %v2840_v32 = vpop.permute.xlu1 %2839  ;;  %4458 = vmatprep.mubr.msk.f32.mxu0 %vm4585_vm3, %v4581_v63  ;;  %v3654_v36 = vpop.permute.xlu0 %3653 }
 0x18b   : > { %v2850_v33 = vsel %vm2841_vm8, %v4954_v4, %v2840_v32 }
 0x18c   : > { %4382 = vmatmul.mubr.msk.f32.vlgmr.msra.gmra.mrb[0].mxu1 %vm414_vm2, %v4376_v29  ;;  %4457 = vmatpush3.msk.msra.mxu0 %vm418_vm1, %v2850_v33 }
 0x18d   : > { %4387 = vmatpush1.msk.msra.mxu1 %vm418_vm1, %v3264_v10  ;;  %4459 = vmatmul.mubr.msk.f32.vlgmr.msra.gmra.mrb[10].mxu0 %vm414_vm2, %v4361_v62 }
 0x18e   : > { %v3240_v18 = vpop.permute.xlu1 %3239  ;;  %3565 = vmatprep.mubr.f32.mxu1 %v4581_v63  ;;  %3352 = vmatprep.mubr.f32.mxu0 %v4581_v63  ;;  %v3666_v6 = vpop.permute.xlu0 %3665 }
 0x18f   : > { %v3258_v4 = vsel %vm3257_vm9, %v5091_v19, %v3240_v18  ;;  %v3259_v39 = vsel %vm3257_vm9, %v3240_v18, %v5018_v13  ;;  %4461 = vmatprep.subr.mxu1 %v4581_v63 }
 0x190   : > { %4377 = vmatprep.subr.msk.mxu0 %vm418_vm1, %v3259_v39  ;;  %4388 = vmatmul.mubr.msk.f32.vlgmr.msra.gmra.mrb[2].mxu1 %vm414_vm2, %v4376_v29 }
 0x191   : > { %4378 = vmatpush1.msk.msra.mxu0 %vm418_vm1, %v3258_v4  ;;  %4463 = vmatprep.mubr.msk.f32.mxu1 %vm4585_vm3, %v4581_v63 }
 0x192   : > { %4379 = vmatmul.mubr.msk.f32.vlgmr.msra.gmra.mrb[0].mxu0 %vm414_vm2, %v4376_v29  ;;  %4383 = vmatprep.subr.msk.mxu0 %vm418_vm1, %v3263_v42  ;;  %v3256_v13 = vpop.permute.xlu1 %3255  ;;  %v3670_v19 = vpop.permute.xlu0 %3669 }
 0x193   : > { %v3266_v28 = vsel %vm3257_vm9, %v4939_v59, %v3256_v13  ;;  %4384 = vmatpush1.msk.msra.mxu0 %vm418_vm1, %v3262_v43  ;;  %3494 = vmatprep.mubr.f32.mxu0 %v4581_v63  ;;  %v3674_v59 = vsel %vm3673_vm10, %v3654_v36, %v5182_v40 }
 0x194   : > { %4462 = vmatpush3.msk.msra.mxu1 %vm418_vm1, %v3266_v28  ;;  %4392 = vmatprep.subr.msk.mxu0 %vm418_vm1, %v3675_v44 }
 0x195   : > { %4464 = vmatmul.mubr.msk.f32.vlgmr.msra.gmra.mrb[10].mxu1 %vm414_vm2, %v4376_v29  ;;  %4395 = vmatprep.subr.msk.mxu1 %vm418_vm1, %v3677_v17 }
 0x196   : > { %4385 = vmatmul.mubr.msk.f32.vlgmr.msra.gmra.mrb[2].mxu0 %vm414_vm2, %v4376_v29  ;;  %4396 = vmatpush1.msk.msra.mxu1 %vm418_vm1, %v3676_v46  ;;  %v3664_v12 = vpop.permute.xlu1 %3663 }
 0x197   : > { %4393 = vmatpush1.msk.msra.mxu0 %vm418_vm1, %v3674_v59  ;;  %v3679_v20 = vsel %vm3673_vm10, %v3664_v12, %v3666_v6  ;;  %3839 = vmatprep.mubr.f32.mxu1 %v4581_v63  ;;  %v3678_v48 = vsel %vm3673_vm10, %v5072_v45, %v3664_v12 }
 0x198   : > { %4398 = vmatprep.subr.msk.mxu0 %vm418_vm1, %v3679_v20  ;;  %3768 = vmatprep.mubr.f32.mxu0 %v4581_v63 }
 0x199   : > { %4397 = vmatmul.mubr.msk.f32.vlgmr.msra.gmra.mrb[0].mxu1 %vm414_vm2, %v4391_v47 }
 0x19a   : > { %4394 = vmatmul.mubr.msk.f32.vlgmr.msra.gmra.mrb[0].mxu0 %vm414_vm2, %v4391_v47  ;;  %v3668_v49 = vpop.permute.xlu1 %3667  ;;  %3981 = vmatprep.mubr.f32.mxu1 %v4581_v63 }
 0x19b   : > { %4399 = vmatpush1.msk.msra.mxu0 %vm418_vm1, %v3678_v48  ;;  %v3680_v52 = vsel %vm3673_vm10, %v3666_v6, %v3668_v49  ;;  %v3681_v15 = vsel %vm3673_vm10, %v3668_v49, %v3670_v19  ;;  %3910 = vmatprep.mubr.f32.mxu0 %v4581_v63 }
 0x19c   : > { %4401 = vmatprep.subr.msk.mxu1 %vm418_vm1, %v3681_v15  ;;  %4466 = vmatprep.subr.mxu0 %v4581_v63 }
 0x19d   : > { %4402 = vmatpush1.msk.msra.mxu1 %vm418_vm1, %v3680_v52 }
 0x19e   : > { %4400 = vmatmul.mubr.msk.f32.vlgmr.msra.gmra.mrb[2].mxu0 %vm414_vm2, %v4391_v47  ;;  %4403 = vmatmul.mubr.msk.f32.vlgmr.msra.gmra.mrb[2].mxu1 %vm414_vm2, %v4391_v47  ;;  %v3672_v45 = vpop.permute.xlu1 %3671 }
 0x19f   : > { %v3682_v27 = vsel %vm3673_vm10, %v3670_v19, %v3672_v45  ;;  %4468 = vmatprep.mubr.msk.f32.mxu0 %vm4585_vm3, %v4581_v63 }
 0x1a0   : > { %4467 = vmatpush3.msk.msra.mxu0 %vm418_vm1, %v3682_v27 }
 0x1a2   : > { %4469 = vmatmul.mubr.msk.f32.vlgmr.msra.gmra.mrb[12].mxu0 %vm414_vm2, %v4391_v47  ;;  %v4097_v9 = vpop.permute.xlu1 %4096  ;;  %vm4195_vm2 = vcmask 789504  }
 0x1a3   : > { %v4071_v7 = vpop.permute.xlu0 %4070 }
 0x1a6   : > { %v4099_v37 = vpop.permute.xlu1 %4098 }
 0x1a7   : > { %v4101_v30 = vpop.permute.xlu0 %4100  ;;  %v4114_v10 = vsel %vm2012_vm6, %v4097_v9, %v4099_v37 }
 0x1a8   : > { %v4115_v42 = vsel %vm2012_vm6, %v4099_v37, %v4101_v30 }
 0x1aa   : > { %v4103_v62 = vpop.permute.xlu1 %4102 }
 0x1ab   : > { %v4105_v11 = vpop.permute.xlu0 %4104  ;;  %v4116_v8 = vsel %vm2012_vm6, %v4101_v30, %v4103_v62 }
 0x1ac   : > { %v4117_v36 = vsel %vm2012_vm6, %v4103_v62, %v4105_v11 }
 0x1ae   : > { %v4107_v16 = vpop.permute.xlu1 %4106 }
 0x1af   : > { %v4109_v21 = vpop.permute.xlu0 %4108  ;;  %v4118_v17 = vsel %vm2012_vm6, %v4105_v11, %v4107_v16 }
 0x1b0   : > { %v4119_v27 = vsel %vm2012_vm6, %v4107_v16, %v4109_v21 }
 0x1b2   : > { %v4111_v44 = vpop.permute.xlu1 %4110 }
 0x1b3   : > { %v4113_v39 = vpop.permute.xlu0 %4112  ;;  %v4120_v15 = vsel %vm2012_vm6, %v4109_v21, %v4111_v44 }
 0x1b4   : > { %v4121_v19 = vsel %vm2012_vm6, %v4111_v44, %v4113_v39 }
 0x21e   : > { %v787_v53 = vpop.f32.mrb[4].mxu0 }
 0x21f   : > { %v4430_v54 = vpop.f32.mrb[5].mxu0 }
 0x22a   : > { %v1162_v24 = vpop.f32.mrb[4].mxu1 }
 0x22b   : > { %v1163_v55 = vadd.f32 %v1162_v24, %v787_v53  ;;  %v4435_v56 = vpop.f32.mrb[5].mxu1 }
 0x232   : > { %v1566_v60 = vpop.f32.mrb[6].mxu0 }
 0x233   : > { %v1578_v23 = vadd.f32 %v1566_v60, %v1163_v55  ;;  %v4440_v5 = vpop.f32.mrb[7].mxu0 }
 0x23f   : > { %v1979_v26 = vpop.f32.mrb[6].mxu1 }
 0x240   : > { %v1991_v1 = vadd.f32 %v1979_v26, %v1578_v23  ;;  %v4445_v31 = vpop.f32.mrb[7].mxu1 }
 0x247   : > { %v2392_v3 = vpop.f32.mrb[8].mxu0 }
 0x248   : > { %v2404_v35 = vadd.f32 %v2392_v3, %v1991_v1  ;;  %v4450_v50 = vpop.f32.mrb[9].mxu0 }
 0x253   : > { %v2805_v58 = vpop.f32.mrb[8].mxu1 }
 0x254   : > { %v2817_v0 = vadd.f32 %v2805_v58, %v2404_v35  ;;  %v4455_v2 = vpop.f32.mrb[9].mxu1 }
 0x260   : > { %v3222_v51 = vpop.f32.mrb[10].mxu0 }
 0x261   : > { %v3234_v61 = vadd.f32 %v3222_v51, %v2817_v0  ;;  %v4460_v34 = vpop.f32.mrb[11].mxu0 }
 0x268   : > { %v3638_v40 = vpop.f32.mrb[10].mxu1 }
 0x269   : > { %v3650_v38 = vadd.f32 %v3638_v40, %v3234_v61  ;;  %v4465_v14 = vpop.f32.mrb[11].mxu1 }
 0x26c   : > { %v3841_v41 = vpop.f32.mrb[0].mxu1 }
 0x26d   : > { %v4075_v57 = vadd.f32 %v4071_v7, %v3841_v41  ;;  %v3770_v22 = vpop.f32.mrb[0].mxu0  ;;  %v3843_v25 = vpop.f32.mrb[1].mxu1 }
 0x26e   : > { %v4073_v29 = vadd.f32 %v4071_v7, %v3770_v22  ;;  %v4076_v32 = vadd.f32 %v4071_v7, %v3843_v25  ;;  %v3772_v33 = vpop.f32.mrb[1].mxu0 }
 0x26f   : > { %v4133_v18 = vadd.f32 %v4116_v8, %v4075_v57  ;;  %v4074_v4 = vadd.f32 %v4071_v7, %v3772_v33 }
 0x270   : > { %v4131_v43 = vadd.f32 %v4114_v10, %v4073_v29  ;;  %v4134_v13 = vadd.f32 %v4117_v36, %v4076_v32 }
 0x271   : > { %v4132_v28 = vadd.f32 %v4115_v42, %v4074_v4  ;;  %v3912_v6 = vpop.f32.mrb[2].mxu0  ;;  %v3983_v46 = vpop.f32.mrb[2].mxu1 }
 0x272   : > { %v4077_v59 = vadd.f32 %v4071_v7, %v3912_v6  ;;  %v4079_v12 = vadd.f32 %v4071_v7, %v3983_v46  ;;  %v3914_v47 = vpop.f32.mrb[3].mxu0  ;;  %v3985_v20 = vpop.f32.mrb[3].mxu1  ;;  %v4157_v48 = vcombine.low %v4133_v18, %v4134_v13 }
 0x273   : > { %v4078_v49 = vadd.f32 %v4071_v7, %v3914_v47  ;;  %v4080_v52 = vadd.f32 %v4071_v7, %v3985_v20  ;;  %v4156_v45 = vcombine.low %v4131_v43, %v4132_v28 }
 0x274   : > { %v4135_v53 = vadd.f32 %v4118_v17, %v4077_v59  ;;  %v4137_v54 = vadd.f32 %v4120_v15, %v4079_v12  ;;  %4162 = vrot.lane.b32.xlu0 %v4157_v48, %s4586_s22 }
 0x275   : > { %v4136_v24 = vadd.f32 %v4119_v27, %v4078_v49  ;;  %v4138_v55 = vadd.f32 %v4121_v19, %v4080_v52  ;;  %v4054_v56 = vpop.f32.mrb[12].mxu0  ;;  %4160 = vrot.lane.b32.xlu1 %v4156_v45, %s4586_s22 }
 0x276   : > { %v4066_v60 = vadd.f32 %v4054_v56, %v3650_v38  ;;  %v4470_v23 = vpop.f32.mrb[13].mxu0 }
 0x277   : > { %v4158_v5 = vcombine.low %v4135_v53, %v4136_v24  ;;  %v4159_v26 = vcombine.low %v4137_v54, %v4138_v55 }
 0x278   : > { %v4081_v63 = vadd.f32 %v4071_v7, %v4066_v60 }
 0x279   : > { %4164 = vrot.lane.b32.xlu1 %v4158_v5, %s4586_s22  ;;  %4166 = vrot.lane.b32.xlu0 %v4159_v26, %s4586_s22 }
 0x27a   : > { %v4139_v1 = vadd.f32 %v4113_v39, %v4081_v63 }
 0x27d   : > { %4168 = vrot.lane.b32.xlu1 %v4139_v1, %s4586_s22 }
 0x2e6   : > { %v4163_v31 = vpop.permute.xlu0 %4162 }
 0x2e7   : > { %v4171_v3 = vrot.slane %v4163_v31, 4  ;;  %v4161_v35 = vpop.permute.xlu1 %4160 }
 0x2e8   : > { %v4170_v50 = vrot.slane %v4161_v35, 4 }
 0x2ea   : > { %v4175_v58 = vsel %vm4174_vm15, %v4170_v50, %v4161_v35  ;;  %v4176_v0 = vsel %vm418_vm1, %v4170_v50, %v4171_v3 }
 0x2eb   : > { %v4177_v2 = vsel %vm4174_vm15, %v4176_v0, %v4163_v31  ;;  %4191 = vst.msk [vmem:[%s4710_s16] sm:$0xff] %vm4190_vm0, %v4175_v58  ;;  %v4167_v7 = vpop.permute.xlu0 %4166  ;;  %v4165_v9 = vpop.permute.xlu1 %4164 }
 0x2ec   : > { %4192 = vst [vmem:[%s4710_s16 + $0x8] sm:$0xff] %v4177_v2  ;;  %v4173_v30 = vrot.slane %v4167_v7, 4  ;;  %v4172_v37 = vrot.slane %v4165_v9, 4 }
 0x2ee   : > { %v4178_v51 = vsel %vm418_vm1, %v4171_v3, %v4172_v37  ;;  %v4180_v61 = vsel %vm418_vm1, %v4172_v37, %v4173_v30 }
 0x2ef   : > { %v4179_v34 = vsel %vm4174_vm15, %v4178_v51, %v4165_v9  ;;  %v4181_v11 = vsel %vm4174_vm15, %v4180_v61, %v4167_v7  ;;  %v4169_v62 = vpop.permute.xlu1 %4168 }
 0x2f0   : > { %4193 = vst [vmem:[%s4710_s16 + $0x10] sm:$0xff] %v4179_v34  ;;  %4194 = vst [vmem:[%s4710_s16 + $0x18] sm:$0xff] %v4181_v11  ;;  %v4182_v40 = vsel %vm4174_vm15, %v4173_v30, %v4169_v62 }
 0x2f1   : > { %4196 = vst.msk [vmem:[%s4710_s16 + $0x20] sm:$0xf] %vm4195_vm2, %v4182_v40 }
 0x2f2 PF: > { %s16_s21 = sadd.s32 1, %s4571_s21  }
 0x2f3   : > { %p13_p4 = scmp.ge.s32.totalorder %s16_s21, 4  }
 0x2f5   :  { %15 = sbr.rel (!%p13_p4) target bundleno = 1 (0x1), region = 85 }

</bundles_post_ra>
